<compile_context>
chip_gen: v7x
topology: tpu7x:2x2x1
jax: 0.10.0
libtpu: 0.0.40
codegen_flags: <defaults>
</compile_context>

<pallas_src>
import math
import functools

import jax
import jax.numpy as jnp
from jax.experimental import pallas as pl
from jax.experimental.pallas import tpu as pltpu


def _round_up(x, m):
    return (x + m - 1) // m * m


def _cdiv(a, b):
    return -(-a // b)


def _dot_bt(emb, w, precision):
    """(tb, D) x (tn, D) -> (tb, tn), contracting D on both (no transpose)."""
    return jax.lax.dot_general(
        emb, w,
        dimension_numbers=(((1,), (1,)), ((), ())),
        preferred_element_type=jnp.float32,
        precision=precision)


def _arcface_label_kernel(has_ref, labels_ref, inv_ref, emb_ref, w_ref, out_ref,
                          *, s, cos_m, sin_m, th, mm, tn, precision):
    j = pl.program_id(0)            # class tile (outer)
    bi = pl.program_id(1)           # batch tile (inner)
    nb = pl.num_programs(1)

    # scaled = s * cos  (per-class 1/||w|| and s pre-folded into inv_ref)
    scaled = _dot_bt(emb_ref[...], w_ref[...], precision) * inv_ref[...]

    # Margin math only if some label in this batch tile lands in class tile j.
    @pl.when(has_ref[j * nb + bi] != 0)
    def _():
        col = jax.lax.broadcasted_iota(jnp.int32, scaled.shape, 1) + j * tn
        onehot = col == labels_ref[...]                          # (tb, tn)
        # Pick the label column per row (rows w/o a label here give 0, masked
        # out again below), then do the margin math on (tb, 1) values only.
        cos_lab = jnp.sum(jnp.where(onehot, scaled, 0.0), axis=-1,
                          keepdims=True) * (1.0 / s)             # (tb, 1)
        sine_lab = jnp.sqrt(jnp.clip(1.0 - cos_lab * cos_lab, 0.0, 1.0))
        phi_lab = cos_lab * cos_m - sine_lab * sin_m
        phi_lab = jnp.where(cos_lab > th, phi_lab, cos_lab - mm)
        delta = (phi_lab - cos_lab) * s                          # (tb, 1)
        out_ref[...] = (scaled + jnp.where(onehot, delta, 0.0)).astype(out_ref.dtype)

    @pl.when(has_ref[j * nb + bi] == 0)
    def _():
        out_ref[...] = scaled.astype(out_ref.dtype)


def _arcface_nolabel_kernel(inv_ref, emb_ref, w_ref, out_ref, *, precision):
    scaled = _dot_bt(emb_ref[...], w_ref[...], precision) * inv_ref[...]
    out_ref[...] = scaled.astype(out_ref.dtype)


def arcface_forward(emb, weight, labels=None, *, scale=64.0, margin=0.3,
                    tn=None, tb=None, matmul_dtype=None):
    """ArcFace forward.

    emb: (B, D) f32, weight: (N, D) f32 (out_features, in_features),
    labels: (B,) int or None.
    matmul_dtype=jnp.bfloat16 runs the MXU dot in bf16 (f32 accumulation) and
    halves the weight/emb HBM traffic -- recommended on v6e/v7x.  The default
    (None) keeps a true-f32 (Precision.HIGHEST) dot matching the PyTorch ref.
    """
    B, D = emb.shape
    N, D2 = weight.shape
    assert D == D2

    cos_m, sin_m = math.cos(margin), math.sin(margin)
    th = math.cos(math.pi - margin)
    mm = math.sin(math.pi - margin) * margin

    # --- VMEM budget (generation-aware; v7x-safe fallback of 64 MiB) --------
    vmem_cap = 64 * 1024 * 1024
    try:
        vmem_cap = int(pltpu.get_tpu_info().vmem_capacity_bytes)
    except Exception:
        pass

    in_b = 2 if matmul_dtype is not None and jnp.dtype(matmul_dtype).itemsize == 2 else 4
    precision = None if matmul_dtype is not None else jax.lax.Precision.HIGHEST

    # --- balanced batch tiling ----------------------------------------------
    if tb is None:
        tb_cap = 512 if vmem_cap >= 96 * 1024 * 1024 else 256   # v7x: 64 MiB VMEM
        nb = _cdiv(B, tb_cap)
        tb = _round_up(_cdiv(B, nb), 8)
    else:
        tb = max(8, _round_up(tb, 8))
        nb = _cdiv(B, tb)
    Bpad = nb * tb

    # --- balanced class tiling (grow tile toward half the VMEM budget) -------
    if tn is None:
        budget = vmem_cap // 2
        # double-buffered weight + emb tiles, double-buffered out tile, inv
        # tile, plus elementwise-temporary headroom (~3 out-tiles) and slack.
        denom = 2 * D * in_b + 5 * tb * 4 + 8
        tn_fit = (budget - 2 * tb * D * in_b - (1 << 20)) // max(denom, 1)
        tn_cap = max(128, min((tn_fit // 128) * 128, 2048))
        nj = _cdiv(N, tn_cap)
        if nb == 1 and nj == 1 and N >= 256:
            nj = 2                      # give the 2 v7x TensorCores work to split
        tn = _round_up(_cdiv(N, nj), 128)
    else:
        tn = max(128, _round_up(tn, 128))
        nj = _cdiv(N, tn)
    Npad = nj * tn

    # --- pad ragged shapes (padded weight rows/inv are zero -> cos col == 0) -
    emb_p = emb if Bpad == B else jnp.pad(emb, ((0, Bpad - B), (0, 0)))
    w_p = weight if Npad == N else jnp.pad(weight, ((0, Npad - N), (0, 0)))

    # Precompute per-class inv_s = s / max(||w||, 1e-12) once (hoisted out of
    # the kernel); padded classes get 0 so their columns stay exactly 0.
    ssq = jnp.sum(weight.astype(jnp.float32) ** 2, axis=1)
    inv_s = scale * jax.lax.rsqrt(jnp.maximum(ssq, 1e-24))
    inv_p = inv_s if Npad == N else jnp.pad(inv_s, (0, Npad - N))
    inv2d = inv_p.reshape(1, Npad).astype(jnp.float32)

    if matmul_dtype is not None:
        emb_p = emb_p.astype(matmul_dtype)
        w_p = w_p.astype(matmul_dtype)

    # --- compiler params / cost estimate -------------------------------------
    est = (2 * (tn * D + tb * D) * in_b        # dbl-buffered weight + emb tiles
           + 2 * tb * tn * 4                   # dbl-buffered out tile
           + 2 * tn * 4                        # inv tile
           + 3 * tb * tn * 4                   # elementwise temporaries headroom
           + (1 << 20))
    vmem_limit = int(min(max(est, 32 * 1024 * 1024), int(vmem_cap * 0.9)))
    cparams = pltpu.CompilerParams(
        dimension_semantics=("parallel", "parallel"),
        vmem_limit_bytes=vmem_limit)

    cost = pl.CostEstimate(
        flops=2 * Bpad * Npad * D,
        transcendentals=Bpad if labels is not None else 0,
        bytes_accessed=(Npad * D + nj * Bpad * D) * in_b
                       + Bpad * Npad * 4 + Npad * 4)

    out_shape = jax.ShapeDtypeStruct((Bpad, Npad), jnp.float32)

    if labels is None:
        kernel = functools.partial(_arcface_nolabel_kernel, precision=precision)
        out = pl.pallas_call(
            kernel,
            out_shape=out_shape,
            grid_spec=pltpu.PrefetchScalarGridSpec(
                num_scalar_prefetch=0,
                grid=(nj, nb),                                   # weight resident over inner nb
                in_specs=[
                    pl.BlockSpec((1, tn), lambda j, bi: (0, j)),   # inv_s tile
                    pl.BlockSpec((tb, D), lambda j, bi: (bi, 0)),  # emb tile
                    pl.BlockSpec((tn, D), lambda j, bi: (j, 0)),   # weight tile
                ],
                out_specs=pl.BlockSpec((tb, tn), lambda j, bi: (bi, j)),
            ),
            compiler_params=cparams,
            cost_estimate=cost,
        )(inv2d, emb_p, w_p)
        return out if (Bpad == B and Npad == N) else out[:B, :N]

    labels = labels.astype(jnp.int32)
    lab_p = labels if Bpad == B else jnp.pad(labels, (0, Bpad - B),
                                             constant_values=-1)
    labels2d = lab_p.reshape(Bpad, 1)

    # Flat 1-D gating table (avoids padded 2-D SMEM): has[j*nb + bi] == 1 iff
    # some label of batch tile bi falls in class tile j.
    lab_tile = (lab_p // tn).reshape(nb, tb)
    tile_has = (lab_tile[:, :, None]
                == jnp.arange(nj, dtype=jnp.int32)[None, None, :]).any(axis=1)
    tile_has_flat = tile_has.astype(jnp.int32).T.reshape(-1)      # (nj*nb,)

    kernel = functools.partial(_arcface_label_kernel,
                               s=scale, cos_m=cos_m, sin_m=sin_m,
                               th=th, mm=mm, tn=tn, precision=precision)
    out = pl.pallas_call(
        kernel,
        out_shape=out_shape,
        grid_spec=pltpu.PrefetchScalarGridSpec(
            num_scalar_prefetch=1,                                # tile_has -> SMEM
            grid=(nj, nb),
            in_specs=[
                pl.BlockSpec((tb, 1), lambda j, bi, has: (bi, 0)),  # labels
                pl.BlockSpec((1, tn), lambda j, bi, has: (0, j)),   # inv_s tile
                pl.BlockSpec((tb, D), lambda j, bi, has: (bi, 0)),  # emb tile
                pl.BlockSpec((tn, D), lambda j, bi, has: (j, 0)),   # weight tile
            ],
            out_specs=pl.BlockSpec((tb, tn), lambda j, bi, has: (bi, j)),
        ),
        compiler_params=cparams,
        cost_estimate=cost,
    )(tile_has_flat, labels2d, inv2d, emb_p, w_p)
    return out if (Bpad == B and Npad == N) else out[:B, :N]


def _reference(emb, weight, labels, scale=64.0, margin=0.3):
    """Pure-JAX reference mirroring the PyTorch module."""
    cos_m, sin_m = math.cos(margin), math.sin(margin)
    th = math.cos(math.pi - margin)
    mm = math.sin(math.pi - margin) * margin
    w_norm = weight / jnp.maximum(
        jnp.linalg.norm(weight, axis=1, keepdims=True), 1e-12)
    cos = jnp.dot(emb, w_norm.T, precision=jax.lax.Precision.HIGHEST)
    if labels is None:
        return cos * scale
    sine = jnp.sqrt(jnp.clip(1.0 - cos ** 2, 0.0, 1.0))
    phi = cos * cos_m - sine * sin_m
    phi = jnp.where(cos > th, phi, cos - mm)
    onehot = jax.nn.one_hot(labels, cos.shape[1], dtype=bool)
    return jnp.where(onehot, phi, cos) * scale


if __name__ == "__main__":
    # Deliberately ragged small shapes: B pads 12->16, N=1000 pads per tiling.
    B, D, N = 12, 256, 1000
    key = jax.random.PRNGKey(0)
    k_emb, k_w, k_lbl = jax.random.split(key, 3)

    emb = jax.random.normal(k_emb, (B, D), dtype=jnp.float32)
    bound = math.sqrt(6.0 / (D + N))                     # xavier_uniform_
    weight = jax.random.uniform(k_w, (N, D), dtype=jnp.float32,
                                minval=-bound, maxval=bound)
    labels = jax.random.randint(k_lbl, (B,), 0, N, dtype=jnp.int32)

    logits = arcface_forward(emb, weight, labels)                  # auto tiling, f32 dot
    logits_multi = arcface_forward(emb, weight, labels, tn=128, tb=8)  # nb=2, nj=8: gating path
    logits_nolabel = arcface_forward(emb, weight, None)
    logits_bf16 = arcface_forward(emb, weight, labels,
                                  matmul_dtype=jnp.bfloat16)       # halved weight DMA (v6e/v7x)
    jax.block_until_ready((logits, logits_multi, logits_nolabel, logits_bf16))

    ref = _reference(emb, weight, labels)
    ref_nl = _reference(emb, weight, None)
    assert logits.shape == (B, N)
    assert jnp.allclose(logits, ref, rtol=1e-4, atol=1e-2), "mismatch (labels, auto tile)"
    assert jnp.allclose(logits_multi, ref, rtol=1e-4, atol=1e-2), "mismatch (labels, multi-tile)"
    assert jnp.allclose(logits_nolabel, ref_nl, rtol=1e-4, atol=1e-2), "mismatch (no labels)"
    assert jnp.allclose(logits_bf16, ref, rtol=2e-2, atol=2.0), "mismatch (bf16 matmul path)"

    print("KERNEL_OK")
</pallas_src>

<mosaic_0001>
module attributes {stable_mosaic.version = 11 : i64} {
  func.func @_arcface_label_kernel(%arg0: i32, %arg1: i32, %arg2: memref<2xi32, #tpu.memory_space<smem>>, %arg3: memref<16x1xi32, #tpu.memory_space<vmem>>, %arg4: memref<1x512xf32, #tpu.memory_space<vmem>>, %arg5: memref<16x256xf32, #tpu.memory_space<vmem>>, %arg6: memref<512x256xf32, #tpu.memory_space<vmem>>, %arg7: memref<16x512xf32, #tpu.memory_space<vmem>>) attributes {dimension_semantics = [#tpu.dimension_semantics<parallel>, #tpu.dimension_semantics<parallel>], iteration_bounds = array<i64: 2, 1>, scalar_prefetch = 1 : i64, scratch_operands = 0 : i64, tpu.core_type = #tpu.core_type<tc>, window_params = [{transform_indices = @transform_0, window_bounds = array<i64: 16, 1>}, {transform_indices = @transform_1, window_bounds = array<i64: 1, 512>}, {transform_indices = @transform_2, window_bounds = array<i64: 16, 256>}, {transform_indices = @transform_3, window_bounds = array<i64: 512, 256>}, {transform_indices = @transform_4, window_bounds = array<i64: 16, 512>}]} {
    %c0 = arith.constant 0 : index
    %c0_0 = arith.constant 0 : index
    %0 = vector.load %arg5[%c0, %c0_0] : memref<16x256xf32, #tpu.memory_space<vmem>>, vector<16x256xf32>
    %c0_1 = arith.constant 0 : index
    %c0_2 = arith.constant 0 : index
    %1 = vector.load %arg6[%c0_1, %c0_2] : memref<512x256xf32, #tpu.memory_space<vmem>>, vector<512x256xf32>
    %cst = arith.constant dense<0.000000e+00> : vector<16x512xf32>
    %2 = tpu.matmul %0, %1, %cst {dimension_numbers = #tpu.dot_dimension_numbers<[1], [1], [0], [0], [0, 0, 1, 0], [], []>, precision = #tpu.contract_precision<fp32>} : vector<16x256xf32>, vector<512x256xf32>, vector<16x512xf32> -> vector<16x512xf32>
    %c0_3 = arith.constant 0 : index
    %c0_4 = arith.constant 0 : index
    %3 = vector.load %arg4[%c0_3, %c0_4] : memref<1x512xf32, #tpu.memory_space<vmem>>, vector<1x512xf32>
    %4 = vector.broadcast %3 : vector<1x512xf32> to vector<16x512xf32>
    %5 = arith.mulf %2, %4 : vector<16x512xf32>
    %c1_i32 = arith.constant 1 : i32
    %6 = arith.muli %arg0, %c1_i32 : i32
    %7 = arith.addi %6, %arg1 : i32
    %8 = arith.index_cast %7 : i32 to index
    %9 = memref.load %arg2[%8] : memref<2xi32, #tpu.memory_space<smem>>
    %c0_i32 = arith.constant 0 : i32
    %10 = arith.cmpi ne, %9, %c0_i32 : i32
    %11 = arith.extui %10 : i1 to i32
    %c0_i32_5 = arith.constant 0 : i32
    %12 = arith.cmpi ne, %11, %c0_i32_5 : i32
    scf.if %12 {
      %20 = tpu.iota {dimensions = array<i32: 1>} : vector<16x512xi32>
      %c512_i32 = arith.constant 512 : i32
      %21 = arith.muli %arg0, %c512_i32 : i32
      %22 = vector.broadcast %21 : i32 to vector<16x512xi32>
      %23 = arith.addi %20, %22 : vector<16x512xi32>
      %c0_9 = arith.constant 0 : index
      %c0_10 = arith.constant 0 : index
      %24 = vector.load %arg3[%c0_9, %c0_10] : memref<16x1xi32, #tpu.memory_space<vmem>>, vector<16x1xi32>
      %25 = vector.broadcast %24 : vector<16x1xi32> to vector<16x512xi32>
      %26 = arith.cmpi eq, %23, %25 : vector<16x512xi32>
      %cst_11 = arith.constant 0.000000e+00 : f32
      %27 = vector.broadcast %cst_11 : f32 to vector<16x512xf32>
      %28 = arith.select %26, %5, %27 : vector<16x512xi1>, vector<16x512xf32>
      %cst_12 = arith.constant dense<0.000000e+00> : vector<16xf32>
      %29 = vector.multi_reduction <add>, %28, %cst_12 [1] : vector<16x512xf32> to vector<16xf32>
      %30 = vector.shape_cast %29 : vector<16xf32> to vector<16x1xf32>
      %cst_13 = arith.constant 1.562500e-02 : f32
      %31 = vector.broadcast %cst_13 : f32 to vector<16x1xf32>
      %32 = arith.mulf %30, %31 : vector<16x1xf32>
      %33 = arith.mulf %32, %32 : vector<16x1xf32>
      %cst_14 = arith.constant 1.000000e+00 : f32
      %34 = vector.broadcast %cst_14 : f32 to vector<16x1xf32>
      %35 = arith.subf %34, %33 : vector<16x1xf32>
      %cst_15 = arith.constant 0.000000e+00 : f32
      %cst_16 = arith.constant 1.000000e+00 : f32
      %36 = vector.broadcast %cst_15 : f32 to vector<16x1xf32>
      %37 = arith.maximumf %36, %35 : vector<16x1xf32>
      %38 = vector.broadcast %cst_16 : f32 to vector<16x1xf32>
      %39 = arith.minimumf %38, %37 : vector<16x1xf32>
      %40 = math.sqrt %39 : vector<16x1xf32>
      %cst_17 = arith.constant 0.955336511 : f32
      %41 = vector.broadcast %cst_17 : f32 to vector<16x1xf32>
      %42 = arith.mulf %32, %41 : vector<16x1xf32>
      %cst_18 = arith.constant 0.295520216 : f32
      %43 = vector.broadcast %cst_18 : f32 to vector<16x1xf32>
      %44 = arith.mulf %40, %43 : vector<16x1xf32>
      %45 = arith.subf %42, %44 : vector<16x1xf32>
      %cst_19 = arith.constant -0.955336511 : f32
      %46 = vector.broadcast %cst_19 : f32 to vector<16x1xf32>
      %47 = arith.cmpf ogt, %32, %46 : vector<16x1xf32>
      %cst_20 = arith.constant 0.0886560603 : f32
      %48 = vector.broadcast %cst_20 : f32 to vector<16x1xf32>
      %49 = arith.subf %32, %48 : vector<16x1xf32>
      %50 = arith.select %47, %45, %49 : vector<16x1xi1>, vector<16x1xf32>
      %51 = arith.subf %50, %32 : vector<16x1xf32>
      %cst_21 = arith.constant 6.400000e+01 : f32
      %52 = vector.broadcast %cst_21 : f32 to vector<16x1xf32>
      %53 = arith.mulf %51, %52 : vector<16x1xf32>
      %cst_22 = arith.constant 0.000000e+00 : f32
      %54 = vector.shape_cast %53 : vector<16x1xf32> to vector<16x1xf32>
      %55 = vector.broadcast %54 : vector<16x1xf32> to vector<16x512xf32>
      %56 = vector.broadcast %cst_22 : f32 to vector<16x512xf32>
      %57 = arith.select %26, %55, %56 : vector<16x512xi1>, vector<16x512xf32>
      %58 = arith.addf %5, %57 : vector<16x512xf32>
      %c0_23 = arith.constant 0 : index
      %c0_24 = arith.constant 0 : index
      %59 = vector.load %arg7[%c0_23, %c0_24] : memref<16x512xf32, #tpu.memory_space<vmem>>, vector<16x512xf32>
      tpu.vector_store %arg7[%c0_23, %c0_24], %58 {strides = array<i32>} : memref<16x512xf32, #tpu.memory_space<vmem>>, vector<16x512xf32>,
    } else {
    }
    %c1_i32_6 = arith.constant 1 : i32
    %13 = arith.muli %arg0, %c1_i32_6 : i32
    %14 = arith.addi %13, %arg1 : i32
    %15 = arith.index_cast %14 : i32 to index
    %16 = memref.load %arg2[%15] : memref<2xi32, #tpu.memory_space<smem>>
    %c0_i32_7 = arith.constant 0 : i32
    %17 = arith.cmpi eq, %16, %c0_i32_7 : i32
    %18 = arith.extui %17 : i1 to i32
    %c0_i32_8 = arith.constant 0 : i32
    %19 = arith.cmpi ne, %18, %c0_i32_8 : i32
    scf.if %19 {
      %c0_9 = arith.constant 0 : index
      %c0_10 = arith.constant 0 : index
      %20 = vector.load %arg7[%c0_9, %c0_10] : memref<16x512xf32, #tpu.memory_space<vmem>>, vector<16x512xf32>
      tpu.vector_store %arg7[%c0_9, %c0_10], %5 {strides = array<i32>} : memref<16x512xf32, #tpu.memory_space<vmem>>, vector<16x512xf32>,
    } else {
    }
    return
  }
  func.func @transform_0(%arg0: i32, %arg1: i32, %arg2: memref<2xi32, #tpu.memory_space<smem>>) -> (i32, i32) {
    %c0_i32 = arith.constant 0 : i32
    %c0_i32_0 = arith.constant 0 : i32
    return %arg1, %c0_i32 : i32, i32
  }
  func.func @transform_1(%arg0: i32, %arg1: i32, %arg2: memref<2xi32, #tpu.memory_space<smem>>) -> (i32, i32) {
    %c0_i32 = arith.constant 0 : i32
    %c0_i32_0 = arith.constant 0 : i32
    return %c0_i32, %arg0 : i32, i32
  }
  func.func @transform_2(%arg0: i32, %arg1: i32, %arg2: memref<2xi32, #tpu.memory_space<smem>>) -> (i32, i32) {
    %c0_i32 = arith.constant 0 : i32
    %c0_i32_0 = arith.constant 0 : i32
    return %arg1, %c0_i32 : i32, i32
  }
  func.func @transform_3(%arg0: i32, %arg1: i32, %arg2: memref<2xi32, #tpu.memory_space<smem>>) -> (i32, i32) {
    %c0_i32 = arith.constant 0 : i32
    %c0_i32_0 = arith.constant 0 : i32
    return %arg0, %c0_i32 : i32, i32
  }
  func.func @transform_4(%arg0: i32, %arg1: i32, %arg2: memref<2xi32, #tpu.memory_space<smem>>) -> (i32, i32) {
    %c0_i32 = arith.constant 0 : i32
    return %arg1, %arg0 : i32, i32
  }
}

</mosaic_0001>

<bundles_post_ra>
// kernel: tpu_custom_call.1
= control target key start
LH: loop header
LB: loop body
LE: loop exit
PB: predicated region body
PF: predicated region fallthrough
CT: control target
= control target key end

     0   :  { %s6900_s0 = inlined_call_operand.vmem [shape: s32[2], index: 0, kind: input, shape index: {}]   ;;  %s6901_s1 = inlined_call_operand.vmem [shape: s32[16,1], index: 1, kind: input, shape index: {}]   ;;  %s6902_s2 = inlined_call_operand.vmem [shape: f32[1,1024], index: 2, kind: input, shape index: {}]   ;;  %s6903_s3 = inlined_call_operand.hbm [shape: f32[16,256], index: 3, kind: input, shape index: {}]   ;;  %s6904_s4 = inlined_call_operand.hbm [shape: f32[1024,256], index: 4, kind: input, shape index: {}]   ;;  %s6905_s5 = inlined_call_operand.hbm [shape: f32[16,1024], index: 5, kind: output, shape index: {}]  }
   0x1   :  { %s10_s20 = sshll.u32 %s6900_s0, 4  ;;  %s11_s20 = int_to_ptr.vmem [resolvable:$true] %s10_s20 }
   0x2   :  { %s4349_s21 = scalar_lea.vmem %s11_s20, 16  ;;  %p4354_p1 = scmp.lt.s32.totalorder %s11_s20, %s11_s20 }
   0x3   :  { %p4350_p0 = scmp.ne.s32.totalorder %s11_s20, %s4349_s21  ;;  %p4355_p2 = scmp.lt.s32.totalorder %s4349_s21, %s4349_s21 }
   0x5   :  { %p4356_p3 = por %p4355_p2, %p4354_p1 }
   0x7   :  { %p4357_p4 = pnand %p4356_p3, %p4350_p0 }
   0x9   :  { %4360 = shalt.err (!%p4357_p4)  }
   0xa   :  { %s4509_s22 = smov [#allocation3]  }
   0xb   :  { %13 = dma.vmem_to_smem %s11_s20, 16, %s4509_s22, [#allocation2] }
   0xc   :  { %4471 = dma.done.wait [#allocation2], 16 }
   0xd   :  { %4472 = vsyncadd [#allocation2], 4294967280 }
   0xe   :  { %15 = sfence }
   0xf   :  { %16 = vsyncpa [#allocation5], 0 }
  0x10   :  { %17 = vsyncpa [#allocation8], 0 }
  0x11   :  { %19 = vsyncpa [#allocation8 + $0x1], 0 }
  0x12   :  { %20 = vsyncpa [#allocation6], 0 }
  0x13   :  { %22 = vsyncpa [#allocation6 + $0x1], 0  ;;  %s4552_s23 = smov 0   ;;  %s4554_s0 = smov 0  }
  0x14   :  { %s4556_s24 = smov 0   ;;  %s4558_s25 = smov 0  }
  0x15   :  { %s4560_s26 = smov 0   ;;  %s4562_s27 = smov 0  }
  0x16 LB: > { %s3428_s28 = sadd.s32 4294967295, %s4507_s27   ;;  %s3429_s29 = sadd.s32 4294967294, %s4507_s27   ;;  %s4507_s27 = sphi %s4562_s27, %s28_s27   ;;  %s4503_s26 = sphi %s4560_s26, %s8284_s26   ;;  %s4499_s25 = sphi %s4558_s25, %s8283_s25   ;;  %s4495_s24 = sphi %s4556_s24, %s8282_s24   ;;  %s4491_s0 = sphi %s4554_s0, %s8281_s0   ;;  %s4487_s23 = sphi %s4552_s23, %s8280_s23  }
  0x17   : > { %p138_p5 = scmp.ne.s32.totalorder %s4491_s0, %s4487_s23  ;;  %p4586_p6 = scmp.eq.s32.totalorder %s3428_s28, 0 }
  0x18   : > { %p4590_p7 = scmp.eq.s32.totalorder %s3428_s28, 1  ;;  %p170_p8 = scmp.eq.s32.totalorder %s3429_s29, 1 }
  0x19   : > { %s7443_s30 = scalar_select %p4586_p6, 1, 0 }
  0x1a   : > { %s7444_s6 = scalar_select %p4590_p7, 1, 0 }
  0x1b   : > { %p4596_p9 = por %p4586_p6, %p138_p5  ;;  %p3430_p10 = scmp.ge.s32.totalorder %s4507_s27, 1 }
  0x1c   : > { %p4601_p11 = por %p170_p8, %p138_p5  ;;  %p177_p12 = scmp.lt.s32.totalorder %s4507_s27, 3 }
  0x1d   : > { %s7445_s7 = scalar_select %p4596_p9, 1, 0 }
  0x1e   : > { %s7446_s8 = scalar_select %p4601_p11, 1, 0 }
  0x1f   : > { %p4606_p13 = pnand %p3430_p10, %p177_p12  ;;  %s4510_s10 = smov [#allocation4]  }
  0x20   : > { %s202_s11 = sshll.u32 %s4510_s10, 4  ;;  %s40_s13 = sadd.s32 1, %s4503_s26  ;;  %s203_s11 = int_to_ptr.vmem [resolvable:$true] %s202_s11 }
  0x21   : > { %s7447_s9 = scalar_select %p4606_p13, 1, 0 }
  0x22   : > { %p4272_p0 = pneg %p4606_p13  ;;  %s4361_s16 = scalar_lea.hbm %s6903_s3, 512 }
  0x23   : > { %p4362_p3 = scmp.ne.s32.totalorder %s6903_s3, %s4361_s16  ;;  %p4368_p10 = scmp.lt.u32.totalorder %s4361_s16, %s6903_s3 }
  0x24   : > { %p4615_p2 = pnand %p4272_p0, %p4586_p6 }
  0x26   : > { %p4363_p4 = pneg %p4615_p2 }
  0x28   : > { %p4364_p5 = pnand %p4363_p4, %p4362_p3 }
  0x2a   : > { %p4365_p8 = pneg %p4364_p5 }
  0x2c   : > { %p4370_p12 = pnand %p4368_p10, %p4365_p8 }
  0x2e   : > { %4373 = shalt.err (!%p4370_p12)
}
  0x2f   : > { %s4374_s21 = scalar_lea.vmem %s203_s11, 512  ;;  %p4382_p9 = scmp.lt.s32.totalorder %s203_s11, %s203_s11 }
  0x30   : > { %p4375_p0 = scmp.ne.s32.totalorder %s203_s11, %s4374_s21  ;;  %p4383_p6 = scmp.lt.s32.totalorder %s4374_s21, %s4374_s21 }
  0x32   : > { %p4377_p1 = pnand %p4375_p0, %p4363_p4  ;;  %p4384_p13 = por %p4383_p6, %p4382_p9 }
  0x34   : > { %p4378_p11 = pneg %p4377_p1 }
  0x36   : > { %p4385_p7 = pnand %p4384_p13, %p4378_p11 }
  0x38   : > { %4388 = shalt.err (!%p4385_p7)
}
  0x39   : > { %s4511_s22 = smov 256   ;;  %s4512_s28 = smov 16  }
  0x3a   : > { %4275 = dma.hbm_to_vmem [thread:$0]  (!%p4615_p2), %s6903_s3, 512, %s203_s11, [#allocation5], %s4511_s22, %s4511_s22, %s4512_s28  }
  0x3b   : > { %p42_p6 = scmp.ge.s32.totalorder %s40_s13, 2  ;;  %s125_s14 = sadd.s32 1, %s4495_s24 }
  0x3c   : > { %p132_p7 = scmp.ne.s32.totalorder %s4495_s24, %s4491_s0  ;;  %p133_p9 = scmp.eq.s32.totalorder %s4507_s27, 0 }
  0x3d   : > { %s8286_s13 = smov (%p42_p6, %s40_s13), 0  ;;  %p7450_p13 = scmp.ne.s32.totalorder %s7444_s6, 0 }
  0x3e   : > { %p4645_p11 = por %p133_p9, %p132_p7  ;;  %s122_s16 = ssub.s32 %s4503_s26, %s8286_s13 }
  0x3f   : > { %p4651_p1 = por %p7450_p13, %p132_p7  ;;  %p4285_p3 = scmp.lt.s32.totalorder %s4507_s27, 2 }
  0x40   : > { %p123_p2 = scmp.eq.s32.totalorder %s122_s16, 0  ;;  %s224_s11 = sand.u32 1, %s4495_s24  }
  0x41   : > { %s3434_s17 = sshll.u32 %s224_s11, 10  ;;  %s3454_s19 = sshll.u32 %s4503_s26, 14 }
  0x42   : > { %s4660_s18 = scalar_select %p123_p2, %s4495_s24, %s125_s14  }
  0x43   : > { %s4666_s29 = scalar_lea.hbm %s6904_s4, %s3454_s19  ;;  %s228_s6 = scalar_lea.vmem [#allocation7], %s3434_s17 }
  0x44   : > { %s236_s10 = sshll.u32 %s228_s6, 4  ;;  %p4672_p4 = pnand %p4285_p3, %p4645_p11  ;;  %s4668_s10 = int_to_ptr.vmem [resolvable:$true] %s236_s10 }
  0x45   : > { %s4676_s14 = scalar_lea.sflag [#allocation8], %s224_s11  ;;  %s4389_s20 = scalar_lea.hbm %s4666_s29, 16384 }
  0x46   : > { %p4390_p5 = scmp.ne.s32.totalorder %s4666_s29, %s4389_s20  ;;  %p4391_p8 = pneg %p4672_p4 }
  0x47   : > { %s4394_s15 = scalar_lea.hbm %s6904_s4, 32768  ;;  %p4395_p0 = scmp.lt.u32.totalorder %s4666_s29, %s6904_s4 }
  0x48   : > { %p4392_p10 = pnand %p4391_p8, %p4390_p5  ;;  %p4396_p6 = scmp.lt.u32.totalorder %s4394_s15, %s4389_s20 }
  0x49   : > { %p4398_p9 = scmp.lt.u32.totalorder %s4389_s20, %s4666_s29 }
  0x4a   : > { %p4393_p12 = pneg %p4392_p10  ;;  %p4397_p7 = por %p4396_p6, %p4395_p0 }
  0x4c   : > { %p4399_p11 = por %p4398_p9, %p4397_p7 }
  0x4e   : > { %p4400_p13 = pnand %p4399_p11, %p4393_p12 }
  0x50   : > { %4403 = shalt.err (!%p4400_p13)
}
  0x51   : > { %s4404_s11 = scalar_lea.vmem %s4668_s10, 16384  ;;  %s4513_s17 = smov [#allocation7]  }
  0x52   : > { %p4405_p3 = scmp.ne.s32.totalorder %s4668_s10, %s4404_s11  ;;  %s4409_s19 = sshll.u32 %s4513_s17, 4  ;;  %s4410_s19 = int_to_ptr.vmem [resolvable:$false] %s4409_s19 }
  0x53   : > { %s4411_s21 = scalar_lea.vmem %s4410_s19, 32768  ;;  %p4412_p10 = scmp.lt.s32.totalorder %s4668_s10, %s4410_s19 }
  0x54   : > { %p4407_p2 = pnand %p4405_p3, %p4391_p8  ;;  %p4413_p0 = scmp.lt.s32.totalorder %s4411_s21, %s4404_s11 }
  0x56   : > { %p4408_p5 = pneg %p4407_p2  ;;  %p4414_p6 = por %p4413_p0, %p4412_p10 }
  0x58   : > { %p4415_p7 = pnand %p4414_p6, %p4408_p5 }
  0x5a   : > { %4418 = shalt.err (!%p4415_p7)
}
  0x5b   : > { %4279 = dma.hbm_to_vmem [thread:$0]  (!%p4672_p4), %s4666_s29, 16384, %s4668_s10, %s4676_s14, %s4511_s22, %s4511_s22, %s4512_s28  }
  0x5c   : > { %p7453_p8 = scmp.ne.s32.totalorder %s7447_s9, 0 }
  0x5e   : > { %248 = sbr.rel (%p7453_p8) target bundleno = 1343 (0x53f), region = 36 }
  0x65   : > { %p7454_p12 = scmp.ne.s32.totalorder %s7443_s30, 0 }
  0x67   : > { %4474 = dma.done.wait (%p7454_p12), [#allocation5], 512  }
  0x68   : > { %4476 = vsyncadd (%p7454_p12), [#allocation5], 4294966784  ;;  %s4714_s20 = sand.u32 1, %s4491_s0   ;;  %p7455_p4 = scmp.ne.s32.totalorder %s7445_s7, 0 }
  0x69   : > { %s3440_s16 = sshll.u32 %s4714_s20, 10  ;;  %s255_s15 = scalar_lea.sflag [#allocation8], %s4714_s20 }
  0x6a   : > { %s4718_s6 = scalar_lea.vmem [#allocation7], %s3440_s16 }
  0x6b   : > { %4478 = dma.done.wait (%p7455_p4), %s255_s15, 16384  }
  0x6c   : > { %4480 = vsyncadd (%p7455_p4), %s255_s15, 4294950912  ;;  %s3441_s30 = sshll.u32 %s4714_s20, 6  ;;  %s4726_s9 = sld [smem:[#allocation3 + %s4499_s25]]  ;;  %v312_v0 = vld [vmem:[%s4718_s6 + $0x8] sm:$0xff]  ;;  %v314_v1 = vld [vmem:[%s4718_s6 + $0x18] sm:$0xff] }
  0x6d   : > { %v376_v2 = vld [vmem:[%s4718_s6 + $0x208] sm:$0xff]  ;;  %v439_v3 = vand.u32 4294901760, %v312_v0  ;;  %v443_v4 = vand.u32 4294901760, %v314_v1  ;;  %v378_v5 = vld [vmem:[%s4718_s6 + $0x218] sm:$0xff]  ;;  %v311_v7 = vld [vmem:[%s4718_s6] sm:$0xff]  ;;  %s3442_s7 = sshll.u32 %s4499_s25, 2 }
  0x6e   : > { %v1785_v6 = vand.u32 4294901760, %v376_v2  ;;  %v313_v8 = vld [vmem:[%s4718_s6 + $0x10] sm:$0xff]  ;;  %v1789_v9 = vand.u32 4294901760, %v378_v5  ;;  %v441_v10 = vand.u32 4294901760, %v311_v7  ;;  %v375_v12 = vld [vmem:[%s4718_s6 + $0x200] sm:$0xff]  ;;  %v316_v14 = vld [vmem:[%s4718_s6 + $0x28] sm:$0xff] }
  0x6f   : > { %v445_v11 = vand.u32 4294901760, %v313_v8  ;;  %v377_v13 = vld [vmem:[%s4718_s6 + $0x210] sm:$0xff]  ;;  %v4737_v15 = vpack.c.bf16 %v443_v4, %v439_v3  ;;  %v4739_v16 = vsub.f32 %v312_v0, %v439_v3  ;;  %v4741_v17 = vsub.f32 %v314_v1, %v443_v4  ;;  %v318_v19 = vld [vmem:[%s4718_s6 + $0x38] sm:$0xff]  ;;  %v380_v20 = vld [vmem:[%s4718_s6 + $0x228] sm:$0xff]  ;;  %p299_p9 = scmp.lt.s32.totalorder %s3442_s7, 7  ;;  %s6717_s10 = scalar_lea.vmem [#allocation9], %s3441_s30 }
  0x70   : > { %v4743_v18 = vsub.f32 %v376_v2, %v1785_v6  ;;  %v382_v21 = vld [vmem:[%s4718_s6 + $0x238] sm:$0xff]  ;;  %v4748_v22 = vpack.c.bf16 %v1789_v9, %v1785_v6  ;;  %v4750_v23 = vsub.f32 %v378_v5, %v1789_v9  ;;  %v4754_v25 = vsub.f32 %v311_v7, %v441_v10  ;;  %v315_v26 = vld [vmem:[%s4718_s6 + $0x20] sm:$0xff]  ;;  %v317_v31 = vld [vmem:[%s4718_s6 + $0x30] sm:$0xff] }
  0x71   : > { %7456 = vst [vmem:[#allocation14_spill] sm:$0xff] %v4737_v15  ;;  %7457 = vst [vmem:[#allocation15_spill] sm:$0xff] %v4739_v16  ;;  %v4752_v24 = vpack.c.bf16 %v445_v11, %v441_v10  ;;  %3457 = vmatprep.subr.bf16.mxu0 %v4737_v15  ;;  %v4758_v27 = vsub.f32 %v313_v8, %v445_v11  ;;  %v1787_v28 = vand.u32 4294901760, %v375_v12  ;;  %v1791_v29 = vand.u32 4294901760, %v377_v13  ;;  %v379_v36 = vld [vmem:[%s4718_s6 + $0x220] sm:$0xff]  ;;  %v381_v37 = vld [vmem:[%s4718_s6 + $0x230] sm:$0xff] }
  0x72   : > { %7458 = vst [vmem:[#allocation16_spill] sm:$0xff] %v4741_v17  ;;  %7459 = vst [vmem:[#allocation17_spill] sm:$0xff] %v4743_v18  ;;  %v447_v30 = vand.u32 4294901760, %v316_v14  ;;  %3841 = vmatprep.subr.bf16.mxu1 %v4748_v22  ;;  %v451_v32 = vand.u32 4294901760, %v318_v19  ;;  %v1793_v33 = vand.u32 4294901760, %v380_v20  ;;  %v1797_v34 = vand.u32 4294901760, %v382_v21 }
  0x73   : > { %7460 = vst [vmem:[#allocation18_spill] sm:$0xff] %v4748_v22  ;;  %7461 = vst [vmem:[#allocation19_spill] sm:$0xff] %v4750_v23  ;;  %3459 = vmatpush1.bf16.xpose.msra.mxu0 %v4752_v24  ;;  %v449_v35 = vand.u32 4294901760, %v315_v26  ;;  %v4765_v38 = vpack.c.bf16 %v1791_v29, %v1787_v28  ;;  %v4767_v39 = vsub.f32 %v375_v12, %v1787_v28  ;;  %v320_v42 = vld [vmem:[%s4718_s6 + $0x48] sm:$0xff]  ;;  %v322_v43 = vld [vmem:[%s4718_s6 + $0x58] sm:$0xff]  ;;  %v453_v51 = vand.u32 4294901760, %v317_v31 }
  0x74   : > { %7462 = vst [vmem:[#allocation20_spill] sm:$0xff] %v4752_v24  ;;  %7463 = vst [vmem:[#allocation21_spill] sm:$0xff] %v4754_v25  ;;  %v4769_v40 = vsub.f32 %v377_v13, %v1791_v29  ;;  %v4771_v41 = vsub.f32 %v316_v14, %v447_v30  ;;  %v384_v44 = vld [vmem:[%s4718_s6 + $0x248] sm:$0xff]  ;;  %v4776_v45 = vpack.c.bf16 %v451_v32, %v447_v30  ;;  %v386_v49 = vld [vmem:[%s4718_s6 + $0x258] sm:$0xff]  ;;  %v1795_v53 = vand.u32 4294901760, %v379_v36  ;;  %s8288_s7 = smov (!%p299_p9, %s3442_s7), 7 }
  0x75   : > { %7464 = vst [vmem:[#allocation22_spill] sm:$0xff] %v4758_v27  ;;  %7465 = vst [vmem:[#allocation23_spill] sm:$0xff] %v4765_v38  ;;  %v4778_v46 = vsub.f32 %v318_v19, %v451_v32  ;;  %v4780_v47 = vpack.c.bf16 %v1797_v34, %v1793_v33  ;;  %v4782_v48 = vsub.f32 %v380_v20, %v1793_v33  ;;  %3843 = vmatpush1.bf16.xpose.msra.mxu1 %v4765_v38  ;;  %v319_v58 = vld [vmem:[%s4718_s6 + $0x40] sm:$0xff]  ;;  %v321_v63 = vld [vmem:[%s4718_s6 + $0x50] sm:$0xff]  ;;  %s301_s29 = scalar_lea.vmem %s6902_s2, %s8288_s7  ;;  %p3443_p11 = scmp.eq.s32.totalorder %s4726_s9, 0 }
  0x76   : > { %7466 = vst [vmem:[#allocation24_spill] sm:$0xff] %v4767_v39  ;;  %7467 = vst [vmem:[#allocation25_spill] sm:$0xff] %v4769_v40  ;;  %v4786_v50 = vsub.f32 %v382_v21, %v1797_v34  ;;  %v4788_v52 = vsub.f32 %v315_v26, %v449_v35  ;;  %3461 = vmatprep.subr.bf16.mxu0 %v4776_v45  ;;  %v1799_v54 = vand.u32 4294901760, %v381_v37  ;;  %v455_v55 = vand.u32 4294901760, %v320_v42  ;;  %v383_v0 = vld [vmem:[%s4718_s6 + $0x240] sm:$0xff]  ;;  %v385_v1 = vld [vmem:[%s4718_s6 + $0x250] sm:$0xff] }
  0x77   : > { %7468 = vst [vmem:[#allocation26_spill] sm:$0xff] %v4771_v41  ;;  %7469 = vst [vmem:[#allocation27_spill] sm:$0xff] %v4776_v45  ;;  %3845 = vmatprep.subr.bf16.mxu1 %v4780_v47  ;;  %v459_v56 = vand.u32 4294901760, %v322_v43  ;;  %v1801_v57 = vand.u32 4294901760, %v384_v44  ;;  %v4793_v59 = vpack.c.bf16 %v453_v51, %v449_v35  ;;  %v4795_v60 = vsub.f32 %v317_v31, %v453_v51  ;;  %v324_v6 = vld [vmem:[%s4718_s6 + $0x68] sm:$0xff]  ;;  %v326_v7 = vld [vmem:[%s4718_s6 + $0x78] sm:$0xff] }
  0x78   : > { %7470 = vst [vmem:[#allocation28_spill] sm:$0xff] %v4778_v46  ;;  %7471 = vst [vmem:[#allocation29_spill] sm:$0xff] %v4780_v47  ;;  %v4797_v61 = vsub.f32 %v379_v36, %v1795_v53  ;;  %v1805_v62 = vand.u32 4294901760, %v386_v49  ;;  %v4802_v2 = vpack.c.bf16 %v1799_v54, %v1795_v53  ;;  %v4804_v3 = vsub.f32 %v381_v37, %v1799_v54  ;;  %v388_v8 = vld [vmem:[%s4718_s6 + $0x268] sm:$0xff]  ;;  %v390_v13 = vld [vmem:[%s4718_s6 + $0x278] sm:$0xff]  ;;  %s3444_s21 = sshll.u32 (!%p3443_p11), %s4499_s25, 9 }
  0x79   : > { %7472 = vst [vmem:[#allocation30_spill] sm:$0xff] %v4782_v48  ;;  %7473 = vst [vmem:[#allocation31_spill] sm:$0xff] %v4786_v50  ;;  %v4806_v4 = vpack.c.bf16 %v459_v56, %v455_v55  ;;  %v4808_v5 = vsub.f32 %v320_v42, %v455_v55  ;;  %v4813_v9 = vsub.f32 %v322_v43, %v459_v56  ;;  %v457_v14 = vand.u32 4294901760, %v319_v58  ;;  %v323_v30 = vld [vmem:[%s4718_s6 + $0x60] sm:$0xff]  ;;  %v325_v35 = vld [vmem:[%s4718_s6 + $0x70] sm:$0xff] }
  0x7a   : > { %7474 = vst [vmem:[#allocation32_spill] sm:$0xff] %v4788_v52  ;;  %7475 = vst [vmem:[#allocation33_spill] sm:$0xff] %v4793_v59  ;;  %v4815_v10 = vpack.c.bf16 %v1805_v62, %v1801_v57  ;;  %v4817_v11 = vsub.f32 %v384_v44, %v1801_v57  ;;  %v4819_v12 = vsub.f32 %v386_v49, %v1805_v62  ;;  %v461_v19 = vand.u32 4294901760, %v321_v63  ;;  %v387_v36 = vld [vmem:[%s4718_s6 + $0x260] sm:$0xff]  ;;  %v389_v37 = vld [vmem:[%s4718_s6 + $0x270] sm:$0xff] }
  0x7b   : > { %7476 = vst [vmem:[#allocation34_spill] sm:$0xff] %v4795_v60  ;;  %7477 = vst [vmem:[#allocation35_spill] sm:$0xff] %v4797_v61  ;;  %3463 = vmatpush1.bf16.xpose.msra.mxu0 %v4793_v59  ;;  %v1803_v20 = vand.u32 4294901760, %v383_v0  ;;  %v1807_v21 = vand.u32 4294901760, %v385_v1  ;;  %v463_v26 = vand.u32 4294901760, %v324_v6  ;;  %v467_v28 = vand.u32 4294901760, %v326_v7 }
  0x7c   : > { %7478 = vst [vmem:[#allocation36_spill] sm:$0xff] %v4802_v2  ;;  %7479 = vst [vmem:[#allocation37_spill] sm:$0xff] %v4804_v3  ;;  %3465 = vmatprep.subr.bf16.mxu0 %v4806_v4  ;;  %v1809_v29 = vand.u32 4294901760, %v388_v8  ;;  %v4825_v31 = vpack.c.bf16 %v461_v19, %v457_v14  ;;  %v4827_v32 = vsub.f32 %v319_v58, %v457_v14  ;;  %v1813_v34 = vand.u32 4294901760, %v390_v13  ;;  %v328_v51 = vld [vmem:[%s4718_s6 + $0x88] sm:$0xff]  ;;  %v330_v53 = vld [vmem:[%s4718_s6 + $0x98] sm:$0xff] }
  0x7d   : > { %7480 = vst [vmem:[#allocation38_spill] sm:$0xff] %v4806_v4  ;;  %7481 = vst [vmem:[#allocation39_spill] sm:$0xff] %v4808_v5  ;;  %v4829_v33 = vsub.f32 %v321_v63, %v461_v19  ;;  %3847 = vmatpush1.bf16.xpose.msra.mxu1 %v4802_v2  ;;  %v4835_v42 = vpack.c.bf16 %v1807_v21, %v1803_v20  ;;  %v4837_v43 = vsub.f32 %v383_v0, %v1803_v20  ;;  %v392_v54 = vld [vmem:[%s4718_s6 + $0x288] sm:$0xff]  ;;  %v394_v62 = vld [vmem:[%s4718_s6 + $0x298] sm:$0xff] }
  0x7e   : > { %7482 = vst [vmem:[#allocation40_spill] sm:$0xff] %v4813_v9  ;;  %7483 = vst [vmem:[#allocation41_spill] sm:$0xff] %v4815_v10  ;;  %v4839_v44 = vsub.f32 %v385_v1, %v1807_v21  ;;  %v4841_v49 = vsub.f32 %v324_v6, %v463_v26  ;;  %3849 = vmatprep.subr.bf16.mxu1 %v4815_v10  ;;  %v4847_v55 = vpack.c.bf16 %v467_v28, %v463_v26  ;;  %v329_v10 = vld [vmem:[%s4718_s6 + $0x90] sm:$0xff]  ;;  %v391_v2 = vld [vmem:[%s4718_s6 + $0x280] sm:$0xff] }
  0x7f   : > { %7484 = vst [vmem:[#allocation42_spill] sm:$0xff] %v4817_v11  ;;  %7485 = vst [vmem:[#allocation43_spill] sm:$0xff] %v4819_v12  ;;  %v4849_v56 = vsub.f32 %v326_v7, %v467_v28  ;;  %v4851_v57 = vsub.f32 %v388_v8, %v1809_v29  ;;  %v4853_v58 = vsub.f32 %v390_v13, %v1813_v34  ;;  %v465_v63 = vand.u32 4294901760, %v323_v30  ;;  %v327_v8 = vld [vmem:[%s4718_s6 + $0x80] sm:$0xff]  ;;  %v393_v4 = vld [vmem:[%s4718_s6 + $0x290] sm:$0xff] }
  0x80   : > { %7486 = vst [vmem:[#allocation44_spill] sm:$0xff] %v4825_v31  ;;  %7487 = vst [vmem:[#allocation45_spill] sm:$0xff] %v4827_v32  ;;  %v469_v0 = vand.u32 4294901760, %v325_v35  ;;  %v1811_v1 = vand.u32 4294901760, %v387_v36  ;;  %v1815_v6 = vand.u32 4294901760, %v389_v37  ;;  %v4856_v14 = vpack.c.bf16 %v1813_v34, %v1809_v29  ;;  %v332_v38 = vld [vmem:[%s4718_s6 + $0xa8] sm:$0xff] }
  0x81   : > { %7488 = vst [vmem:[#allocation46_spill] sm:$0xff] %v4829_v33  ;;  %7489 = vst [vmem:[#allocation47_spill] sm:$0xff] %v4835_v42  ;;  %v471_v19 = vand.u32 4294901760, %v328_v51  ;;  %v475_v20 = vand.u32 4294901760, %v330_v53  ;;  %v1817_v7 = vand.u32 4294901760, %v392_v54  ;;  %v4861_v13 = vsub.f32 %v323_v30, %v465_v63  ;;  %v334_v30 = vld [vmem:[%s4718_s6 + $0xb8] sm:$0xff] }
  0x82   : > { %7490 = vst [vmem:[#allocation48_spill] sm:$0xff] %v4837_v43  ;;  %7491 = vst [vmem:[#allocation49_spill] sm:$0xff] %v4839_v44  ;;  %v4859_v21 = vpack.c.bf16 %v469_v0, %v465_v63  ;;  %v4863_v26 = vsub.f32 %v325_v35, %v469_v0  ;;  %v1821_v28 = vand.u32 4294901760, %v394_v62  ;;  %v4869_v29 = vpack.c.bf16 %v1815_v6, %v1811_v1  ;;  %v396_v63 = vld [vmem:[%s4718_s6 + $0x2a8] sm:$0xff]  ;;  %v358_v44 = vld [vmem:[%s4718_s6 + $0x178] sm:$0xff] }
  0x83   : > { %7492 = vst [vmem:[#allocation50_spill] sm:$0xff] %v4841_v49  ;;  %7493 = vst [vmem:[#allocation51_spill] sm:$0xff] %v4847_v55  ;;  %3467 = vmatpush1.bf16.xpose.msra.mxu0 %v4825_v31  ;;  %v4871_v34 = vsub.f32 %v387_v36, %v1811_v1  ;;  %v4873_v59 = vsub.f32 %v389_v37, %v1815_v6  ;;  %v4875_v47 = vsub.f32 %v328_v51, %v471_v19  ;;  %v398_v36 = vld [vmem:[%s4718_s6 + $0x2b8] sm:$0xff]  ;;  %v356_v49 = vld [vmem:[%s4718_s6 + $0x168] sm:$0xff] }
  0x84   : > { %7494 = vst [vmem:[#allocation52_spill] sm:$0xff] %v4849_v56  ;;  %7495 = vst [vmem:[#allocation53_spill] sm:$0xff] %v4851_v57  ;;  %3469 = vmatprep.subr.bf16.mxu0 %v4847_v55  ;;  %v4881_v35 = vpack.c.bf16 %v475_v20, %v471_v19  ;;  %v4883_v0 = vsub.f32 %v330_v53, %v475_v20  ;;  %v4885_v45 = vsub.f32 %v392_v54, %v1817_v7  ;;  %v408_v57 = vld [vmem:[%s4718_s6 + $0x308] sm:$0xff]  ;;  %v370_v12 = vld [vmem:[%s4718_s6 + $0x1d8] sm:$0xff] }
  0x85   : > { %7496 = vst [vmem:[#allocation54_spill] sm:$0xff] %v4853_v58  ;;  %7497 = vst [vmem:[#allocation55_spill] sm:$0xff] %v4856_v14  ;;  %v4887_v31 = vsub.f32 %v394_v62, %v1821_v28  ;;  %v473_v37 = vand.u32 4294901760, %v327_v8  ;;  %v477_v51 = vand.u32 4294901760, %v329_v10  ;;  %v1819_v1 = vand.u32 4294901760, %v391_v2  ;;  %3851 = vmatpush1.bf16.xpose.msra.mxu1 %v4835_v42  ;;  %v331_v62 = vld [vmem:[%s4718_s6 + $0xa0] sm:$0xff] }
  0x86   : > { %7498 = vst [vmem:[#allocation56_spill] sm:$0xff] %v4859_v21  ;;  %7499 = vst [vmem:[#allocation57_spill] sm:$0xff] %v4861_v13  ;;  %v1823_v6 = vand.u32 4294901760, %v393_v4  ;;  %v4891_v24 = vpack.c.bf16 %v1821_v28, %v1817_v7  ;;  %v479_v19 = vand.u32 4294901760, %v332_v38  ;;  %v483_v53 = vand.u32 4294901760, %v334_v30  ;;  %3853 = vmatprep.subr.bf16.mxu1 %v4856_v14  ;;  %v333_v42 = vld [vmem:[%s4718_s6 + $0xb0] sm:$0xff] }
  0x87   : > { %7500 = vst [vmem:[#allocation58_spill] sm:$0xff] %v4863_v26  ;;  %7501 = vst [vmem:[#allocation59_spill] sm:$0xff] %v4869_v29  ;;  %v1825_v54 = vand.u32 4294901760, %v396_v63  ;;  %v4895_v20 = vpack.c.bf16 %v477_v51, %v473_v37  ;;  %v4897_v55 = vsub.f32 %v327_v8, %v473_v37  ;;  %v4899_v22 = vsub.f32 %v329_v10, %v477_v51  ;;  %v395_v7 = vld [vmem:[%s4718_s6 + $0x2a0] sm:$0xff]  ;;  %v397_v28 = vld [vmem:[%s4718_s6 + $0x2b0] sm:$0xff] }
  0x88   : > { %7502 = vst [vmem:[#allocation60_spill] sm:$0xff] %v4871_v34  ;;  %7503 = vst [vmem:[#allocation61_spill] sm:$0xff] %v4873_v59  ;;  %v1829_v15 = vand.u32 4294901760, %v398_v36  ;;  %v336_v14 = vld [vmem:[%s4718_s6 + $0xc8] sm:$0xff]  ;;  %v338_v59 = vld [vmem:[%s4718_s6 + $0xd8] sm:$0xff]  ;;  %v4915_v37 = vpack.c.bf16 %v483_v53, %v479_v19  ;;  %v4917_v10 = vsub.f32 %v334_v30, %v483_v53 }
  0x89   : > { %7504 = vst [vmem:[#allocation62_spill] sm:$0xff] %v4875_v47  ;;  %7505 = vst [vmem:[#allocation63_spill] sm:$0xff] %v4881_v35  ;;  %v4910_v47 = vsub.f32 %v332_v38, %v479_v19  ;;  %v400_v8 = vld [vmem:[%s4718_s6 + $0x2c8] sm:$0xff]  ;;  %v4919_v51 = vsub.f32 %v396_v63, %v1825_v54  ;;  %v1827_v38 = vand.u32 4294901760, %v395_v7  ;;  %v487_v19 = vand.u32 4294901760, %v336_v14  ;;  %v342_v26 = vld [vmem:[%s4718_s6 + $0xf8] sm:$0xff] }
  0x8a   : > { %7506 = vst [vmem:[#allocation64_spill] sm:$0xff] %v4883_v0  ;;  %7507 = vst [vmem:[#allocation65_spill] sm:$0xff] %v4885_v45  ;;  %v4906_v45 = vsub.f32 %v391_v2, %v1819_v1  ;;  %v4908_v0 = vsub.f32 %v393_v4, %v1823_v6  ;;  %v481_v2 = vand.u32 4294901760, %v331_v62  ;;  %v485_v4 = vand.u32 4294901760, %v333_v42  ;;  %v404_v13 = vld [vmem:[%s4718_s6 + $0x2e8] sm:$0xff]  ;;  %v346_v58 = vld [vmem:[%s4718_s6 + $0x118] sm:$0xff] }
  0x8b   : > { %7508 = vst [vmem:[#allocation66_spill] sm:$0xff] %v4887_v31  ;;  %7509 = vst [vmem:[#allocation67_spill] sm:$0xff] %v4891_v24  ;;  %v4904_v31 = vpack.c.bf16 %v1823_v6, %v1819_v1  ;;  %v1831_v1 = vand.u32 4294901760, %v397_v28  ;;  %3471 = vmatpush1.bf16.xpose.msra.mxu0 %v4859_v21  ;;  %v4925_v6 = vpack.c.bf16 %v1829_v15, %v1825_v54  ;;  %v491_v30 = vand.u32 4294901760, %v338_v59  ;;  %v337_v21 = vld [vmem:[%s4718_s6 + $0xd0] sm:$0xff]  ;;  %v352_v56 = vld [vmem:[%s4718_s6 + $0x148] sm:$0xff] }
  0x8c   : > { %7510 = vst [vmem:[#allocation68_spill] sm:$0xff] %v4895_v20  ;;  %7511 = vst [vmem:[#allocation69_spill] sm:$0xff] %v4897_v55  ;;  %v402_v55 = vld [vmem:[%s4718_s6 + $0x2d8] sm:$0xff]  ;;  %v1833_v63 = vand.u32 4294901760, %v400_v8  ;;  %3473 = vmatprep.subr.bf16.mxu0 %v4881_v35  ;;  %v4929_v53 = vpack.c.bf16 %v485_v4, %v481_v2  ;;  %v401_v54 = vld [vmem:[%s4718_s6 + $0x2d0] sm:$0xff]  ;;  %v4944_v34 = vsub.f32 %v336_v14, %v487_v19 }
  0x8d   : > { %7512 = vst [vmem:[#allocation70_spill] sm:$0xff] %v4899_v22  ;;  %7513 = vst [vmem:[#allocation71_spill] sm:$0xff] %v4904_v31  ;;  %v4921_v22 = vsub.f32 %v398_v36, %v1829_v15  ;;  %v335_v36 = vld [vmem:[%s4718_s6 + $0xc0] sm:$0xff]  ;;  %v340_v35 = vld [vmem:[%s4718_s6 + $0xe8] sm:$0xff]  ;;  %3855 = vmatpush1.bf16.xpose.msra.mxu1 %v4869_v29 }
  0x8e   : > { %7514 = vst [vmem:[#allocation72_spill] sm:$0xff] %v4906_v45  ;;  %7515 = vst [vmem:[#allocation73_spill] sm:$0xff] %v4908_v0  ;;  %v399_v15 = vld [vmem:[%s4718_s6 + $0x2c0] sm:$0xff]  ;;  %v4940_v0 = vsub.f32 %v395_v7, %v1827_v38  ;;  %v4942_v45 = vsub.f32 %v397_v28, %v1831_v1  ;;  %v406_v7 = vld [vmem:[%s4718_s6 + $0x2f8] sm:$0xff]  ;;  %3857 = vmatprep.subr.bf16.mxu1 %v4891_v24  ;;  %v489_v14 = vand.u32 4294901760, %v335_v36  ;;  %v493_v28 = vand.u32 4294901760, %v337_v21 }
  0x8f   : > { %7516 = vst [vmem:[#allocation74_spill] sm:$0xff] %v4910_v47  ;;  %7517 = vst [vmem:[#allocation75_spill] sm:$0xff] %v4915_v37  ;;  %v4938_v47 = vpack.c.bf16 %v1831_v1, %v1827_v38  ;;  %v1835_v38 = vand.u32 4294901760, %v399_v15  ;;  %v1839_v1 = vand.u32 4294901760, %v401_v54  ;;  %v1845_v24 = vand.u32 4294901760, %v406_v7  ;;  %v420_v43 = vld [vmem:[%s4718_s6 + $0x368] sm:$0xff] }
  0x90   : > { %7518 = vst [vmem:[#allocation76_spill] sm:$0xff] %v4917_v10  ;;  %7519 = vst [vmem:[#allocation77_spill] sm:$0xff] %v4919_v51  ;;  %v4933_v51 = vsub.f32 %v333_v42, %v485_v4  ;;  %v1837_v10 = vand.u32 4294901760, %v402_v55  ;;  %v4950_v42 = vpack.c.bf16 %v491_v30, %v487_v19  ;;  %v495_v19 = vand.u32 4294901760, %v340_v35  ;;  %v364_v32 = vld [vmem:[%s4718_s6 + $0x1a8] sm:$0xff] }
  0x91   : > { %7520 = vst [vmem:[#allocation78_spill] sm:$0xff] %v4921_v22  ;;  %7521 = vst [vmem:[#allocation79_spill] sm:$0xff] %v4925_v6  ;;  %v4931_v22 = vsub.f32 %v331_v62, %v481_v2  ;;  %v4952_v62 = vsub.f32 %v338_v59, %v491_v30  ;;  %v4954_v2 = vsub.f32 %v400_v8, %v1833_v63  ;;  %v499_v59 = vand.u32 4294901760, %v342_v26 }
  0x92   : > { %7522 = vst [vmem:[#allocation80_spill] sm:$0xff] %v4929_v53  ;;  %7524 = vst [vmem:[#allocation82_spill] sm:$0xff] %v4933_v51  ;;  %v4956_v4 = vsub.f32 %v402_v55, %v1837_v10  ;;  %v1841_v8 = vand.u32 4294901760, %v404_v13  ;;  %v339_v55 = vld [vmem:[%s4718_s6 + $0xe0] sm:$0xff]  ;;  %v4963_v30 = vpack.c.bf16 %v493_v28, %v489_v14  ;;  %v4965_v29 = vsub.f32 %v335_v36, %v489_v14 }
  0x93   : > { %7523 = vst [vmem:[#allocation81_spill] sm:$0xff] %v4931_v22  ;;  %7525 = vst [vmem:[#allocation83_spill] sm:$0xff] %v4938_v47  ;;  %v4978_v51 = vsub.f32 %v340_v35, %v495_v19  ;;  %v344_v22 = vld [vmem:[%s4718_s6 + $0x108] sm:$0xff]  ;;  %3475 = vmatpush1.bf16.xpose.msra.mxu0 %v4895_v20  ;;  %v4986_v36 = vsub.f32 %v342_v26, %v499_v59  ;;  %v497_v35 = vand.u32 4294901760, %v339_v55  ;;  %v507_v20 = vand.u32 4294901760, %v346_v58 }
  0x94   : > { %7526 = vst [vmem:[#allocation84_spill] sm:$0xff] %v4940_v0  ;;  %7527 = vst [vmem:[#allocation85_spill] sm:$0xff] %v4942_v45  ;;  %v405_v45 = vld [vmem:[%s4718_s6 + $0x2f0] sm:$0xff]  ;;  %v4976_v0 = vsub.f32 %v401_v54, %v1839_v1  ;;  %v4988_v14 = vsub.f32 %v404_v13, %v1841_v8  ;;  %3477 = vmatprep.subr.bf16.mxu0 %v4915_v37  ;;  %v1849_v26 = vand.u32 4294901760, %v408_v57  ;;  %v343_v13 = vld [vmem:[%s4718_s6 + $0x100] sm:$0xff] }
  0x95   : > { %7528 = vst [vmem:[#allocation86_spill] sm:$0xff] %v4944_v34  ;;  %7529 = vst [vmem:[#allocation87_spill] sm:$0xff] %v4950_v42  ;;  %v4960_v34 = vpack.c.bf16 %v1837_v10, %v1833_v63  ;;  %v4972_v10 = vpack.c.bf16 %v1839_v1, %v1835_v38  ;;  %v4974_v63 = vsub.f32 %v399_v15, %v1835_v38  ;;  %v410_v15 = vld [vmem:[%s4718_s6 + $0x318] sm:$0xff]  ;;  %v1847_v1 = vand.u32 4294901760, %v405_v45 }
  0x96   : > { %7530 = vst [vmem:[#allocation88_spill] sm:$0xff] %v4952_v62  ;;  %7531 = vst [vmem:[#allocation89_spill] sm:$0xff] %v4954_v2  ;;  %v341_v2 = vld [vmem:[%s4718_s6 + $0xf0] sm:$0xff]  ;;  %v403_v62 = vld [vmem:[%s4718_s6 + $0x2e0] sm:$0xff]  ;;  %3859 = vmatpush1.bf16.xpose.msra.mxu1 %v4904_v31 }
  0x97   : > { %7532 = vst [vmem:[#allocation90_spill] sm:$0xff] %v4956_v4  ;;  %7533 = vst [vmem:[#allocation91_spill] sm:$0xff] %v4960_v34  ;;  %v4967_v4 = vsub.f32 %v337_v21, %v493_v28  ;;  %v4984_v21 = vpack.c.bf16 %v499_v59, %v495_v19  ;;  %v4990_v28 = vsub.f32 %v406_v7, %v1845_v24  ;;  %v501_v54 = vand.u32 4294901760, %v341_v2 }
  0x98   : > { %7534 = vst [vmem:[#allocation92_spill] sm:$0xff] %v4963_v30  ;;  %7535 = vst [vmem:[#allocation93_spill] sm:$0xff] %v4965_v29  ;;  %v1843_v38 = vand.u32 4294901760, %v403_v62  ;;  %v503_v19 = vand.u32 4294901760, %v344_v22  ;;  %v5000_v59 = vsub.f32 %v339_v55, %v497_v35  ;;  %3861 = vmatprep.subr.bf16.mxu1 %v4925_v6  ;;  %v350_v55 = vld [vmem:[%s4718_s6 + $0x138] sm:$0xff] }
  0x99   : > { %7536 = vst [vmem:[#allocation94_spill] sm:$0xff] %v4967_v4  ;;  %7537 = vst [vmem:[#allocation95_spill] sm:$0xff] %v4972_v10  ;;  %v4998_v7 = vpack.c.bf16 %v501_v54, %v497_v35  ;;  %v5002_v37 = vsub.f32 %v341_v2, %v501_v54  ;;  %v348_v4 = vld [vmem:[%s4718_s6 + $0x128] sm:$0xff]  ;;  %v5021_v54 = vsub.f32 %v346_v58, %v507_v20  ;;  %v414_v6 = vld [vmem:[%s4718_s6 + $0x338] sm:$0xff] }
  0x9a   : > { %7538 = vst [vmem:[#allocation96_spill] sm:$0xff] %v4974_v63  ;;  %7539 = vst [vmem:[#allocation97_spill] sm:$0xff] %v4976_v0  ;;  %v5010_v0 = vsub.f32 %v403_v62, %v1843_v38  ;;  %v5012_v63 = vsub.f32 %v405_v45, %v1847_v1  ;;  %v5014_v31 = vsub.f32 %v344_v22, %v503_v19  ;;  %v412_v2 = vld [vmem:[%s4718_s6 + $0x328] sm:$0xff]  ;;  %v505_v62 = vand.u32 4294901760, %v343_v13  ;;  %v347_v58 = vld [vmem:[%s4718_s6 + $0x120] sm:$0xff] }
  0x9b   : > { %7540 = vst [vmem:[#allocation98_spill] sm:$0xff] %v4978_v51  ;;  %7541 = vst [vmem:[#allocation99_spill] sm:$0xff] %v4984_v21  ;;  %v4994_v51 = vpack.c.bf16 %v1845_v24, %v1841_v8  ;;  %v407_v24 = vld [vmem:[%s4718_s6 + $0x300] sm:$0xff]  ;;  %v409_v8 = vld [vmem:[%s4718_s6 + $0x310] sm:$0xff]  ;;  %v5019_v35 = vpack.c.bf16 %v507_v20, %v503_v19  ;;  %v1857_v19 = vand.u32 4294901760, %v412_v2  ;;  %3479 = vmatpush1.bf16.xpose.msra.mxu0 %v4929_v53 }
  0x9c   : > { %7542 = vst [vmem:[#allocation100_spill] sm:$0xff] %v4986_v36  ;;  %7543 = vst [vmem:[#allocation101_spill] sm:$0xff] %v4988_v14  ;;  %v345_v14 = vld [vmem:[%s4718_s6 + $0x110] sm:$0xff]  ;;  %v5008_v36 = vpack.c.bf16 %v1847_v1, %v1843_v38  ;;  %v1851_v22 = vand.u32 4294901760, %v407_v24  ;;  %v1855_v38 = vand.u32 4294901760, %v409_v8  ;;  %v5034_v20 = vsub.f32 %v343_v13, %v505_v62  ;;  %3481 = vmatprep.subr.bf16.mxu0 %v4950_v42  ;;  %v354_v13 = vld [vmem:[%s4718_s6 + $0x158] sm:$0xff] }
  0x9d   : > { %7544 = vst [vmem:[#allocation102_spill] sm:$0xff] %v4990_v28  ;;  %7545 = vst [vmem:[#allocation103_spill] sm:$0xff] %v4994_v51  ;;  %v1853_v28 = vand.u32 4294901760, %v410_v15  ;;  %v509_v45 = vand.u32 4294901760, %v345_v14  ;;  %v418_v42 = vld [vmem:[%s4718_s6 + $0x358] sm:$0xff] }
  0x9e   : > { %7546 = vst [vmem:[#allocation104_spill] sm:$0xff] %v4998_v7  ;;  %7547 = vst [vmem:[#allocation105_spill] sm:$0xff] %v5000_v59  ;;  %v5046_v29 = vsub.f32 %v409_v8, %v1855_v38  ;;  %3863 = vmatpush1.bf16.xpose.msra.mxu1 %v4938_v47 }
  0x9f   : > { %7548 = vst [vmem:[#allocation106_spill] sm:$0xff] %v5002_v37  ;;  %7549 = vst [vmem:[#allocation107_spill] sm:$0xff] %v5008_v36  ;;  %v5023_v37 = vsub.f32 %v408_v57, %v1849_v26  ;;  %v5025_v59 = vsub.f32 %v410_v15, %v1853_v28  ;;  %v5028_v1 = vpack.c.bf16 %v1853_v28, %v1849_v26  ;;  %v411_v28 = vld [vmem:[%s4718_s6 + $0x320] sm:$0xff]  ;;  %v413_v26 = vld [vmem:[%s4718_s6 + $0x330] sm:$0xff]  ;;  %3865 = vmatprep.subr.bf16.mxu1 %v4960_v34 }
  0xa0   : > { %7550 = vst [vmem:[#allocation108_spill] sm:$0xff] %v5010_v0  ;;  %7551 = vst [vmem:[#allocation109_spill] sm:$0xff] %v5012_v63  ;;  %v515_v63 = vand.u32 4294901760, %v350_v55  ;;  %v5032_v57 = vpack.c.bf16 %v509_v45, %v505_v62  ;;  %v5036_v15 = vsub.f32 %v345_v14, %v509_v45  ;;  %v5044_v0 = vsub.f32 %v407_v24, %v1851_v22  ;;  %v416_v62 = vld [vmem:[%s4718_s6 + $0x348] sm:$0xff]  ;;  %v417_v34 = vld [vmem:[%s4718_s6 + $0x350] sm:$0xff] }
  0xa1   : > { %7552 = vst [vmem:[#allocation110_spill] sm:$0xff] %v5014_v31  ;;  %7553 = vst [vmem:[#allocation111_spill] sm:$0xff] %v5019_v35  ;;  %v511_v31 = vand.u32 4294901760, %v348_v4  ;;  %v513_v24 = vand.u32 4294901760, %v347_v58  ;;  %v1859_v8 = vand.u32 4294901760, %v411_v28 }
  0xa2   : > { %7554 = vst [vmem:[#allocation112_spill] sm:$0xff] %v5021_v54  ;;  %7555 = vst [vmem:[#allocation113_spill] sm:$0xff] %v5023_v37  ;;  %v349_v37 = vld [vmem:[%s4718_s6 + $0x130] sm:$0xff]  ;;  %v5042_v54 = vpack.c.bf16 %v1855_v38, %v1851_v22  ;;  %v5055_v45 = vsub.f32 %v350_v55, %v515_v63  ;;  %v1863_v22 = vand.u32 4294901760, %v413_v26  ;;  %v523_v55 = vand.u32 4294901760, %v354_v13 }
  0xa3   : > { %7556 = vst [vmem:[#allocation114_spill] sm:$0xff] %v5025_v59  ;;  %7557 = vst [vmem:[#allocation115_spill] sm:$0xff] %v5028_v1  ;;  %v1861_v59 = vand.u32 4294901760, %v414_v6  ;;  %v5048_v53 = vsub.f32 %v348_v4, %v511_v31  ;;  %v5053_v14 = vpack.c.bf16 %v515_v63, %v511_v31  ;;  %v517_v4 = vand.u32 4294901760, %v349_v37  ;;  %3483 = vmatpush1.bf16.xpose.msra.mxu0 %v4963_v30 }
  0xa4   : > { %7558 = vst [vmem:[#allocation116_spill] sm:$0xff] %v5032_v57  ;;  %7559 = vst [vmem:[#allocation117_spill] sm:$0xff] %v5034_v20  ;;  %v519_v63 = vand.u32 4294901760, %v352_v56  ;;  %v5069_v47 = vsub.f32 %v347_v58, %v513_v24  ;;  %3485 = vmatprep.subr.bf16.mxu0 %v4984_v21  ;;  %v421_v21 = vld [vmem:[%s4718_s6 + $0x370] sm:$0xff] }
  0xa5   : > { %7560 = vst [vmem:[#allocation118_spill] sm:$0xff] %v5036_v15  ;;  %7561 = vst [vmem:[#allocation119_spill] sm:$0xff] %v5042_v54  ;;  %v5057_v15 = vsub.f32 %v412_v2, %v1857_v19  ;;  %v5059_v20 = vsub.f32 %v414_v6, %v1861_v59  ;;  %v5064_v31 = vpack.c.bf16 %v1861_v59, %v1857_v19  ;;  %v1865_v6 = vand.u32 4294901760, %v416_v62  ;;  %v351_v2 = vld [vmem:[%s4718_s6 + $0x140] sm:$0xff] }
  0xa6   : > { %7562 = vst [vmem:[#allocation120_spill] sm:$0xff] %v5044_v0  ;;  %7563 = vst [vmem:[#allocation121_spill] sm:$0xff] %v5046_v29  ;;  %v5067_v38 = vpack.c.bf16 %v517_v4, %v513_v24  ;;  %v5076_v59 = vpack.c.bf16 %v1863_v22, %v1859_v8  ;;  %v5078_v19 = vsub.f32 %v411_v28, %v1859_v8  ;;  %v521_v28 = vand.u32 4294901760, %v351_v2 }
  0xa7   : > { %7564 = vst [vmem:[#allocation122_spill] sm:$0xff] %v5048_v53  ;;  %7565 = vst [vmem:[#allocation123_spill] sm:$0xff] %v5053_v14  ;;  %v415_v53 = vld [vmem:[%s4718_s6 + $0x340] sm:$0xff]  ;;  %v5080_v29 = vsub.f32 %v413_v26, %v1863_v22  ;;  %v5082_v0 = vsub.f32 %v352_v56, %v519_v63  ;;  %v5087_v58 = vpack.c.bf16 %v523_v55, %v519_v63  ;;  %v1871_v8 = vand.u32 4294901760, %v417_v34 }
  0xa8   : > { %7566 = vst [vmem:[#allocation124_spill] sm:$0xff] %v5055_v45  ;;  %7567 = vst [vmem:[#allocation125_spill] sm:$0xff] %v5057_v15  ;;  %v1869_v15 = vand.u32 4294901760, %v418_v42  ;;  %v353_v45 = vld [vmem:[%s4718_s6 + $0x150] sm:$0xff]  ;;  %v5091_v24 = vsub.f32 %v416_v62, %v1865_v6  ;;  %v1867_v26 = vand.u32 4294901760, %v415_v53  ;;  %v531_v62 = vand.u32 4294901760, %v358_v44  ;;  %3867 = vmatpush1.bf16.xpose.msra.mxu1 %v4972_v10 }
  0xa9   : > { %7568 = vst [vmem:[#allocation126_spill] sm:$0xff] %v5059_v20  ;;  %7569 = vst [vmem:[#allocation127_spill] sm:$0xff] %v5064_v31  ;;  %v5071_v20 = vsub.f32 %v349_v37, %v517_v4  ;;  %v5089_v37 = vsub.f32 %v354_v13, %v523_v55  ;;  %v525_v56 = vand.u32 4294901760, %v353_v45  ;;  %v527_v13 = vand.u32 4294901760, %v356_v49  ;;  %v355_v63 = vld [vmem:[%s4718_s6 + $0x160] sm:$0xff]  ;;  %3869 = vmatprep.subr.bf16.mxu1 %v4994_v51 }
  0xaa   : > { %7570 = vst [vmem:[#allocation128_spill] sm:$0xff] %v5067_v38  ;;  %7571 = vst [vmem:[#allocation129_spill] sm:$0xff] %v5069_v47  ;;  %v5093_v4 = vsub.f32 %v418_v42, %v1869_v15  ;;  %v5098_v22 = vpack.c.bf16 %v1869_v15, %v1865_v6  ;;  %v1873_v42 = vand.u32 4294901760, %v420_v43  ;;  %v5103_v30 = vsub.f32 %v351_v2, %v521_v28  ;;  %v360_v47 = vld [vmem:[%s4718_s6 + $0x188] sm:$0xff]  ;;  %v362_v2 = vld [vmem:[%s4718_s6 + $0x198] sm:$0xff] }
  0xab   : > { %7572 = vst [vmem:[#allocation130_spill] sm:$0xff] %v5071_v20  ;;  %7573 = vst [vmem:[#allocation131_spill] sm:$0xff] %v5076_v59  ;;  %v422_v20 = vld [vmem:[%s4718_s6 + $0x378] sm:$0xff]  ;;  %v5101_v55 = vpack.c.bf16 %v525_v56, %v521_v28  ;;  %v5111_v15 = vpack.c.bf16 %v1871_v8, %v1867_v26  ;;  %v5113_v6 = vsub.f32 %v415_v53, %v1867_v26  ;;  %3487 = vmatpush1.bf16.xpose.msra.mxu0 %v4998_v7 }
  0xac   : > { %7574 = vst [vmem:[#allocation132_spill] sm:$0xff] %v5078_v19  ;;  %7575 = vst [vmem:[#allocation133_spill] sm:$0xff] %v5080_v29  ;;  %v5115_v29 = vsub.f32 %v417_v34, %v1871_v8  ;;  %v5117_v19 = vsub.f32 %v356_v49, %v527_v13  ;;  %v5123_v28 = vpack.c.bf16 %v531_v62, %v527_v13  ;;  %v426_v34 = vld [vmem:[%s4718_s6 + $0x398] sm:$0xff]  ;;  %v529_v49 = vand.u32 4294901760, %v355_v63 }
  0xad   : > { %7576 = vst [vmem:[#allocation134_spill] sm:$0xff] %v5082_v0  ;;  %7577 = vst [vmem:[#allocation135_spill] sm:$0xff] %v5087_v58  ;;  %v419_v0 = vld [vmem:[%s4718_s6 + $0x360] sm:$0xff]  ;;  %v1879_v8 = vand.u32 4294901760, %v421_v21  ;;  %v539_v13 = vand.u32 4294901760, %v362_v2  ;;  %3489 = vmatprep.subr.bf16.mxu0 %v5019_v35 }
  0xae   : > { %7578 = vst [vmem:[#allocation136_spill] sm:$0xff] %v5089_v37  ;;  %7579 = vst [vmem:[#allocation137_spill] sm:$0xff] %v5091_v24  ;;  %v1877_v24 = vand.u32 4294901760, %v422_v20  ;;  %v357_v37 = vld [vmem:[%s4718_s6 + $0x170] sm:$0xff]  ;;  %v1875_v26 = vand.u32 4294901760, %v419_v0 }
  0xaf   : > { %7580 = vst [vmem:[#allocation138_spill] sm:$0xff] %v5093_v4  ;;  %7581 = vst [vmem:[#allocation139_spill] sm:$0xff] %v5098_v22  ;;  %v5105_v4 = vsub.f32 %v353_v45, %v525_v56  ;;  %v424_v45 = vld [vmem:[%s4718_s6 + $0x388] sm:$0xff]  ;;  %v5125_v56 = vsub.f32 %v358_v44, %v531_v62  ;;  %v533_v53 = vand.u32 4294901760, %v357_v37 }
  0xb0   : > { %7582 = vst [vmem:[#allocation140_spill] sm:$0xff] %v5101_v55  ;;  %7583 = vst [vmem:[#allocation141_spill] sm:$0xff] %v5103_v30  ;;  %v5129_v10 = vsub.f32 %v422_v20, %v1877_v24  ;;  %v1881_v44 = vand.u32 4294901760, %v424_v45  ;;  %v5137_v20 = vsub.f32 %v355_v63, %v529_v49  ;;  %v5149_v30 = vsub.f32 %v421_v21, %v1879_v8  ;;  %v366_v63 = vld [vmem:[%s4718_s6 + $0x1b8] sm:$0xff] }
  0xb1   : > { %7584 = vst [vmem:[#allocation142_spill] sm:$0xff] %v5105_v4  ;;  %7585 = vst [vmem:[#allocation143_spill] sm:$0xff] %v5111_v15  ;;  %v5127_v4 = vsub.f32 %v420_v43, %v1873_v42  ;;  %v359_v43 = vld [vmem:[%s4718_s6 + $0x180] sm:$0xff]  ;;  %v5135_v62 = vpack.c.bf16 %v533_v53, %v529_v49  ;;  %v5139_v51 = vsub.f32 %v357_v37, %v533_v53  ;;  %v428_v49 = vld [vmem:[%s4718_s6 + $0x3a8] sm:$0xff]  ;;  %3871 = vmatpush1.bf16.xpose.msra.mxu1 %v5008_v36 }
  0xb2   : > { %7586 = vst [vmem:[#allocation144_spill] sm:$0xff] %v5113_v6  ;;  %7587 = vst [vmem:[#allocation145_spill] sm:$0xff] %v5115_v29  ;;  %v535_v29 = vand.u32 4294901760, %v360_v47  ;;  %v425_v6 = vld [vmem:[%s4718_s6 + $0x390] sm:$0xff]  ;;  %v5159_v53 = vsub.f32 %v362_v2, %v539_v13  ;;  %v537_v21 = vand.u32 4294901760, %v359_v43  ;;  %v547_v2 = vand.u32 4294901760, %v366_v63  ;;  %3873 = vmatprep.subr.bf16.mxu1 %v5028_v1 }
  0xb3   : > { %7588 = vst [vmem:[#allocation146_spill] sm:$0xff] %v5117_v19  ;;  %7589 = vst [vmem:[#allocation147_spill] sm:$0xff] %v5123_v28  ;;  %v5132_v19 = vpack.c.bf16 %v1877_v24, %v1873_v42  ;;  %v5145_v24 = vpack.c.bf16 %v1879_v8, %v1875_v26  ;;  %v5147_v42 = vsub.f32 %v419_v0, %v1875_v26  ;;  %v430_v0 = vld [vmem:[%s4718_s6 + $0x3b8] sm:$0xff]  ;;  %v1887_v8 = vand.u32 4294901760, %v425_v6  ;;  %v365_v36 = vld [vmem:[%s4718_s6 + $0x1b0] sm:$0xff] }
  0xb4   : > { %7590 = vst [vmem:[#allocation148_spill] sm:$0xff] %v5125_v56  ;;  %7591 = vst [vmem:[#allocation149_spill] sm:$0xff] %v5127_v4  ;;  %v361_v4 = vld [vmem:[%s4718_s6 + $0x190] sm:$0xff]  ;;  %v423_v56 = vld [vmem:[%s4718_s6 + $0x380] sm:$0xff]  ;;  %v5151_v33 = vsub.f32 %v360_v47, %v535_v29  ;;  %v5157_v37 = vpack.c.bf16 %v539_v13, %v535_v29  ;;  %v543_v29 = vand.u32 4294901760, %v364_v32  ;;  %v5173_v35 = vsub.f32 %v359_v43, %v537_v21 }
  0xb5   : > { %7592 = vst [vmem:[#allocation150_spill] sm:$0xff] %v5129_v10  ;;  %7593 = vst [vmem:[#allocation151_spill] sm:$0xff] %v5132_v19  ;;  %v1885_v10 = vand.u32 4294901760, %v426_v34  ;;  %v541_v47 = vand.u32 4294901760, %v361_v4  ;;  %v1883_v26 = vand.u32 4294901760, %v423_v56  ;;  %v368_v1 = vld [vmem:[%s4718_s6 + $0x1c8] sm:$0xff]  ;;  %3491 = vmatpush1.bf16.xpose.msra.mxu0 %v5032_v57 }
  0xb6   : > { %7594 = vst [vmem:[#allocation152_spill] sm:$0xff] %v5135_v62  ;;  %7595 = vst [vmem:[#allocation153_spill] sm:$0xff] %v5137_v20  ;;  %v5186_v20 = vsub.f32 %v364_v32, %v543_v29  ;;  %v432_v43 = vld [vmem:[%s4718_s6 + $0x3c8] sm:$0xff]  ;;  %3493 = vmatprep.subr.bf16.mxu0 %v5053_v14  ;;  %v369_v57 = vld [vmem:[%s4718_s6 + $0x1d0] sm:$0xff] }
  0xb7   : > { %7596 = vst [vmem:[#allocation154_spill] sm:$0xff] %v5139_v51  ;;  %7597 = vst [vmem:[#allocation155_spill] sm:$0xff] %v5145_v24  ;;  %v5161_v51 = vsub.f32 %v424_v45, %v1881_v44  ;;  %v5163_v7 = vsub.f32 %v426_v34, %v1885_v10  ;;  %v1889_v45 = vand.u32 4294901760, %v428_v49  ;;  %v363_v34 = vld [vmem:[%s4718_s6 + $0x1a0] sm:$0xff]  ;;  %v5171_v13 = vpack.c.bf16 %v541_v47, %v537_v21  ;;  %v372_v14 = vld [vmem:[%s4718_s6 + $0x1e8] sm:$0xff] }
  0xb8   : > { %7598 = vst [vmem:[#allocation156_spill] sm:$0xff] %v5147_v42  ;;  %7599 = vst [vmem:[#allocation157_spill] sm:$0xff] %v5149_v30  ;;  %v5182_v30 = vsub.f32 %v423_v56, %v1883_v26  ;;  %v5184_v42 = vsub.f32 %v425_v6, %v1887_v8  ;;  %v5191_v21 = vpack.c.bf16 %v547_v2, %v543_v29  ;;  %v545_v56 = vand.u32 4294901760, %v363_v34 }
  0xb9   : > { %7600 = vst [vmem:[#allocation158_spill] sm:$0xff] %v5151_v33  ;;  %7601 = vst [vmem:[#allocation159_spill] sm:$0xff] %v5157_v37  ;;  %v5167_v33 = vpack.c.bf16 %v1885_v10, %v1881_v44  ;;  %v427_v10 = vld [vmem:[%s4718_s6 + $0x3a0] sm:$0xff]  ;;  %v429_v44 = vld [vmem:[%s4718_s6 + $0x3b0] sm:$0xff]  ;;  %v549_v6 = vand.u32 4294901760, %v365_v36  ;;  %v551_v29 = vand.u32 4294901760, %v368_v1  ;;  %3875 = vmatpush1.bf16.xpose.msra.mxu1 %v5042_v54 }
  0xba   : > { %7602 = vst [vmem:[#allocation160_spill] sm:$0xff] %v5159_v53  ;;  %7603 = vst [vmem:[#allocation161_spill] sm:$0xff] %v5161_v51  ;;  %v1893_v51 = vand.u32 4294901760, %v430_v0  ;;  %v5180_v53 = vpack.c.bf16 %v1887_v8, %v1883_v26  ;;  %v1891_v32 = vand.u32 4294901760, %v427_v10  ;;  %v1895_v26 = vand.u32 4294901760, %v429_v44  ;;  %3877 = vmatprep.subr.bf16.mxu1 %v5064_v31  ;;  %v435_v31 = vld [vmem:[%s4718_s6 + $0x3e0] sm:$0xff] }
  0xbb   : > { %7604 = vst [vmem:[#allocation162_spill] sm:$0xff] %v5163_v7  ;;  %7605 = vst [vmem:[#allocation163_spill] sm:$0xff] %v5167_v33  ;;  %v5175_v7 = vsub.f32 %v361_v4, %v541_v47  ;;  %v5193_v4 = vsub.f32 %v366_v63, %v547_v2  ;;  %v5195_v47 = vsub.f32 %v428_v49, %v1889_v45  ;;  %v555_v63 = vand.u32 4294901760, %v370_v12 }
  0xbc   : > { %7606 = vst [vmem:[#allocation164_spill] sm:$0xff] %v5171_v13  ;;  %7607 = vst [vmem:[#allocation165_spill] sm:$0xff] %v5173_v35  ;;  %v434_v35 = vld [vmem:[%s4718_s6 + $0x3d8] sm:$0xff]  ;;  %v5201_v8 = vpack.c.bf16 %v1893_v51, %v1889_v45  ;;  %v1897_v49 = vand.u32 4294901760, %v432_v43  ;;  %v5205_v2 = vpack.c.bf16 %v549_v6, %v545_v56  ;;  %v433_v45 = vld [vmem:[%s4718_s6 + $0x3d0] sm:$0xff] }
  0xbd   : > { %7608 = vst [vmem:[#allocation166_spill] sm:$0xff] %v5175_v7  ;;  %7609 = vst [vmem:[#allocation167_spill] sm:$0xff] %v5180_v53  ;;  %v5197_v7 = vsub.f32 %v430_v0, %v1893_v51  ;;  %v367_v0 = vld [vmem:[%s4718_s6 + $0x1c0] sm:$0xff]  ;;  %v374_v53 = vld [vmem:[%s4718_s6 + $0x1f8] sm:$0xff]  ;;  %3495 = vmatpush1.bf16.xpose.msra.mxu0 %v5067_v38 }
  0xbe   : > { %7610 = vst [vmem:[#allocation168_spill] sm:$0xff] %v5182_v30  ;;  %7611 = vst [vmem:[#allocation169_spill] sm:$0xff] %v5184_v42  ;;  %v431_v51 = vld [vmem:[%s4718_s6 + $0x3c0] sm:$0xff]  ;;  %v5216_v42 = vsub.f32 %v427_v10, %v1891_v32  ;;  %v5218_v30 = vsub.f32 %v429_v44, %v1895_v26  ;;  %v438_v10 = vld [vmem:[%s4718_s6 + $0x3f8] sm:$0xff]  ;;  %v557_v44 = vand.u32 4294901760, %v369_v57  ;;  %v563_v54 = vand.u32 4294901760, %v374_v53  ;;  %3497 = vmatprep.subr.bf16.mxu0 %v5087_v58 }
  0xbf   : > { %7612 = vst [vmem:[#allocation170_spill] sm:$0xff] %v5186_v20  ;;  %7613 = vst [vmem:[#allocation171_spill] sm:$0xff] %v5191_v21  ;;  %v5214_v20 = vpack.c.bf16 %v1895_v26, %v1891_v32  ;;  %v1899_v32 = vand.u32 4294901760, %v431_v51  ;;  %v1903_v26 = vand.u32 4294901760, %v433_v45 }
  0xc0   : > { %7614 = vst [vmem:[#allocation172_spill] sm:$0xff] %v5193_v4  ;;  %7615 = vst [vmem:[#allocation173_spill] sm:$0xff] %v5195_v47  ;;  %v5209_v47 = vsub.f32 %v365_v36, %v549_v6  ;;  %v1901_v4 = vand.u32 4294901760, %v434_v35  ;;  %v5226_v36 = vpack.c.bf16 %v555_v63, %v551_v29 }
  0xc1   : > { %7616 = vst [vmem:[#allocation174_spill] sm:$0xff] %v5197_v7  ;;  %7617 = vst [vmem:[#allocation175_spill] sm:$0xff] %v5201_v8  ;;  %v5207_v7 = vsub.f32 %v363_v34, %v545_v56  ;;  %v5220_v8 = vsub.f32 %v368_v1, %v551_v29  ;;  %v5228_v34 = vsub.f32 %v370_v12, %v555_v63  ;;  %v553_v1 = vand.u32 4294901760, %v367_v0  ;;  %v371_v63 = vld [vmem:[%s4718_s6 + $0x1e0] sm:$0xff] }
  0xc2   : > { %7618 = vst [vmem:[#allocation176_spill] sm:$0xff] %v5205_v2  ;;  %7620 = vst [vmem:[#allocation178_spill] sm:$0xff] %v5209_v47  ;;  %v436_v2 = vld [vmem:[%s4718_s6 + $0x3e8] sm:$0xff]  ;;  %v5230_v56 = vsub.f32 %v432_v43, %v1897_v49  ;;  %v5232_v6 = vsub.f32 %v434_v35, %v1901_v4  ;;  %v559_v29 = vand.u32 4294901760, %v372_v14  ;;  %v5250_v47 = vsub.f32 %v431_v51, %v1899_v32 }
  0xc3   : > { %7619 = vst [vmem:[#allocation177_spill] sm:$0xff] %v5207_v7  ;;  %7621 = vst [vmem:[#allocation179_spill] sm:$0xff] %v5214_v20  ;;  %v1905_v12 = vand.u32 4294901760, %v436_v2  ;;  %v5239_v43 = vpack.c.bf16 %v557_v44, %v553_v1  ;;  %v5241_v35 = vsub.f32 %v367_v0, %v553_v1  ;;  %v308_v7 = vld [vmem:[#allocation4 + $0x8] sm:$0xff]  ;;  %v5259_v0 = vsub.f32 %v374_v53, %v563_v54 }
  0xc4   : > { %7622 = vst [vmem:[#allocation180_spill] sm:$0xff] %v5216_v42  ;;  %7623 = vst [vmem:[#allocation181_spill] sm:$0xff] %v5218_v30  ;;  %v437_v30 = vld [vmem:[%s4718_s6 + $0x3f0] sm:$0xff]  ;;  %v5248_v42 = vpack.c.bf16 %v1903_v26, %v1899_v32  ;;  %v1907_v32 = vand.u32 4294901760, %v435_v31  ;;  %3879 = vmatpush1.bf16.xpose.msra.mxu1 %v5076_v59 }
  0xc5   : > { %7624 = vst [vmem:[#allocation182_spill] sm:$0xff] %v5220_v8  ;;  %7625 = vst [vmem:[#allocation183_spill] sm:$0xff] %v5226_v36  ;;  %v5236_v8 = vpack.c.bf16 %v1901_v4, %v1897_v49  ;;  %v5252_v4 = vsub.f32 %v433_v45, %v1903_v26  ;;  %v5254_v49 = vsub.f32 %v372_v14, %v559_v29  ;;  %v1911_v45 = vand.u32 4294901760, %v437_v30 }
  0xc6   : > { %7626 = vst [vmem:[#allocation184_spill] sm:$0xff] %v5228_v34  ;;  %7627 = vst [vmem:[#allocation185_spill] sm:$0xff] %v5230_v56  ;;  %v1909_v56 = vand.u32 4294901760, %v438_v10  ;;  %v373_v34 = vld [vmem:[%s4718_s6 + $0x1f0] sm:$0xff]  ;;  %v5266_v26 = vand.u32 4294901760, %v308_v7  ;;  %3881 = vmatprep.subr.bf16.mxu1 %v5098_v22  ;;  %v7111_v22 = vand.u32 4294901760, %v4754_v25  ;;  %3499 = vmatpush1.bf16.xpose.msra.mxu0 %v5101_v55 }
  0xc7   : > { %7628 = vst [vmem:[#allocation186_spill] sm:$0xff] %v5232_v6  ;;  %7629 = vst [vmem:[#allocation187_spill] sm:$0xff] %v5236_v8  ;;  %v5243_v6 = vsub.f32 %v369_v57, %v557_v44  ;;  %v5261_v57 = vsub.f32 %v436_v2, %v1905_v12  ;;  %v561_v44 = vand.u32 4294901760, %v371_v63  ;;  %v565_v51 = vand.u32 4294901760, %v373_v34  ;;  %3501 = vmatprep.subr.bf16.mxu0 %v5123_v28 }
  0xc8   : > { %7630 = vst [vmem:[#allocation188_spill] sm:$0xff] %v5239_v43  ;;  %7631 = vst [vmem:[#allocation189_spill] sm:$0xff] %v5241_v35  ;;  %v5257_v43 = vpack.c.bf16 %v563_v54, %v559_v29  ;;  %v5263_v1 = vsub.f32 %v438_v10, %v1909_v56  ;;  %v307_v54 = vld [vmem:[#allocation4] sm:$0xff]  ;;  %v5272_v53 = vpack.c.bf16 %v1909_v56, %v1905_v12  ;;  %v7649_v29 = vand.u32 4294901760, %v4739_v16 }
  0xc9   : > { %7632 = vst [vmem:[#allocation190_spill] sm:$0xff] %v5243_v6  ;;  %7633 = vst [vmem:[#allocation191_spill] sm:$0xff] %v5248_v42  ;;  %v5274_v2 = vpack.c.bf16 %v565_v51, %v561_v44  ;;  %v5276_v10 = vsub.f32 %v371_v63, %v561_v44  ;;  %v5278_v58 = vsub.f32 %v373_v34, %v565_v51  ;;  %v7650_v12 = vand.u32 4294901760, %v4741_v17 }
  0xca   : > { %7634 = vst [vmem:[#allocation192_spill] sm:$0xff] %v5250_v47  ;;  %7635 = vst [vmem:[#allocation193_spill] sm:$0xff] %v5252_v4  ;;  %v5283_v14 = vsub.f32 %v437_v30, %v1911_v45  ;;  %v5286_v38 = vsub.f32 %v308_v7, %v5266_v26  ;;  %v603_v56 = vsub.f32 %v4739_v16, %v7649_v29  ;;  %v7651_v34 = vand.u32 4294901760, %v4743_v18 }
  0xcb   : > { %7636 = vst [vmem:[#allocation194_spill] sm:$0xff] %v5254_v49  ;;  %7637 = vst [vmem:[#allocation195_spill] sm:$0xff] %v5257_v43  ;;  %v615_v63 = vsub.f32 %v4741_v17, %v7650_v12  ;;  %v5298_v51 = vand.u32 4294901760, %v307_v54  ;;  %v7112_v29 = vand.u32 4294901760, %v4758_v27  ;;  %v7142_v28 = vand.u32 4294901760, %v4813_v9 }
  0xcc   : > { %7638 = vst [vmem:[#allocation196_spill] sm:$0xff] %v5259_v0  ;;  %7639 = vst [vmem:[#allocation197_spill] sm:$0xff] %v5261_v57  ;;  %v1949_v44 = vsub.f32 %v4743_v18, %v7651_v34  ;;  %v5301_v30 = vand.u32 4294901760, %v5286_v38  ;;  %v604_v7 = vand.u32 4294901760, %v603_v56  ;;  %v609_v56 = vsub.f32 %v4754_v25, %v7111_v22  ;;  %3883 = vmatpush1.bf16.xpose.msra.mxu1 %v5111_v15 }
  0xcd   : > { %7640 = vst [vmem:[#allocation198_spill] sm:$0xff] %v5263_v1  ;;  %7641 = vst [vmem:[#allocation199_spill] sm:$0xff] %v5266_v26  ;;  %v5281_v1 = vsub.f32 %v435_v31, %v1907_v32  ;;  %v7100_v31 = vand.u32 4294901760, %v4750_v23  ;;  %v616_v59 = vand.u32 4294901760, %v615_v63  ;;  %v5309_v34 = vsub.f32 %v307_v54, %v5298_v51  ;;  %3885 = vmatprep.subr.bf16.mxu1 %v5132_v19 }
  0xce   : > { %7642 = vst [vmem:[#allocation200_spill] sm:$0xff] %v5272_v53  ;;  %7643 = vst [vmem:[#allocation201_spill] sm:$0xff] %v5274_v2  ;;  %v1950_v16 = vand.u32 4294901760, %v1949_v44  ;;  %v570_v18 = vsub.f32 %v5286_v38, %v5301_v30  ;;  %v621_v63 = vsub.f32 %v4758_v27, %v7112_v29  ;;  %v7113_v44 = vand.u32 4294901760, %v4767_v39  ;;  %3503 = vmatpush1.bf16.xpose.msra.mxu0 %v5135_v62 }
  0xcf   : > { %7644 = vst [vmem:[#allocation202_spill] sm:$0xff] %v5276_v10  ;;  %7645 = vst [vmem:[#allocation203_spill] sm:$0xff] %v5278_v58  ;;  %v1961_v12 = vsub.f32 %v4750_v23, %v7100_v31  ;;  %v5322_v31 = vpack.c.bf16 %v1911_v45, %v1907_v32  ;;  %v5325_v55 = vand.u32 4294901760, %v5309_v34  ;;  %v5332_v29 = vpack.c.bf16 %v616_v59, %v604_v7 }
  0xd0   : > { %7646 = vst [vmem:[#allocation204_spill] sm:$0xff] %v5281_v1  ;;  %7647 = vst [vmem:[#allocation205_spill] sm:$0xff] %v5283_v14  ;;  %v622_v23 = vand.u32 4294901760, %v621_v63  ;;  %v1955_v22 = vsub.f32 %v4767_v39, %v7113_v44  ;;  %v7118_v63 = vand.u32 4294901760, %v4778_v46  ;;  %v7121_v59 = vand.u32 4294901760, %v4782_v48  ;;  %3505 = vmatprep.subr.bf16.mxu0 %v5157_v37 }
  0xd1   : > { %7648 = vst [vmem:[#allocation206_spill] sm:$0xff] %v5286_v38  ;;  %7652 = vst [vmem:[#allocation207_spill] sm:$0xff] %v5298_v51  ;;  %v1962_v54 = vand.u32 4294901760, %v1961_v12  ;;  %v571_v38 = vand.u32 4294901760, %v570_v18  ;;  %v610_v51 = vand.u32 4294901760, %v609_v56  ;;  %v576_v32 = vsub.f32 %v5309_v34, %v5325_v55 }
  0xd2   : > { %7653 = vst [vmem:[#allocation208_spill] sm:$0xff] %v5301_v30  ;;  %7654 = vst [vmem:[#allocation209_spill] sm:$0xff] %v5309_v34  ;;  %v7114_v30 = vand.u32 4294901760, %v4769_v40  ;;  %v7117_v12 = vand.u32 4294901760, %v4771_v41  ;;  %v1956_v7 = vand.u32 4294901760, %v1955_v22  ;;  %v7136_v15 = vand.u32 4294901760, %v4804_v3 }
  0xd3   : > { %7655 = vst [vmem:[#allocation210_spill] sm:$0xff] %v5322_v31  ;;  %7656 = vst [vmem:[#allocation211_spill] sm:$0xff] %v5325_v55  ;;  %572 = vmatprep.mubr.f32.mxu0 %v571_v38  ;;  %v5341_v18 = vpack.c.bf16 %v1962_v54, %v1950_v16  ;;  %v5343_v56 = vpack.c.bf16 %v622_v23, %v610_v51  ;;  %1918 = vmatprep.mubr.f32.mxu1 %v571_v38  ;;  %v7122_v55 = vand.u32 4294901760, %v4786_v50 }
  0xd4   : > { %v1967_v45 = vsub.f32 %v4769_v40, %v7114_v30  ;;  %v627_v30 = vsub.f32 %v4771_v41, %v7117_v12  ;;  %v639_v16 = vsub.f32 %v4778_v46, %v7118_v63  ;;  %v1973_v23 = vsub.f32 %v4782_v48, %v7121_v59  ;;  %3887 = vmatpush1.bf16.xpose.msra.mxu1 %v5145_v24  ;;  %v7682_v48 = vld [vmem:[#allocation188_spill] sm:$0xff] }
  0xd5   : > { %v7127_v51 = vand.u32 4294901760, %v4788_v52  ;;  %v7130_v38 = vand.u32 4294901760, %v4795_v60  ;;  %v5359_v22 = vand.u32 4294901760, %v576_v32  ;;  %v7131_v12 = vand.u32 4294901760, %v4797_v61  ;;  %3889 = vmatprep.subr.bf16.mxu1 %v5167_v33  ;;  %v7691_v40 = vld [vmem:[#allocation88_spill] sm:$0xff] }
  0xd6   : > { %v1968_v44 = vand.u32 4294901760, %v1967_v45  ;;  %v628_v54 = vand.u32 4294901760, %v627_v30  ;;  %v1985_v45 = vsub.f32 %v4786_v50, %v7122_v55  ;;  %v640_v63 = vand.u32 4294901760, %v639_v16  ;;  %3507 = vmatpush1.bf16.xpose.msra.mxu0 %v5171_v13 }
  0xd7   : > { %v1974_v19 = vand.u32 4294901760, %v1973_v23  ;;  %v633_v59 = vsub.f32 %v4788_v52, %v7127_v51  ;;  %v645_v32 = vsub.f32 %v4795_v60, %v7130_v38  ;;  %v1979_v55 = vsub.f32 %v4797_v61, %v7131_v12  ;;  %3509 = vmatprep.subr.bf16.mxu0 %v5191_v21 }
  0xd8   : > { %v1986_v30 = vand.u32 4294901760, %v1985_v45  ;;  %v7141_v16 = vand.u32 4294901760, %v4808_v5  ;;  %v5378_v23 = vpack.c.bf16 %v1968_v44, %v1956_v7  ;;  %v5380_v62 = vpack.c.bf16 %v640_v63, %v628_v54 }
  0xd9   : > { %v634_v51 = vand.u32 4294901760, %v633_v59  ;;  %v646_v45 = vand.u32 4294901760, %v645_v32  ;;  %v1991_v12 = vsub.f32 %v4804_v3, %v7136_v15  ;;  %v1980_v44 = vand.u32 4294901760, %v1979_v55  ;;  %v7659_v15 = vld [vmem:[#allocation46_spill] sm:$0xff] }
  0xda   : > { %v5384_v38 = vpack.c.bf16 %v1986_v30, %v1974_v19  ;;  %v651_v37 = vsub.f32 %v4808_v5, %v7141_v16  ;;  %v663_v63 = vsub.f32 %v4813_v9, %v7142_v28  ;;  %v7149_v59 = vand.u32 4294901760, %v4817_v11  ;;  %v7657_v19 = vld [vmem:[#allocation43_spill] sm:$0xff]  ;;  %v7658_v30 = vld [vmem:[#allocation45_spill] sm:$0xff]  ;;  %v7660_v28 = vld [vmem:[#allocation48_spill] sm:$0xff] }
  0xdb   : > { %v7152_v7 = vand.u32 4294901760, %v7657_v19  ;;  %v1992_v54 = vand.u32 4294901760, %v1991_v12  ;;  %v7153_v24 = vand.u32 4294901760, %v7658_v30  ;;  %v7154_v34 = vand.u32 4294901760, %v7659_v15  ;;  %v7665_v5 = vld [vmem:[#allocation167_spill] sm:$0xff] }
  0xdc   : > { %v652_v32 = vand.u32 4294901760, %v651_v37  ;;  %v664_v3 = vand.u32 4294901760, %v663_v63  ;;  %v1997_v16 = vsub.f32 %v4817_v11, %v7149_v59  ;;  %v7162_v33 = vand.u32 4294901760, %v7660_v28  ;;  %v7661_v63 = vld [vmem:[#allocation49_spill] sm:$0xff]  ;;  %3891 = vmatpush1.bf16.xpose.msra.mxu1 %v7665_v5 }
  0xdd   : > { %v2009_v55 = vsub.f32 %v7657_v19, %v7152_v7  ;;  %v5407_v61 = vpack.c.bf16 %v646_v45, %v634_v51  ;;  %v657_v37 = vsub.f32 %v7658_v30, %v7153_v24  ;;  %v669_v12 = vsub.f32 %v7659_v15, %v7154_v34  ;;  %v7662_v15 = vld [vmem:[#allocation50_spill] sm:$0xff] }
  0xde   : > { %v7165_v9 = vand.u32 4294901760, %v7661_v63  ;;  %v5417_v59 = vpack.c.bf16 %v1992_v54, %v1980_v44  ;;  %v1998_v11 = vand.u32 4294901760, %v1997_v16  ;;  %v2003_v51 = vsub.f32 %v7660_v28, %v7162_v33  ;;  %v7663_v16 = vld [vmem:[#allocation52_spill] sm:$0xff] }
  0xdf   : > { %v2010_v7 = vand.u32 4294901760, %v2009_v55  ;;  %v658_v45 = vand.u32 4294901760, %v657_v37  ;;  %v670_v24 = vand.u32 4294901760, %v669_v12  ;;  %v7168_v30 = vand.u32 4294901760, %v7662_v15  ;;  %v7664_v55 = vld [vmem:[#allocation53_spill] sm:$0xff]  ;;  %v7666_v12 = vld [vmem:[#allocation54_spill] sm:$0xff] }
  0xe0   : > { %v2015_v34 = vsub.f32 %v7661_v63, %v7165_v9  ;;  %v5427_v19 = vpack.c.bf16 %v664_v3, %v652_v32  ;;  %v7174_v54 = vand.u32 4294901760, %v7663_v16  ;;  %v7175_v13 = vand.u32 4294901760, %v7664_v55  ;;  %v7667_v63 = vld [vmem:[#allocation175_spill] sm:$0xff] }
  0xe1   : > { %v5429_v44 = vpack.c.bf16 %v2010_v7, %v1998_v11  ;;  %v2004_v33 = vand.u32 4294901760, %v2003_v51  ;;  %v675_v37 = vsub.f32 %v7662_v15, %v7168_v30  ;;  %v7177_v9 = vand.u32 4294901760, %v7666_v12  ;;  %3893 = vmatprep.subr.bf16.mxu1 %v7667_v63  ;;  %v7668_v7 = vld [vmem:[#allocation57_spill] sm:$0xff]  ;;  %v7669_v51 = vld [vmem:[#allocation58_spill] sm:$0xff]  ;;  %v7670_v63 = vld [vmem:[#allocation60_spill] sm:$0xff] }
  0xe2   : > { %v2016_v21 = vand.u32 4294901760, %v2015_v34  ;;  %v687_v3 = vsub.f32 %v7663_v16, %v7174_v54  ;;  %v2021_v11 = vsub.f32 %v7664_v55, %v7175_v13  ;;  %v7180_v32 = vand.u32 4294901760, %v7668_v7  ;;  %v7673_v16 = vld [vmem:[#allocation176_spill] sm:$0xff] }
  0xe3   : > { %v7184_v34 = vand.u32 4294901760, %v7669_v51  ;;  %v5447_v5 = vpack.c.bf16 %v670_v24, %v658_v45  ;;  %v676_v28 = vand.u32 4294901760, %v675_v37  ;;  %v2033_v30 = vsub.f32 %v7666_v12, %v7177_v9  ;;  %v7671_v45 = vld [vmem:[#allocation61_spill] sm:$0xff]  ;;  %v7672_v9 = vld [vmem:[#allocation62_spill] sm:$0xff]  ;;  %3511 = vmatpush1.bf16.xpose.msra.mxu0 %v7673_v16 }
  0xe4   : > { %v7185_v15 = vand.u32 4294901760, %v7670_v63  ;;  %v688_v60 = vand.u32 4294901760, %v687_v3  ;;  %v2022_v52 = vand.u32 4294901760, %v2021_v11  ;;  %v681_v54 = vsub.f32 %v7668_v7, %v7180_v32  ;;  %v7674_v7 = vld [vmem:[#allocation64_spill] sm:$0xff]  ;;  %3513 = vmatprep.subr.bf16.mxu0 %v5226_v36  ;;  %3895 = vmatpush1.bf16.xpose.msra.mxu1 %v5214_v20 }
  0xe5   : > { %v693_v13 = vsub.f32 %v7669_v51, %v7184_v34  ;;  %v2034_v55 = vand.u32 4294901760, %v2033_v30  ;;  %v7189_v37 = vand.u32 4294901760, %v7671_v45  ;;  %v7191_v12 = vand.u32 4294901760, %v7672_v9  ;;  %3897 = vmatprep.subr.bf16.mxu1 %v5236_v8 }
  0xe6   : > { %v2027_v24 = vsub.f32 %v7670_v63, %v7185_v15  ;;  %v5465_v3 = vpack.c.bf16 %v2016_v21, %v2004_v33  ;;  %v5467_v11 = vpack.c.bf16 %v688_v60, %v676_v28  ;;  %v682_v32 = vand.u32 4294901760, %v681_v54  ;;  %v7675_v28 = vld [vmem:[#allocation65_spill] sm:$0xff]  ;;  %v7676_v54 = vld [vmem:[#allocation66_spill] sm:$0xff] }
  0xe7   : > { %v7192_v50 = vand.u32 4294901760, %v7674_v7  ;;  %v5471_v30 = vpack.c.bf16 %v2034_v55, %v2022_v52  ;;  %v694_v34 = vand.u32 4294901760, %v693_v13  ;;  %v2039_v15 = vsub.f32 %v7671_v45, %v7189_v37  ;;  %v7677_v55 = vld [vmem:[#allocation69_spill] sm:$0xff]  ;;  %v7678_v37 = vld [vmem:[#allocation70_spill] sm:$0xff] }
  0xe8   : > { %v699_v16 = vsub.f32 %v7672_v9, %v7191_v12  ;;  %v2028_v33 = vand.u32 4294901760, %v2027_v24  ;;  %v7200_v21 = vand.u32 4294901760, %v7675_v28  ;;  %v7202_v36 = vand.u32 4294901760, %v7676_v54 }
  0xe9   : > { %v711_v60 = vsub.f32 %v7674_v7, %v7192_v50  ;;  %v2040_v52 = vand.u32 4294901760, %v2039_v15  ;;  %v7203_v63 = vand.u32 4294901760, %v7677_v55  ;;  %v7208_v45 = vand.u32 4294901760, %v7678_v37  ;;  %v7679_v7 = vld [vmem:[#allocation72_spill] sm:$0xff] }
  0xea   : > { %v700_v13 = vand.u32 4294901760, %v699_v16  ;;  %v2045_v24 = vsub.f32 %v7675_v28, %v7200_v21  ;;  %v2057_v50 = vsub.f32 %v7676_v54, %v7202_v36  ;;  %v7211_v9 = vand.u32 4294901760, %v7679_v7 }
  0xeb   : > { %v712_v12 = vand.u32 4294901760, %v711_v60  ;;  %v5495_v20 = vpack.c.bf16 %v694_v34, %v682_v32  ;;  %v705_v15 = vsub.f32 %v7677_v55, %v7203_v63  ;;  %v717_v16 = vsub.f32 %v7678_v37, %v7208_v45  ;;  %v7680_v60 = vld [vmem:[#allocation73_spill] sm:$0xff]  ;;  %v7681_v55 = vld [vmem:[#allocation74_spill] sm:$0xff]  ;;  %3515 = vmatpush1.bf16.xpose.msra.mxu0 %v7682_v48 }
  0xec   : > { %v7210_v8 = vand.u32 4294901760, %v7680_v60  ;;  %v5504_v51 = vpack.c.bf16 %v2040_v52, %v2028_v33  ;;  %v2046_v21 = vand.u32 4294901760, %v2045_v24  ;;  %v2058_v28 = vand.u32 4294901760, %v2057_v50  ;;  %v7683_v52 = vld [vmem:[#allocation76_spill] sm:$0xff]  ;;  %v7684_v24 = vld [vmem:[#allocation77_spill] sm:$0xff]  ;;  %3517 = vmatprep.subr.bf16.mxu0 %v5257_v43  ;;  %v7687_v48 = vld [vmem:[#allocation82_spill] sm:$0xff]  ;;  %3899 = vmatpush1.bf16.xpose.msra.mxu1 %v5248_v42 }
  0xed   : > { %v2051_v36 = vsub.f32 %v7679_v7, %v7211_v9  ;;  %v706_v32 = vand.u32 4294901760, %v705_v15  ;;  %v718_v34 = vand.u32 4294901760, %v717_v16  ;;  %v7215_v54 = vand.u32 4294901760, %v7681_v55  ;;  %v7685_v9 = vld [vmem:[#allocation78_spill] sm:$0xff]  ;;  %v7688_v7 = vld [vmem:[#allocation84_spill] sm:$0xff]  ;;  %3901 = vmatprep.subr.bf16.mxu1 %v5272_v53 }
  0xee   : > { %v2063_v63 = vsub.f32 %v7680_v60, %v7210_v8  ;;  %v5514_v45 = vpack.c.bf16 %v712_v12, %v700_v13  ;;  %v5516_v33 = vpack.c.bf16 %v2058_v28, %v2046_v21  ;;  %v7218_v50 = vand.u32 4294901760, %v7683_v52  ;;  %v7686_v21 = vld [vmem:[#allocation81_spill] sm:$0xff] }
  0xef   : > { %v7220_v37 = vand.u32 4294901760, %v7684_v24  ;;  %v2052_v15 = vand.u32 4294901760, %v2051_v36  ;;  %v723_v8 = vsub.f32 %v7681_v55, %v7215_v54  ;;  %v7221_v60 = vand.u32 4294901760, %v7685_v9 }
  0xf0   : > { %v2064_v16 = vand.u32 4294901760, %v2063_v63  ;;  %v735_v12 = vsub.f32 %v7683_v52, %v7218_v50  ;;  %v7230_v13 = vand.u32 4294901760, %v7686_v21  ;;  %v7236_v43 = vand.u32 4294901760, %v7687_v48 }
  0xf1   : > { %v2069_v28 = vsub.f32 %v7684_v24, %v7220_v37  ;;  %v5534_v36 = vpack.c.bf16 %v718_v34, %v706_v32  ;;  %v724_v63 = vand.u32 4294901760, %v723_v8  ;;  %v2081_v54 = vsub.f32 %v7685_v9, %v7221_v60  ;;  %v7689_v60 = vld [vmem:[#allocation85_spill] sm:$0xff]  ;;  %v7690_v9 = vld [vmem:[#allocation86_spill] sm:$0xff] }
  0xf2   : > { %v7234_v55 = vand.u32 4294901760, %v7688_v7  ;;  %v736_v50 = vand.u32 4294901760, %v735_v12  ;;  %v729_v37 = vsub.f32 %v7686_v21, %v7230_v13  ;;  %v741_v32 = vsub.f32 %v7687_v48, %v7236_v43 }
  0xf3   : > { %v2070_v52 = vand.u32 4294901760, %v2069_v28  ;;  %v2082_v34 = vand.u32 4294901760, %v2081_v54  ;;  %v7235_v42 = vand.u32 4294901760, %v7689_v60  ;;  %v7239_v24 = vand.u32 4294901760, %v7690_v9  ;;  %3519 = vmatpush1.bf16.xpose.msra.mxu0 %v5274_v2  ;;  %v7696_v2 = vld [vmem:[#allocation96_spill] sm:$0xff] }
  0xf4   : > { %v2075_v8 = vsub.f32 %v7688_v7, %v7234_v55  ;;  %v5552_v53 = vpack.c.bf16 %v2064_v16, %v2052_v15  ;;  %v5554_v12 = vpack.c.bf16 %v736_v50, %v724_v63  ;;  %v730_v28 = vand.u32 4294901760, %v729_v37  ;;  %v7692_v50 = vld [vmem:[#allocation89_spill] sm:$0xff]  ;;  %3521 = vmatprep.subr.bf16.mxu0 %v5332_v29  ;;  %3903 = vmatpush1.bf16.xpose.msra.mxu1 %v5322_v31 }
  0xf5   : > { %v7240_v13 = vand.u32 4294901760, %v7691_v40  ;;  %v5557_v21 = vpack.c.bf16 %v2082_v34, %v2070_v52  ;;  %v742_v39 = vand.u32 4294901760, %v741_v32  ;;  %v2087_v54 = vsub.f32 %v7689_v60, %v7235_v42  ;;  %v7693_v52 = vld [vmem:[#allocation90_spill] sm:$0xff]  ;;  %v7694_v42 = vld [vmem:[#allocation93_spill] sm:$0xff]  ;;  %3905 = vmatprep.subr.bf16.mxu1 %v5341_v18  ;;  %v7700_v18 = vld [vmem:[#allocation100_spill] sm:$0xff] }
  0xf6   : > { %v747_v55 = vsub.f32 %v7690_v9, %v7239_v24  ;;  %v2076_v15 = vand.u32 4294901760, %v2075_v8  ;;  %v7244_v16 = vand.u32 4294901760, %v7692_v50  ;;  %v7246_v63 = vand.u32 4294901760, %v7693_v52  ;;  %v7695_v60 = vld [vmem:[#allocation94_spill] sm:$0xff] }
  0xf7   : > { %v759_v37 = vsub.f32 %v7691_v40, %v7240_v13  ;;  %v2088_v32 = vand.u32 4294901760, %v2087_v54  ;;  %v7250_v43 = vand.u32 4294901760, %v7694_v42  ;;  %v7252_v7 = vand.u32 4294901760, %v7695_v60 }
  0xf8   : > { %v748_v34 = vand.u32 4294901760, %v747_v55  ;;  %v2093_v8 = vsub.f32 %v7692_v50, %v7244_v16  ;;  %v2105_v13 = vsub.f32 %v7693_v52, %v7246_v63  ;;  %v5582_v29 = vpack.c.bf16 %v742_v39, %v730_v28 }
  0xf9   : > { %v760_v24 = vand.u32 4294901760, %v759_v37  ;;  %v753_v55 = vsub.f32 %v7694_v42, %v7250_v43  ;;  %v765_v54 = vsub.f32 %v7695_v60, %v7252_v7  ;;  %v7697_v37 = vld [vmem:[#allocation97_spill] sm:$0xff]  ;;  %v5592_v50 = vpack.c.bf16 %v2088_v32, %v2076_v15  ;;  %v7699_v42 = vld [vmem:[#allocation98_spill] sm:$0xff] }
  0xfa   : > { %v7255_v16 = vand.u32 4294901760, %v7697_v37  ;;  %v2094_v63 = vand.u32 4294901760, %v2093_v8  ;;  %v2106_v40 = vand.u32 4294901760, %v2105_v13  ;;  %v7698_v31 = vand.u32 4294901760, %v7696_v2  ;;  %v7701_v32 = vld [vmem:[#allocation101_spill] sm:$0xff]  ;;  %578 = vmatmul.mubr.f32.vlgmr.msra.gmra.mrb[0].mxu0 %v5359_v22 }
  0xfb   : > { %v754_v28 = vand.u32 4294901760, %v753_v55  ;;  %v766_v52 = vand.u32 4294901760, %v765_v54  ;;  %v7257_v7 = vand.u32 4294901760, %v7699_v42  ;;  %v5601_v60 = vpack.c.bf16 %v760_v24, %v748_v34  ;;  %v7702_v54 = vld [vmem:[#allocation102_spill] sm:$0xff]  ;;  %3523 = vmatpush1.bf16.xpose.msra.mxu0 %v5343_v56  ;;  %1924 = vmatmul.mubr.f32.vlgmr.msra.gmra.mrb[0].mxu1 %v5359_v22 }
  0xfc   : > { %v2099_v39 = vsub.f32 %v7696_v2, %v7698_v31  ;;  %v2111_v43 = vsub.f32 %v7697_v37, %v7255_v16  ;;  %v5603_v9 = vpack.c.bf16 %v2106_v40, %v2094_v63  ;;  %v7260_v15 = vand.u32 4294901760, %v7700_v18  ;;  %v7703_v63 = vld [vmem:[#allocation105_spill] sm:$0xff]  ;;  %3525 = vmatprep.subr.bf16.mxu0 %v5380_v62  ;;  %v7705_v2 = vld [vmem:[#allocation108_spill] sm:$0xff]  ;;  %3907 = vmatpush1.bf16.xpose.msra.mxu1 %v5378_v23  ;;  %v7707_v22 = vld [vmem:[#allocation110_spill] sm:$0xff] }
  0xfd   : > { %v7262_v13 = vand.u32 4294901760, %v7701_v32  ;;  %v771_v55 = vsub.f32 %v7699_v42, %v7257_v7  ;;  %v7263_v16 = vand.u32 4294901760, %v7702_v54  ;;  %v7264_v34 = vand.u32 4294901760, %v7703_v63  ;;  %3909 = vmatprep.subr.bf16.mxu1 %v5384_v38 }
  0xfe   : > { %v2100_v8 = vand.u32 4294901760, %v2099_v39  ;;  %v2112_v31 = vand.u32 4294901760, %v2111_v43  ;;  %v783_v40 = vsub.f32 %v7700_v18, %v7260_v15  ;;  %v7704_v39 = vld [vmem:[#allocation106_spill] sm:$0xff]  ;;  %v5622_v37 = vpack.c.bf16 %v766_v52, %v754_v28 }
  0xff   : > { %v2117_v24 = vsub.f32 %v7701_v32, %v7262_v13  ;;  %v7267_v43 = vand.u32 4294901760, %v7704_v39  ;;  %v772_v7 = vand.u32 4294901760, %v771_v55  ;;  %v2129_v56 = vsub.f32 %v7702_v54, %v7263_v16  ;;  %v7706_v55 = vld [vmem:[#allocation109_spill] sm:$0xff]  ;;  %v7708_v54 = vld [vmem:[#allocation112_spill] sm:$0xff]  ;;  %v7712_v32 = vld [vmem:[#allocation118_spill] sm:$0xff] }
 0x100   : > { %v7269_v42 = vand.u32 4294901760, %v7705_v2  ;;  %v784_v15 = vand.u32 4294901760, %v783_v40  ;;  %v777_v13 = vsub.f32 %v7703_v63, %v7264_v34  ;;  %v7273_v16 = vand.u32 4294901760, %v7706_v55 }
 0x101   : > { %v2118_v18 = vand.u32 4294901760, %v2117_v24  ;;  %v789_v62 = vsub.f32 %v7704_v39, %v7267_v43  ;;  %v2130_v52 = vand.u32 4294901760, %v2129_v56  ;;  %v7275_v40 = vand.u32 4294901760, %v7707_v22 }
 0x102   : > { %v2123_v28 = vsub.f32 %v7705_v2, %v7269_v42  ;;  %v5642_v24 = vpack.c.bf16 %v2112_v31, %v2100_v8  ;;  %v5644_v34 = vpack.c.bf16 %v784_v15, %v772_v7  ;;  %v778_v63 = vand.u32 4294901760, %v777_v13  ;;  %v7709_v7 = vld [vmem:[#allocation113_spill] sm:$0xff]  ;;  %v7710_v13 = vld [vmem:[#allocation114_spill] sm:$0xff] }
 0x103   : > { %v7274_v43 = vand.u32 4294901760, %v7708_v54  ;;  %v5647_v39 = vpack.c.bf16 %v2130_v52, %v2118_v18  ;;  %v790_v23 = vand.u32 4294901760, %v789_v62  ;;  %v2135_v56 = vsub.f32 %v7706_v55, %v7273_v16  ;;  %v7711_v62 = vld [vmem:[#allocation117_spill] sm:$0xff]  ;;  %3527 = vmatpush1.bf16.xpose.msra.mxu0 %v5407_v61 }
 0x104   : > { %v795_v42 = vsub.f32 %v7707_v22, %v7275_v40  ;;  %v2124_v2 = vand.u32 4294901760, %v2123_v28  ;;  %v7277_v15 = vand.u32 4294901760, %v7709_v7  ;;  %v7280_v8 = vand.u32 4294901760, %v7710_v13  ;;  %v7713_v40 = vld [vmem:[#allocation120_spill] sm:$0xff]  ;;  %3529 = vmatprep.subr.bf16.mxu0 %v5427_v19  ;;  %3911 = vmatpush1.bf16.xpose.msra.mxu1 %v5417_v59 }
 0x105   : > { %v807_v38 = vsub.f32 %v7708_v54, %v7274_v43  ;;  %v2136_v18 = vand.u32 4294901760, %v2135_v56  ;;  %v7281_v52 = vand.u32 4294901760, %v7711_v62  ;;  %v7282_v48 = vand.u32 4294901760, %v7712_v32  ;;  %3913 = vmatprep.subr.bf16.mxu1 %v5429_v44 }
 0x106   : > { %v796_v31 = vand.u32 4294901760, %v795_v42  ;;  %v2141_v28 = vsub.f32 %v7709_v7, %v7277_v15  ;;  %v2153_v43 = vsub.f32 %v7710_v13, %v7280_v8  ;;  %v7284_v55 = vand.u32 4294901760, %v7713_v40 }
 0x107   : > { %v808_v16 = vand.u32 4294901760, %v807_v38  ;;  %v5671_v42 = vpack.c.bf16 %v790_v23, %v778_v63  ;;  %v801_v56 = vsub.f32 %v7711_v62, %v7281_v52  ;;  %v813_v61 = vsub.f32 %v7712_v32, %v7282_v48  ;;  %v7714_v38 = vld [vmem:[#allocation121_spill] sm:$0xff]  ;;  %v7715_v48 = vld [vmem:[#allocation122_spill] sm:$0xff]  ;;  %v7721_v62 = vld [vmem:[#allocation132_spill] sm:$0xff] }
 0x108   : > { %v7286_v15 = vand.u32 4294901760, %v7714_v38  ;;  %v5680_v7 = vpack.c.bf16 %v2136_v18, %v2124_v2  ;;  %v2142_v54 = vand.u32 4294901760, %v2141_v28  ;;  %v2154_v8 = vand.u32 4294901760, %v2153_v43  ;;  %v7716_v18 = vld [vmem:[#allocation124_spill] sm:$0xff] }
 0x109   : > { %v5685_v19 = vsub.f32 %v7713_v40, %v7284_v55  ;;  %v802_v63 = vand.u32 4294901760, %v801_v56  ;;  %v814_v23 = vand.u32 4294901760, %v813_v61  ;;  %v7288_v32 = vand.u32 4294901760, %v7715_v48  ;;  %v7717_v55 = vld [vmem:[#allocation125_spill] sm:$0xff] }
 0x10a   : > { %v5691_v52 = vsub.f32 %v7714_v38, %v7286_v15  ;;  %v5695_v2 = vpack.c.bf16 %v808_v16, %v796_v31  ;;  %v5697_v43 = vpack.c.bf16 %v2154_v8, %v2142_v54  ;;  %v7291_v28 = vand.u32 4294901760, %v7716_v18  ;;  %v7718_v15 = vld [vmem:[#allocation126_spill] sm:$0xff]  ;;  %v7719_v54 = vld [vmem:[#allocation129_spill] sm:$0xff] }
 0x10b   : > { %v7293_v40 = vand.u32 4294901760, %v7717_v55  ;;  %v5701_v59 = vpack.c.bf16 %v814_v23, %v802_v63  ;;  %v819_v61 = vsub.f32 %v7715_v48, %v7288_v32  ;;  %v7296_v38 = vand.u32 4294901760, %v7718_v15  ;;  %v7720_v31 = vld [vmem:[#allocation130_spill] sm:$0xff]  ;;  %3531 = vmatpush1.bf16.xpose.msra.mxu0 %v5447_v5  ;;  %v7722_v23 = vld [vmem:[#allocation133_spill] sm:$0xff] }
 0x10c   : > { %v831_v44 = vsub.f32 %v7716_v18, %v7291_v28  ;;  %v7303_v8 = vand.u32 4294901760, %v7719_v54  ;;  %v7306_v63 = vand.u32 4294901760, %v7720_v31  ;;  %v7307_v13 = vand.u32 4294901760, %v7721_v62  ;;  %3533 = vmatprep.subr.bf16.mxu0 %v5467_v11  ;;  %v7723_v5 = vld [vmem:[#allocation134_spill] sm:$0xff]  ;;  %3915 = vmatpush1.bf16.xpose.msra.mxu1 %v5465_v3  ;;  %v7725_v3 = vld [vmem:[#allocation137_spill] sm:$0xff] }
 0x10d   : > { %v2165_v16 = vsub.f32 %v7717_v55, %v7293_v40  ;;  %v820_v56 = vand.u32 4294901760, %v819_v61  ;;  %v2177_v32 = vsub.f32 %v7718_v15, %v7296_v38  ;;  %v7309_v41 = vand.u32 4294901760, %v7722_v23  ;;  %3917 = vmatprep.subr.bf16.mxu1 %v5471_v30  ;;  %v7729_v30 = vld [vmem:[#allocation144_spill] sm:$0xff] }
 0x10e   : > { %v832_v28 = vand.u32 4294901760, %v831_v44  ;;  %v825_v40 = vsub.f32 %v7719_v54, %v7303_v8  ;;  %v837_v46 = vsub.f32 %v7720_v31, %v7306_v63  ;;  %v2171_v38 = vsub.f32 %v7721_v62, %v7307_v13  ;;  %v7724_v8 = vld [vmem:[#allocation136_spill] sm:$0xff]  ;;  %v7727_v62 = vld [vmem:[#allocation141_spill] sm:$0xff] }
 0x10f   : > { %v2166_v22 = vand.u32 4294901760, %v2165_v16  ;;  %v2178_v61 = vand.u32 4294901760, %v2177_v32  ;;  %v7314_v44 = vand.u32 4294901760, %v7723_v5  ;;  %v7313_v17 = vand.u32 4294901760, %v7724_v8 }
 0x110   : > { %v5734_v16 = vpack.c.bf16 %v832_v28, %v820_v56  ;;  %v826_v27 = vand.u32 4294901760, %v825_v40  ;;  %v838_v25 = vand.u32 4294901760, %v837_v46  ;;  %v2172_v11 = vand.u32 4294901760, %v2171_v38  ;;  %v7726_v40 = vld [vmem:[#allocation138_spill] sm:$0xff] }
 0x111   : > { %v5738_v63 = vpack.c.bf16 %v2178_v61, %v2166_v22  ;;  %v2183_v32 = vsub.f32 %v7722_v23, %v7309_v41  ;;  %v843_v13 = vsub.f32 %v7723_v5, %v7314_v44  ;;  %v855_v46 = vsub.f32 %v7724_v8, %v7313_v17  ;;  %v7728_v23 = vld [vmem:[#allocation142_spill] sm:$0xff] }
 0x112   : > { %v5747_v28 = vpack.c.bf16 %v838_v25, %v826_v27  ;;  %v7316_v22 = vand.u32 4294901760, %v7725_v3  ;;  %v7318_v38 = vand.u32 4294901760, %v7726_v40  ;;  %v7319_v41 = vand.u32 4294901760, %v7727_v62 }
 0x113   : > { %v2184_v56 = vand.u32 4294901760, %v2183_v32  ;;  %v844_v61 = vand.u32 4294901760, %v843_v13  ;;  %v7320_v31 = vand.u32 4294901760, %v7728_v23  ;;  %v856_v54 = vand.u32 4294901760, %v855_v46  ;;  %v7730_v46 = vld [vmem:[#allocation145_spill] sm:$0xff]  ;;  %3535 = vmatpush1.bf16.xpose.msra.mxu0 %v5495_v20 }
 0x114   : > { %v2189_v25 = vsub.f32 %v7725_v3, %v7316_v22  ;;  %v2201_v27 = vsub.f32 %v7726_v40, %v7318_v38  ;;  %v7324_v17 = vand.u32 4294901760, %v7729_v30  ;;  %v849_v13 = vsub.f32 %v7727_v62, %v7319_v41  ;;  %3537 = vmatprep.subr.bf16.mxu0 %v5514_v45  ;;  %3919 = vmatpush1.bf16.xpose.msra.mxu1 %v5504_v51  ;;  %v7736_v51 = vld [vmem:[#allocation153_spill] sm:$0xff] }
 0x115   : > { %v5763_v44 = vpack.c.bf16 %v2184_v56, %v2172_v11  ;;  %v861_v32 = vsub.f32 %v7728_v23, %v7320_v31  ;;  %v7325_v8 = vand.u32 4294901760, %v7730_v46  ;;  %v5773_v22 = vpack.c.bf16 %v856_v54, %v844_v61  ;;  %v7731_v23 = vld [vmem:[#allocation146_spill] sm:$0xff]  ;;  %v7732_v54 = vld [vmem:[#allocation148_spill] sm:$0xff]  ;;  %3921 = vmatprep.subr.bf16.mxu1 %v5516_v33 }
 0x116   : > { %v2190_v3 = vand.u32 4294901760, %v2189_v25  ;;  %v2202_v38 = vand.u32 4294901760, %v2201_v27  ;;  %v2195_v11 = vsub.f32 %v7729_v30, %v7324_v17  ;;  %v850_v56 = vand.u32 4294901760, %v849_v13  ;;  %v7733_v25 = vld [vmem:[#allocation149_spill] sm:$0xff]  ;;  %v7738_v33 = vld [vmem:[#allocation156_spill] sm:$0xff] }
 0x117   : > { %v862_v41 = vand.u32 4294901760, %v861_v32  ;;  %v2207_v31 = vsub.f32 %v7730_v46, %v7325_v8  ;;  %v7327_v62 = vand.u32 4294901760, %v7731_v23  ;;  %v7330_v61 = vand.u32 4294901760, %v7732_v54  ;;  %v7735_v32 = vld [vmem:[#allocation150_spill] sm:$0xff] }
 0x118   : > { %v5783_v40 = vpack.c.bf16 %v2202_v38, %v2190_v3  ;;  %v2196_v20 = vand.u32 4294901760, %v2195_v11  ;;  %v7331_v27 = vand.u32 4294901760, %v7733_v25  ;;  %v7333_v8 = vand.u32 4294901760, %v7735_v32  ;;  %v7737_v11 = vld [vmem:[#allocation154_spill] sm:$0xff] }
 0x119   : > { %v5788_v17 = vpack.c.bf16 %v862_v41, %v850_v56  ;;  %v2208_v45 = vand.u32 4294901760, %v2207_v31  ;;  %v867_v13 = vsub.f32 %v7731_v23, %v7327_v62  ;;  %v879_v3 = vsub.f32 %v7732_v54, %v7330_v61 }
 0x11a   : > { %v2213_v38 = vsub.f32 %v7733_v25, %v7331_v27  ;;  %v7336_v41 = vand.u32 4294901760, %v7736_v51  ;;  %v7338_v31 = vand.u32 4294901760, %v7737_v11  ;;  %v2225_v62 = vsub.f32 %v7735_v32, %v7333_v8  ;;  %v7740_v8 = vld [vmem:[#allocation158_spill] sm:$0xff] }
 0x11b   : > { %7734 = vst [vmem:[#allocation122_spill] sm:$0xff] %v5788_v17  ;;  %v5803_v56 = vpack.c.bf16 %v2208_v45, %v2196_v20  ;;  %v868_v46 = vand.u32 4294901760, %v867_v13  ;;  %v7339_v23 = vand.u32 4294901760, %v7738_v33  ;;  %v880_v30 = vand.u32 4294901760, %v879_v3  ;;  %v7739_v45 = vld [vmem:[#allocation157_spill] sm:$0xff]  ;;  %3539 = vmatpush1.bf16.xpose.msra.mxu0 %v5534_v36 }
 0x11c   : > { %v2214_v17 = vand.u32 4294901760, %v2213_v38  ;;  %v873_v61 = vsub.f32 %v7736_v51, %v7336_v41  ;;  %v885_v27 = vsub.f32 %v7737_v11, %v7338_v31  ;;  %v2226_v25 = vand.u32 4294901760, %v2225_v62  ;;  %v7741_v41 = vld [vmem:[#allocation160_spill] sm:$0xff]  ;;  %3541 = vmatprep.subr.bf16.mxu0 %v5554_v12  ;;  %v7743_v12 = vld [vmem:[#allocation162_spill] sm:$0xff]  ;;  %3923 = vmatpush1.bf16.xpose.msra.mxu1 %v5552_v53 }
 0x11d   : > { %v2219_v20 = vsub.f32 %v7738_v33, %v7339_v23  ;;  %v7341_v13 = vand.u32 4294901760, %v7739_v45  ;;  %v7345_v32 = vand.u32 4294901760, %v7740_v8  ;;  %v5821_v3 = vpack.c.bf16 %v880_v30, %v868_v46  ;;  %v7742_v46 = vld [vmem:[#allocation161_spill] sm:$0xff]  ;;  %3925 = vmatprep.subr.bf16.mxu1 %v5557_v21 }
 0x11e   : > { %v874_v38 = vand.u32 4294901760, %v873_v61  ;;  %v886_v54 = vand.u32 4294901760, %v885_v27  ;;  %v7344_v51 = vand.u32 4294901760, %v7741_v41  ;;  %v5825_v31 = vpack.c.bf16 %v2226_v25, %v2214_v17 }
 0x11f   : > { %v2220_v62 = vand.u32 4294901760, %v2219_v20  ;;  %v2231_v23 = vsub.f32 %v7739_v45, %v7341_v13  ;;  %v891_v33 = vsub.f32 %v7740_v8, %v7345_v32  ;;  %v7348_v61 = vand.u32 4294901760, %v7742_v46  ;;  %v7744_v20 = vld [vmem:[#allocation165_spill] sm:$0xff]  ;;  %v7745_v45 = vld [vmem:[#allocation166_spill] sm:$0xff]  ;;  %v7746_v32 = vld [vmem:[#allocation168_spill] sm:$0xff] }
 0x120   : > { %v5833_v36 = vpack.c.bf16 %v886_v54, %v874_v38  ;;  %v903_v30 = vsub.f32 %v7741_v41, %v7344_v51  ;;  %v7350_v17 = vand.u32 4294901760, %v7743_v12  ;;  %v7351_v13 = vand.u32 4294901760, %v7744_v20 }
 0x121   : > { %v2232_v25 = vand.u32 4294901760, %v2231_v23  ;;  %v892_v27 = vand.u32 4294901760, %v891_v33  ;;  %v7354_v11 = vand.u32 4294901760, %v7745_v45  ;;  %v2237_v38 = vsub.f32 %v7742_v46, %v7348_v61  ;;  %v7747_v33 = vld [vmem:[#allocation169_spill] sm:$0xff] }
 0x122   : > { %v904_v54 = vand.u32 4294901760, %v903_v30  ;;  %v2249_v51 = vsub.f32 %v7743_v12, %v7350_v17  ;;  %v7356_v41 = vand.u32 4294901760, %v7746_v32  ;;  %v897_v23 = vsub.f32 %v7744_v20, %v7351_v13  ;;  %v7748_v20 = vld [vmem:[#allocation170_spill] sm:$0xff] }
 0x123   : > { %v5851_v53 = vpack.c.bf16 %v2232_v25, %v2220_v62  ;;  %v909_v21 = vsub.f32 %v7745_v45, %v7354_v11  ;;  %v7357_v30 = vand.u32 4294901760, %v7747_v33  ;;  %v2238_v61 = vand.u32 4294901760, %v2237_v38  ;;  %3543 = vmatpush1.bf16.xpose.msra.mxu0 %v5582_v29 }
 0x124   : > { %v5860_v8 = vpack.c.bf16 %v904_v54, %v892_v27  ;;  %v2250_v46 = vand.u32 4294901760, %v2249_v51  ;;  %v2243_v17 = vsub.f32 %v7746_v32, %v7356_v41  ;;  %v898_v62 = vand.u32 4294901760, %v897_v23  ;;  %v7749_v54 = vld [vmem:[#allocation172_spill] sm:$0xff]  ;;  %v7750_v51 = vld [vmem:[#allocation173_spill] sm:$0xff]  ;;  %3545 = vmatprep.subr.bf16.mxu0 %v5601_v60  ;;  %v7754_v60 = vld [vmem:[#allocation178_spill] sm:$0xff]  ;;  %3927 = vmatpush1.bf16.xpose.msra.mxu1 %v5592_v50 }
 0x125   : > { %v910_v25 = vand.u32 4294901760, %v909_v21  ;;  %v2255_v13 = vsub.f32 %v7747_v33, %v7357_v30  ;;  %v7359_v12 = vand.u32 4294901760, %v7748_v20  ;;  %v7362_v38 = vand.u32 4294901760, %v7749_v54  ;;  %v7752_v30 = vld [vmem:[#allocation174_spill] sm:$0xff]  ;;  %3929 = vmatprep.subr.bf16.mxu1 %v5603_v9 }
 0x126   : > { %v5870_v11 = vpack.c.bf16 %v2250_v46, %v2238_v61  ;;  %v2244_v27 = vand.u32 4294901760, %v2243_v17  ;;  %v7364_v45 = vand.u32 4294901760, %v7750_v51  ;;  %v7365_v33 = vand.u32 4294901760, %v7752_v30  ;;  %v7753_v61 = vld [vmem:[#allocation177_spill] sm:$0xff] }
 0x127   : > { %v5875_v41 = vpack.c.bf16 %v910_v25, %v898_v62  ;;  %v2256_v23 = vand.u32 4294901760, %v2255_v13  ;;  %v915_v21 = vsub.f32 %v7748_v20, %v7359_v12  ;;  %v927_v29 = vsub.f32 %v7749_v54, %v7362_v38  ;;  %v7756_v20 = vld [vmem:[#allocation180_spill] sm:$0xff] }
 0x128   : > { %v2261_v46 = vsub.f32 %v7750_v51, %v7364_v45  ;;  %v7368_v17 = vand.u32 4294901760, %v7753_v61  ;;  %v7371_v62 = vand.u32 4294901760, %v7754_v60  ;;  %v2273_v12 = vsub.f32 %v7752_v30, %v7365_v33  ;;  %v7758_v30 = vld [vmem:[#allocation182_spill] sm:$0xff] }
 0x129   : > { %7751 = vst [vmem:[#allocation124_spill] sm:$0xff] %v5875_v41  ;;  %v5890_v13 = vpack.c.bf16 %v2256_v23, %v2244_v27  ;;  %v916_v25 = vand.u32 4294901760, %v915_v21  ;;  %v7370_v32 = vand.u32 4294901760, %v7756_v20  ;;  %v928_v38 = vand.u32 4294901760, %v927_v29  ;;  %v7757_v21 = vld [vmem:[#allocation181_spill] sm:$0xff] }
 0x12a   : > { %v2262_v54 = vand.u32 4294901760, %v2261_v46  ;;  %v921_v45 = vsub.f32 %v7753_v61, %v7368_v17  ;;  %v933_v50 = vsub.f32 %v7754_v60, %v7371_v62  ;;  %v2274_v27 = vand.u32 4294901760, %v2273_v12 }
 0x12b   : > { %7755 = vst [vmem:[#allocation125_spill] sm:$0xff] %v5890_v13  ;;  %v2267_v23 = vsub.f32 %v7756_v20, %v7370_v32  ;;  %v7372_v33 = vand.u32 4294901760, %v7757_v21  ;;  %v7373_v51 = vand.u32 4294901760, %v7758_v30  ;;  %v5908_v9 = vpack.c.bf16 %v928_v38, %v916_v25  ;;  %v7759_v13 = vld [vmem:[#allocation184_spill] sm:$0xff]  ;;  %3547 = vmatpush1.bf16.xpose.msra.mxu0 %v5622_v37  ;;  %v7760_v38 = vld [vmem:[#allocation185_spill] sm:$0xff]  ;;  %v7761_v25 = vld [vmem:[#allocation186_spill] sm:$0xff] }
 0x12c   : > { %v922_v29 = vand.u32 4294901760, %v921_v45  ;;  %v934_v46 = vand.u32 4294901760, %v933_v50  ;;  %v7377_v41 = vand.u32 4294901760, %v7759_v13  ;;  %v5911_v17 = vpack.c.bf16 %v2274_v27, %v2262_v54  ;;  %3549 = vmatprep.subr.bf16.mxu0 %v5644_v34  ;;  %3931 = vmatpush1.bf16.xpose.msra.mxu1 %v5642_v24 }
 0x12d   : > { %v2268_v61 = vand.u32 4294901760, %v2267_v23  ;;  %v2279_v12 = vsub.f32 %v7757_v21, %v7372_v33  ;;  %v939_v32 = vsub.f32 %v7758_v30, %v7373_v51  ;;  %v7375_v54 = vand.u32 4294901760, %v7760_v38  ;;  %3933 = vmatprep.subr.bf16.mxu1 %v5647_v39 }
 0x12e   : > { %v5920_v62 = vpack.c.bf16 %v934_v46, %v922_v29  ;;  %v951_v45 = vsub.f32 %v7759_v13, %v7377_v41  ;;  %v7376_v50 = vand.u32 4294901760, %v7761_v25  ;;  %v7378_v33 = vand.u32 4294901760, %v5241_v35 }
 0x12f   : > { %v2280_v27 = vand.u32 4294901760, %v2279_v12  ;;  %v940_v23 = vand.u32 4294901760, %v939_v32  ;;  %v7379_v51 = vand.u32 4294901760, %v5243_v6  ;;  %v2285_v37 = vsub.f32 %v7760_v38, %v7375_v54 }
 0x130   : > { %v952_v30 = vand.u32 4294901760, %v951_v45  ;;  %v2297_v29 = vsub.f32 %v7761_v25, %v7376_v50  ;;  %v7385_v46 = vand.u32 4294901760, %v5250_v47  ;;  %v945_v32 = vsub.f32 %v5241_v35, %v7378_v33 }
 0x131   : > { %v5938_v34 = vpack.c.bf16 %v2280_v27, %v2268_v61  ;;  %v957_v12 = vsub.f32 %v5243_v6, %v7379_v51  ;;  %v7384_v45 = vand.u32 4294901760, %v5252_v4  ;;  %v2286_v50 = vand.u32 4294901760, %v2285_v37 }
 0x132   : > { %v5948_v54 = vpack.c.bf16 %v952_v30, %v940_v23  ;;  %v2298_v41 = vand.u32 4294901760, %v2297_v29  ;;  %v2291_v24 = vsub.f32 %v5250_v47, %v7385_v46  ;;  %v946_v61 = vand.u32 4294901760, %v945_v32  ;;  %v7762_v32 = vld [vmem:[#allocation198_spill] sm:$0xff]  ;;  %v7827_v47 = vld [vmem:[#allocation39_spill] sm:$0xff] }
 0x133   : > { %v958_v27 = vand.u32 4294901760, %v957_v12  ;;  %v2303_v33 = vsub.f32 %v5252_v4, %v7384_v45  ;;  %v7387_v51 = vand.u32 4294901760, %v5254_v49  ;;  %v7386_v39 = vand.u32 4294901760, %v5259_v0  ;;  %3551 = vmatpush1.bf16.xpose.msra.mxu0 %v5671_v42 }
 0x134   : > { %v5957_v6 = vpack.c.bf16 %v2298_v41, %v2286_v50  ;;  %v2292_v35 = vand.u32 4294901760, %v2291_v24  ;;  %v7390_v30 = vand.u32 4294901760, %v5261_v57  ;;  %v7391_v12 = vand.u32 4294901760, %v7762_v32  ;;  %3553 = vmatprep.subr.bf16.mxu0 %v5695_v2  ;;  %3935 = vmatpush1.bf16.xpose.msra.mxu1 %v5680_v7 }
 0x135   : > { %v5961_v23 = vpack.c.bf16 %v958_v27, %v946_v61  ;;  %v2304_v37 = vand.u32 4294901760, %v2303_v33  ;;  %v963_v29 = vsub.f32 %v5254_v49, %v7387_v51  ;;  %v975_v41 = vsub.f32 %v5259_v0, %v7386_v39  ;;  %v310_v61 = vld [vmem:[#allocation4 + $0x18] sm:$0xff]  ;;  %v309_v39 = vld [vmem:[#allocation4 + $0x10] sm:$0xff]  ;;  %3937 = vmatprep.subr.bf16.mxu1 %v5697_v43 }
 0x136   : > { %v2309_v50 = vsub.f32 %v5261_v57, %v7390_v30  ;;  %v7392_v24 = vand.u32 4294901760, %v5276_v10  ;;  %v7395_v33 = vand.u32 4294901760, %v5278_v58  ;;  %v2321_v42 = vsub.f32 %v7762_v32, %v7391_v12  ;;  %v7818_v57 = vld [vmem:[#allocation26_spill] sm:$0xff] }
 0x137   : > { %v5977_v27 = vpack.c.bf16 %v2304_v37, %v2292_v35  ;;  %v964_v45 = vand.u32 4294901760, %v963_v29  ;;  %v7396_v46 = vand.u32 4294901760, %v5281_v1  ;;  %v976_v51 = vand.u32 4294901760, %v975_v41 }
 0x138   : > { %v2310_v0 = vand.u32 4294901760, %v2309_v50  ;;  %v969_v30 = vsub.f32 %v5276_v10, %v7392_v24  ;;  %v981_v2 = vsub.f32 %v5278_v58, %v7395_v33  ;;  %v2322_v35 = vand.u32 4294901760, %v2321_v42  ;;  %v7820_v58 = vld [vmem:[#allocation207_spill] sm:$0xff] }
 0x139   : > { %v2315_v37 = vsub.f32 %v5281_v1, %v7396_v46  ;;  %v7399_v29 = vand.u32 4294901760, %v5283_v14  ;;  %v5994_v12 = vand.u32 4294901760, %v310_v61  ;;  %v5997_v41 = vpack.c.bf16 %v976_v51, %v964_v45 }
 0x13a   : > { %v970_v50 = vand.u32 4294901760, %v969_v30  ;;  %v982_v24 = vand.u32 4294901760, %v981_v2  ;;  %v5999_v10 = vand.u32 4294901760, %v309_v39  ;;  %v6001_v33 = vpack.c.bf16 %v2322_v35, %v2310_v0 }
 0x13b   : > { %7763 = vst [vmem:[#allocation126_spill] sm:$0xff] %v5994_v12  ;;  %v2316_v7 = vand.u32 4294901760, %v2315_v37  ;;  %v2327_v42 = vsub.f32 %v5283_v14, %v7399_v29  ;;  %v6007_v46 = vsub.f32 %v310_v61, %v5994_v12  ;;  %v7767_v51 = vand.u32 4294901760, %v5685_v19  ;;  %3555 = vmatpush1.bf16.xpose.msra.mxu0 %v5701_v59  ;;  %v7772_v37 = vld [vmem:[#allocation130_spill] sm:$0xff]  ;;  %v7781_v29 = vld [vmem:[#allocation144_spill] sm:$0xff] }
 0x13c   : > { %7764 = vst [vmem:[#allocation134_spill] sm:$0xff] %v5999_v10  ;;  %v6009_v1 = vpack.c.bf16 %v982_v24, %v970_v50  ;;  %v6012_v43 = vsub.f32 %v309_v39, %v5999_v10  ;;  %v7768_v45 = vand.u32 4294901760, %v5691_v52  ;;  %3557 = vmatprep.subr.bf16.mxu0 %v5734_v16  ;;  %v7782_v50 = vld [vmem:[#allocation145_spill] sm:$0xff]  ;;  %v7796_v59 = vld [vmem:[#allocation166_spill] sm:$0xff] }
 0x13d   : > { %7765 = vst [vmem:[#allocation212_spill] sm:$0xff] %v6007_v46  ;;  %v2328_v0 = vand.u32 4294901760, %v2327_v42  ;;  %v6019_v2 = vand.u32 4294901760, %v6007_v46  ;;  %v7774_v42 = vld [vmem:[#allocation133_spill] sm:$0xff]  ;;  %v7808_v16 = vld [vmem:[#allocation190_spill] sm:$0xff] }
 0x13e   : > { %7766 = vst [vmem:[#allocation213_spill] sm:$0xff] %v6012_v43  ;;  %v3938_v30 = vpack.c.bf16 %v7768_v45, %v7767_v51  ;;  %v6023_v35 = vand.u32 4294901760, %v6012_v43  ;;  %v7775_v45 = vld [vmem:[#allocation136_spill] sm:$0xff] }
 0x13f   : > { %7769 = vst [vmem:[#allocation214_spill] sm:$0xff] %v6019_v2  ;;  %v6026_v24 = vpack.c.bf16 %v2328_v0, %v2316_v7  ;;  %v586_v39 = vsub.f32 %v6007_v46, %v6019_v2  ;;  %v7773_v7 = vld [vmem:[#allocation132_spill] sm:$0xff]  ;;  %v7777_v0 = vld [vmem:[#allocation138_spill] sm:$0xff]  ;;  %v7803_v2 = vld [vmem:[#allocation173_spill] sm:$0xff] }
 0x140   : > { %7770 = vst [vmem:[#allocation215_spill] sm:$0xff] %v6023_v35  ;;  %v592_v52 = vsub.f32 %v6012_v43, %v6023_v35  ;;  %3939 = vmatpush1.bf16.xpose.msra.mxu1 %v3938_v30  ;;  %v7784_v51 = vld [vmem:[#allocation148_spill] sm:$0xff]  ;;  %v7793_v43 = vld [vmem:[#allocation161_spill] sm:$0xff]  ;;  %v7794_v46 = vld [vmem:[#allocation162_spill] sm:$0xff] }
 0x141   : > { %v587_v19 = vand.u32 4294901760, %v586_v39  ;;  %3941 = vmatprep.subr.bf16.mxu1 %v5738_v63  ;;  %v7771_v63 = vld [vmem:[#allocation129_spill] sm:$0xff] }
 0x142   : > { %v593_v61 = vand.u32 4294901760, %v592_v52  ;;  %v7778_v39 = vld [vmem:[#allocation141_spill] sm:$0xff]  ;;  %v7779_v52 = vld [vmem:[#allocation142_spill] sm:$0xff] }
 0x143   : > { %588 = vmatprep.mubr.f32.mxu0 %v587_v19  ;;  %1934 = vmatprep.mubr.f32.mxu1 %v587_v19  ;;  %v7799_v35 = vld [vmem:[#allocation169_spill] sm:$0xff]  ;;  %v7819_v19 = vld [vmem:[#allocation28_spill] sm:$0xff] }
 0x144   : > { %594 = vmatmul.mubr.f32.gmra.mrb[2].mxu0 %v593_v61  ;;  %1940 = vmatmul.mubr.f32.gmra.mrb[2].mxu1 %v593_v61  ;;  %v7780_v61 = vld [vmem:[#allocation122_spill] sm:$0xff] }
 0x145   : > { %985 = vmatprep.mubr.f32.mxu0 %v5266_v26  ;;  %2331 = vmatprep.mubr.f32.mxu1 %v5266_v26  ;;  %v7786_v26 = vld [vmem:[#allocation150_spill] sm:$0xff] }
 0x146   : > { %3559 = vmatpush1.bf16.xpose.msra.mxu0 %v5747_v28  ;;  %v7776_v28 = vld [vmem:[#allocation137_spill] sm:$0xff] }
 0x147   : > { %3561 = vmatprep.subr.bf16.mxu0 %v5773_v22  ;;  %v7816_v22 = vld [vmem:[#allocation21_spill] sm:$0xff] }
 0x148   : > { %3943 = vmatpush1.bf16.xpose.msra.mxu1 %v5763_v44  ;;  %v7783_v44 = vld [vmem:[#allocation146_spill] sm:$0xff] }
 0x149   : > { %3945 = vmatprep.subr.bf16.mxu1 %v5783_v40  ;;  %v7797_v40 = vld [vmem:[#allocation124_spill] sm:$0xff] }
 0x14e   : > { %3563 = vmatpush1.bf16.xpose.msra.mxu0 %v7780_v61  ;;  %v7802_v61 = vld [vmem:[#allocation172_spill] sm:$0xff] }
 0x14f   : > { %3565 = vmatprep.subr.bf16.mxu0 %v5821_v3  ;;  %v7792_v3 = vld [vmem:[#allocation160_spill] sm:$0xff] }
 0x150   : > { %3947 = vmatpush1.bf16.xpose.msra.mxu1 %v5803_v56  ;;  %v7804_v56 = vld [vmem:[#allocation174_spill] sm:$0xff] }
 0x151   : > { %3949 = vmatprep.subr.bf16.mxu1 %v5825_v31  ;;  %v7795_v31 = vld [vmem:[#allocation165_spill] sm:$0xff] }
 0x156   : > { %3567 = vmatpush1.bf16.xpose.msra.mxu0 %v5833_v36  ;;  %v7798_v36 = vld [vmem:[#allocation168_spill] sm:$0xff] }
 0x157   : > { %3569 = vmatprep.subr.bf16.mxu0 %v5860_v8  ;;  %v7800_v8 = vld [vmem:[#allocation125_spill] sm:$0xff] }
 0x158   : > { %3951 = vmatpush1.bf16.xpose.msra.mxu1 %v5851_v53  ;;  %v7801_v53 = vld [vmem:[#allocation170_spill] sm:$0xff] }
 0x159   : > { %3953 = vmatprep.subr.bf16.mxu1 %v5870_v11  ;;  %v7805_v11 = vld [vmem:[#allocation177_spill] sm:$0xff] }
 0x15e   : > { %3571 = vmatpush1.bf16.xpose.msra.mxu0 %v7797_v40  ;;  %v7811_v40 = vld [vmem:[#allocation15_spill] sm:$0xff] }
 0x15f   : > { %3573 = vmatprep.subr.bf16.mxu0 %v5908_v9  ;;  %v7806_v9 = vld [vmem:[#allocation182_spill] sm:$0xff] }
 0x160   : > { %3955 = vmatpush1.bf16.xpose.msra.mxu1 %v7800_v8 }
 0x161   : > { %3957 = vmatprep.subr.bf16.mxu1 %v5911_v17  ;;  %v7807_v17 = vld [vmem:[#allocation189_spill] sm:$0xff] }
 0x166   : > { %3575 = vmatpush1.bf16.xpose.msra.mxu0 %v5920_v62  ;;  %v7813_v62 = vld [vmem:[#allocation17_spill] sm:$0xff] }
 0x167   : > { %3577 = vmatprep.subr.bf16.mxu0 %v5948_v54  ;;  %v7809_v54 = vld [vmem:[#allocation196_spill] sm:$0xff] }
 0x168   : > { %3959 = vmatpush1.bf16.xpose.msra.mxu1 %v5938_v34 }
 0x169   : > { %3961 = vmatprep.subr.bf16.mxu1 %v5957_v6  ;;  %v3588_v6 = vpack.c.bf16 %v7819_v19, %v7818_v57  ;;  %v7838_v57 = vld [vmem:[#allocation48_spill] sm:$0xff] }
 0x16e   : > { %3579 = vmatpush1.bf16.xpose.msra.mxu0 %v5961_v23  ;;  %v7812_v23 = vld [vmem:[#allocation16_spill] sm:$0xff] }
 0x16f   : > { %3581 = vmatprep.subr.bf16.mxu0 %v5997_v41  ;;  %v3584_v8 = vpack.c.bf16 %v7812_v23, %v7811_v40  ;;  %v7814_v41 = vld [vmem:[#allocation19_spill] sm:$0xff]  ;;  %v7821_v23 = vld [vmem:[#allocation24_spill] sm:$0xff] }
 0x170   : > { %3963 = vmatpush1.bf16.xpose.msra.mxu1 %v5977_v27  ;;  %v3968_v30 = vpack.c.bf16 %v7814_v41, %v7813_v62  ;;  %v7815_v27 = vld [vmem:[#allocation204_spill] sm:$0xff]  ;;  %v7823_v41 = vld [vmem:[#allocation30_spill] sm:$0xff]  ;;  %v7824_v62 = vld [vmem:[#allocation31_spill] sm:$0xff] }
 0x171   : > { %3965 = vmatprep.subr.bf16.mxu1 %v6001_v33  ;;  %v7817_v33 = vld [vmem:[#allocation22_spill] sm:$0xff]  ;;  %v3972_v32 = vpack.c.bf16 %v7824_v62, %v7823_v41  ;;  %v7830_v62 = vld [vmem:[#allocation35_spill] sm:$0xff] }
 0x172   : > { %v3586_v34 = vpack.c.bf16 %v7817_v33, %v7816_v22 }
 0x176   : > { %3583 = vmatpush1.bf16.xpose.msra.mxu0 %v6009_v1  ;;  %v7822_v1 = vld [vmem:[#allocation25_spill] sm:$0xff] }
 0x177   : > { %3585 = vmatprep.subr.bf16.mxu0 %v3584_v8  ;;  %v3970_v40 = vpack.c.bf16 %v7822_v1, %v7821_v23  ;;  %v7828_v1 = vld [vmem:[#allocation40_spill] sm:$0xff]  ;;  %v7829_v23 = vld [vmem:[#allocation206_spill] sm:$0xff] }
 0x178   : > { %3967 = vmatpush1.bf16.xpose.msra.mxu1 %v6026_v24  ;;  %v7825_v24 = vld [vmem:[#allocation32_spill] sm:$0xff] }
 0x179   : > { %3969 = vmatprep.subr.bf16.mxu1 %v3968_v30  ;;  %v7826_v30 = vld [vmem:[#allocation34_spill] sm:$0xff] }
 0x17a   : > { %v3590_v8 = vpack.c.bf16 %v7826_v30, %v7825_v24  ;;  %v7835_v30 = vld [vmem:[#allocation46_spill] sm:$0xff] }
 0x17d   : > { %987 = vmatmul.mubr.f32.vlgmr.msra.gmra.mrb[0].mxu0 %v7820_v58 }
 0x17e   : > { %3587 = vmatpush1.bf16.xpose.msra.mxu0 %v3586_v34  ;;  %993 = vmatprep.mubr.f32.mxu0 %v5994_v12  ;;  %v3592_v34 = vpack.c.bf16 %v7828_v1, %v7827_v47  ;;  %v7836_v1 = vld [vmem:[#allocation50_spill] sm:$0xff]  ;;  %v7837_v47 = vld [vmem:[#allocation52_spill] sm:$0xff] }
 0x17f   : > { %3589 = vmatprep.subr.bf16.mxu0 %v3588_v6  ;;  %2333 = vmatmul.mubr.f32.vlgmr.msra.gmra.mrb[0].mxu1 %v7820_v58  ;;  %v7831_v6 = vld [vmem:[#allocation37_spill] sm:$0xff]  ;;  %v3596_v19 = vpack.c.bf16 %v7837_v47, %v7836_v1  ;;  %v7849_v1 = vld [vmem:[#allocation66_spill] sm:$0xff] }
 0x180   : > { %3971 = vmatpush1.bf16.xpose.msra.mxu1 %v3970_v40  ;;  %2339 = vmatprep.mubr.f32.mxu1 %v5994_v12  ;;  %v3974_v41 = vpack.c.bf16 %v7831_v6, %v7830_v62  ;;  %v7832_v40 = vld [vmem:[#allocation42_spill] sm:$0xff]  ;;  %v7834_v58 = vld [vmem:[#allocation45_spill] sm:$0xff] }
 0x181   : > { %3973 = vmatprep.subr.bf16.mxu1 %v3972_v32  ;;  %995 = vmatmul.mubr.f32.gmra.mrb[2].mxu0 %v5999_v10  ;;  %v7833_v32 = vld [vmem:[#allocation43_spill] sm:$0xff]  ;;  %v3594_v24 = vpack.c.bf16 %v7835_v30, %v7834_v58  ;;  %v7840_v6 = vld [vmem:[#allocation53_spill] sm:$0xff]  ;;  %v7841_v62 = vld [vmem:[#allocation54_spill] sm:$0xff] }
 0x182   : > { %1195 = vmatprep.mubr.f32.mxu0 %v7829_v23  ;;  %v3976_v12 = vpack.c.bf16 %v7833_v32, %v7832_v40  ;;  %v7845_v32 = vld [vmem:[#allocation64_spill] sm:$0xff]  ;;  %v7847_v58 = vld [vmem:[#allocation61_spill] sm:$0xff] }
 0x183   : > { %2341 = vmatmul.mubr.f32.gmra.mrb[2].mxu1 %v5999_v10  ;;  %v7839_v10 = vld [vmem:[#allocation49_spill] sm:$0xff]  ;;  %v7846_v30 = vld [vmem:[#allocation60_spill] sm:$0xff] }
 0x184   : > { %2541 = vmatprep.mubr.f32.mxu1 %v7829_v23  ;;  %v3978_v33 = vpack.c.bf16 %v7839_v10, %v7838_v57  ;;  %v3980_v23 = vpack.c.bf16 %v7841_v62, %v7840_v6  ;;  %v3982_v22 = vpack.c.bf16 %v7847_v58, %v7846_v30  ;;  %v7848_v47 = vld [vmem:[#allocation65_spill] sm:$0xff]  ;;  %v7853_v62 = vld [vmem:[#allocation76_spill] sm:$0xff] }
 0x185   : > { %v3984_v10 = vpack.c.bf16 %v7849_v1, %v7848_v47  ;;  %v7861_v1 = vld [vmem:[#allocation88_spill] sm:$0xff] }
 0x186   : > { %3591 = vmatpush1.bf16.xpose.msra.mxu0 %v3590_v8  ;;  %v7842_v8 = vld [vmem:[#allocation57_spill] sm:$0xff] }
 0x187   : > { %3593 = vmatprep.subr.bf16.mxu0 %v3592_v34  ;;  %v7843_v34 = vld [vmem:[#allocation58_spill] sm:$0xff] }
 0x188   : > { %3975 = vmatpush1.bf16.xpose.msra.mxu1 %v3974_v41  ;;  %v3598_v41 = vpack.c.bf16 %v7843_v34, %v7842_v8  ;;  %v7854_v34 = vld [vmem:[#allocation72_spill] sm:$0xff]  ;;  %v7855_v8 = vld [vmem:[#allocation73_spill] sm:$0xff] }
 0x189   : > { %3977 = vmatprep.subr.bf16.mxu1 %v3976_v12  ;;  %v7844_v12 = vld [vmem:[#allocation62_spill] sm:$0xff]  ;;  %v3986_v57 = vpack.c.bf16 %v7855_v8, %v7854_v34 }
 0x18a   : > { %v3600_v40 = vpack.c.bf16 %v7845_v32, %v7844_v12  ;;  %v7856_v32 = vld [vmem:[#allocation77_spill] sm:$0xff]  ;;  %v7857_v12 = vld [vmem:[#allocation78_spill] sm:$0xff] }
 0x18b   : > { %v3988_v58 = vpack.c.bf16 %v7857_v12, %v7856_v32  ;;  %v7869_v12 = vld [vmem:[#allocation100_spill] sm:$0xff] }
 0x18e   : > { %3595 = vmatpush1.bf16.xpose.msra.mxu0 %v3594_v24  ;;  %v7850_v24 = vld [vmem:[#allocation69_spill] sm:$0xff] }
 0x18f   : > { %3597 = vmatprep.subr.bf16.mxu0 %v3596_v19  ;;  %v7851_v19 = vld [vmem:[#allocation70_spill] sm:$0xff] }
 0x190   : > { %3979 = vmatpush1.bf16.xpose.msra.mxu1 %v3978_v33  ;;  %v3602_v33 = vpack.c.bf16 %v7851_v19, %v7850_v24  ;;  %v7862_v19 = vld [vmem:[#allocation84_spill] sm:$0xff]  ;;  %v7863_v24 = vld [vmem:[#allocation85_spill] sm:$0xff] }
 0x191   : > { %3981 = vmatprep.subr.bf16.mxu1 %v3980_v23  ;;  %v7852_v23 = vld [vmem:[#allocation74_spill] sm:$0xff]  ;;  %v3990_v30 = vpack.c.bf16 %v7863_v24, %v7862_v19 }
 0x192   : > { %v3604_v6 = vpack.c.bf16 %v7853_v62, %v7852_v23  ;;  %v7864_v62 = vld [vmem:[#allocation89_spill] sm:$0xff]  ;;  %v7865_v23 = vld [vmem:[#allocation90_spill] sm:$0xff] }
 0x193   : > { %v3992_v8 = vpack.c.bf16 %v7865_v23, %v7864_v62  ;;  %v7877_v23 = vld [vmem:[#allocation112_spill] sm:$0xff] }
 0x196   : > { %3599 = vmatpush1.bf16.xpose.msra.mxu0 %v3598_v41  ;;  %v7858_v41 = vld [vmem:[#allocation81_spill] sm:$0xff] }
 0x197   : > { %3601 = vmatprep.subr.bf16.mxu0 %v3600_v40  ;;  %v7859_v40 = vld [vmem:[#allocation82_spill] sm:$0xff] }
 0x198   : > { %3983 = vmatpush1.bf16.xpose.msra.mxu1 %v3982_v22  ;;  %v3606_v22 = vpack.c.bf16 %v7859_v40, %v7858_v41  ;;  %v7870_v40 = vld [vmem:[#allocation96_spill] sm:$0xff]  ;;  %v7871_v41 = vld [vmem:[#allocation97_spill] sm:$0xff] }
 0x199   : > { %3985 = vmatprep.subr.bf16.mxu1 %v3984_v10  ;;  %v7860_v10 = vld [vmem:[#allocation86_spill] sm:$0xff]  ;;  %v3994_v34 = vpack.c.bf16 %v7871_v41, %v7870_v40 }
 0x19a   : > { %v3608_v47 = vpack.c.bf16 %v7861_v1, %v7860_v10  ;;  %v7872_v1 = vld [vmem:[#allocation101_spill] sm:$0xff]  ;;  %v7873_v10 = vld [vmem:[#allocation102_spill] sm:$0xff] }
 0x19b   : > { %v3996_v24 = vpack.c.bf16 %v7873_v10, %v7872_v1  ;;  %v7885_v10 = vld [vmem:[#allocation121_spill] sm:$0xff] }
 0x19e   : > { %3603 = vmatpush1.bf16.xpose.msra.mxu0 %v3602_v33  ;;  %v7866_v33 = vld [vmem:[#allocation93_spill] sm:$0xff] }
 0x19f   : > { %3605 = vmatprep.subr.bf16.mxu0 %v3604_v6  ;;  %v7867_v6 = vld [vmem:[#allocation94_spill] sm:$0xff] }
 0x1a0   : > { %3987 = vmatpush1.bf16.xpose.msra.mxu1 %v3986_v57  ;;  %v3610_v57 = vpack.c.bf16 %v7867_v6, %v7866_v33  ;;  %v7878_v6 = vld [vmem:[#allocation108_spill] sm:$0xff]  ;;  %v7879_v33 = vld [vmem:[#allocation109_spill] sm:$0xff] }
 0x1a1   : > { %3989 = vmatprep.subr.bf16.mxu1 %v3988_v58  ;;  %v7868_v58 = vld [vmem:[#allocation98_spill] sm:$0xff]  ;;  %v3998_v19 = vpack.c.bf16 %v7879_v33, %v7878_v6 }
 0x1a2   : > { %v3612_v32 = vpack.c.bf16 %v7869_v12, %v7868_v58  ;;  %v7880_v12 = vld [vmem:[#allocation113_spill] sm:$0xff]  ;;  %v7881_v58 = vld [vmem:[#allocation114_spill] sm:$0xff] }
 0x1a3   : > { %v4000_v41 = vpack.c.bf16 %v7881_v58, %v7880_v12 }
 0x1a6   : > { %3607 = vmatpush1.bf16.xpose.msra.mxu0 %v3606_v22  ;;  %v7874_v22 = vld [vmem:[#allocation105_spill] sm:$0xff] }
 0x1a7   : > { %3609 = vmatprep.subr.bf16.mxu0 %v3608_v47  ;;  %v7875_v47 = vld [vmem:[#allocation106_spill] sm:$0xff] }
 0x1a8   : > { %3991 = vmatpush1.bf16.xpose.msra.mxu1 %v3990_v30  ;;  %v3614_v30 = vpack.c.bf16 %v7875_v47, %v7874_v22 }
 0x1a9   : > { %3993 = vmatprep.subr.bf16.mxu1 %v3992_v8  ;;  %v7876_v8 = vld [vmem:[#allocation110_spill] sm:$0xff] }
 0x1aa   : > { %v3616_v62 = vpack.c.bf16 %v7877_v23, %v7876_v8  ;;  %v7886_v23 = vpack.c.bf16 %v7716_v18, %v7715_v48 }
 0x1ae   : > { %3611 = vmatpush1.bf16.xpose.msra.mxu0 %v3610_v57  ;;  %v7882_v57 = vld [vmem:[#allocation117_spill] sm:$0xff] }
 0x1af   : > { %3613 = vmatprep.subr.bf16.mxu0 %v3612_v32  ;;  %v7883_v32 = vld [vmem:[#allocation118_spill] sm:$0xff] }
 0x1b0   : > { %3995 = vmatpush1.bf16.xpose.msra.mxu1 %v3994_v34  ;;  %v3618_v34 = vpack.c.bf16 %v7883_v32, %v7882_v57 }
 0x1b1   : > { %3997 = vmatprep.subr.bf16.mxu1 %v3996_v24  ;;  %v7884_v24 = vld [vmem:[#allocation120_spill] sm:$0xff] }
 0x1b2   : > { %v4002_v1 = vpack.c.bf16 %v7885_v10, %v7884_v24 }
 0x1b6   : > { %3615 = vmatpush1.bf16.xpose.msra.mxu0 %v3614_v30  ;;  %v7887_v30 = vpack.c.bf16 %v7718_v15, %v7717_v55 }
 0x1b7   : > { %3617 = vmatprep.subr.bf16.mxu0 %v3616_v62  ;;  %v7888_v62 = vpack.c.bf16 %v7772_v37, %v7771_v63 }
 0x1b8   : > { %3999 = vmatpush1.bf16.xpose.msra.mxu1 %v3998_v19  ;;  %v7889_v19 = vpack.c.bf16 %v7775_v45, %v7723_v5 }
 0x1b9   : > { %4001 = vmatprep.subr.bf16.mxu1 %v4000_v41  ;;  %v7890_v41 = vpack.c.bf16 %v7774_v42, %v7773_v7  ;;  %v7898_v42 = vld [vmem:[#allocation153_spill] sm:$0xff] }
 0x1be   : > { %3619 = vmatpush1.bf16.xpose.msra.mxu0 %v3618_v34  ;;  %v7893_v34 = vpack.c.bf16 %v7784_v51, %v7783_v44 }
 0x1bf   : > { %3621 = vmatprep.subr.bf16.mxu0 %v7886_v23  ;;  %v7891_v23 = vpack.c.bf16 %v7777_v0, %v7776_v28 }
 0x1c0   : > { %4003 = vmatpush1.bf16.xpose.msra.mxu1 %v4002_v1  ;;  %v7892_v1 = vpack.c.bf16 %v7779_v52, %v7778_v39  ;;  %v7903_v39 = vld [vmem:[#allocation156_spill] sm:$0xff] }
 0x1c1   : > { %4005 = vmatprep.subr.bf16.mxu1 %v7887_v30  ;;  %v7894_v30 = vpack.c.bf16 %v7782_v50, %v7781_v29 }
 0x1c6   : > { %3623 = vmatpush1.bf16.xpose.msra.mxu0 %v7888_v62  ;;  %v7895_v62 = vld [vmem:[#allocation149_spill] sm:$0xff] }
 0x1c7   : > { %3625 = vmatprep.subr.bf16.mxu0 %v7889_v19  ;;  %v7896_v19 = vpack.c.bf16 %v7786_v26, %v7895_v62 }
 0x1c8   : > { %4007 = vmatpush1.bf16.xpose.msra.mxu1 %v7890_v41  ;;  %v7897_v41 = vld [vmem:[#allocation154_spill] sm:$0xff] }
 0x1c9   : > { %4009 = vmatprep.subr.bf16.mxu1 %v7891_v23  ;;  %v7899_v0 = vpack.c.bf16 %v7897_v41, %v7898_v42  ;;  %v7900_v23 = vld [vmem:[#allocation158_spill] sm:$0xff] }
 0x1ca   : > { %v7901_v52 = vpack.c.bf16 %v7792_v3, %v7900_v23 }
 0x1ce   : > { %3627 = vmatpush1.bf16.xpose.msra.mxu0 %v7892_v1  ;;  %v7902_v1 = vld [vmem:[#allocation157_spill] sm:$0xff] }
 0x1cf   : > { %3629 = vmatprep.subr.bf16.mxu0 %v7893_v34  ;;  %v7904_v51 = vpack.c.bf16 %v7902_v1, %v7903_v39  ;;  %v7905_v34 = vpack.c.bf16 %v7794_v46, %v7793_v43 }
 0x1d0   : > { %4011 = vmatpush1.bf16.xpose.msra.mxu1 %v7894_v30  ;;  %v7906_v30 = vpack.c.bf16 %v7796_v59, %v7795_v31 }
 0x1d1   : > { %4013 = vmatprep.subr.bf16.mxu1 %v7896_v19  ;;  %v7907_v19 = vpack.c.bf16 %v7802_v61, %v7801_v53 }
 0x1d6   : > { %3631 = vmatpush1.bf16.xpose.msra.mxu0 %v7899_v0  ;;  %v7908_v0 = vpack.c.bf16 %v7799_v35, %v7798_v36 }
 0x1d7   : > { %3633 = vmatprep.subr.bf16.mxu0 %v7901_v52  ;;  %v7909_v52 = vpack.c.bf16 %v7804_v56, %v7803_v2 }
 0x1d8   : > { %4015 = vmatpush1.bf16.xpose.msra.mxu1 %v7904_v51  ;;  %v7910_v51 = vpack.c.bf16 %v7754_v60, %v7805_v11 }
 0x1d9   : > { %4017 = vmatprep.subr.bf16.mxu1 %v7905_v34  ;;  %v7911_v34 = vpack.c.bf16 %v7759_v13, %v7806_v9  ;;  %v7919_v9 = vld [vmem:[#allocation197_spill] sm:$0xff] }
 0x1de   : > { %3635 = vmatpush1.bf16.xpose.msra.mxu0 %v7906_v30  ;;  %v7912_v30 = vpack.c.bf16 %v7757_v21, %v7756_v20  ;;  %v7922_v20 = vld [vmem:[#allocation202_spill] sm:$0xff] }
 0x1df   : > { %3637 = vmatprep.subr.bf16.mxu0 %v7907_v19  ;;  %v7913_v19 = vpack.c.bf16 %v7761_v25, %v7760_v38 }
 0x1e0   : > { %4019 = vmatpush1.bf16.xpose.msra.mxu1 %v7908_v0  ;;  %v7914_v0 = vpack.c.bf16 %v7808_v16, %v7807_v17 }
 0x1e1   : > { %4021 = vmatprep.subr.bf16.mxu1 %v7909_v52  ;;  %v7915_v52 = vpack.c.bf16 %v7809_v54, %v5254_v49  ;;  %v7926_v54 = vld [vmem:[#allocation18_spill] sm:$0xff] }
 0x1e2   : > { %v8003_v49 = vld [vmem:[#allocation22_spill] sm:$0xff] }
 0x1e6   : > { %3639 = vmatpush1.bf16.xpose.msra.mxu0 %v7910_v51  ;;  %v7916_v51 = vld [vmem:[#allocation192_spill] sm:$0xff] }
 0x1e7   : > { %3641 = vmatprep.subr.bf16.mxu0 %v7911_v34  ;;  %v7917_v13 = vpack.c.bf16 %v5252_v4, %v7916_v51  ;;  %v7918_v34 = vld [vmem:[#allocation198_spill] sm:$0xff]  ;;  %v7928_v4 = vld [vmem:[#allocation20_spill] sm:$0xff] }
 0x1e8   : > { %4023 = vmatpush1.bf16.xpose.msra.mxu1 %v7912_v30  ;;  %v7920_v21 = vpack.c.bf16 %v7918_v34, %v7919_v9  ;;  %v7921_v30 = vld [vmem:[#allocation203_spill] sm:$0xff] }
 0x1e9   : > { %4025 = vmatprep.subr.bf16.mxu1 %v7913_v19  ;;  %v7923_v25 = vpack.c.bf16 %v7921_v30, %v7922_v20  ;;  %v7924_v19 = vld [vmem:[#allocation14_spill] sm:$0xff]  ;;  %v7930_v34 = vld [vmem:[#allocation27_spill] sm:$0xff]  ;;  %v7993_v30 = vld [vmem:[#allocation16_spill] sm:$0xff] }
 0x1ee   : > { %3643 = vmatpush1.bf16.xpose.msra.mxu0 %v7914_v0  ;;  %v7925_v0 = vpack.c.bf16 %v5283_v14, %v7815_v27  ;;  %v7942_v14 = vld [vmem:[#allocation55_spill] sm:$0xff]  ;;  %v7943_v27 = vld [vmem:[#allocation56_spill] sm:$0xff] }
 0x1ef   : > { %3645 = vmatprep.subr.bf16.mxu0 %v7915_v52  ;;  %v7927_v52 = vld [vmem:[#allocation209_spill] sm:$0xff] }
 0x1f0   : > { %4027 = vmatpush1.bf16.xpose.msra.mxu1 %v7917_v13  ;;  %v7929_v13 = vld [vmem:[#allocation212_spill] sm:$0xff] }
 0x1f1   : > { %4029 = vmatprep.subr.bf16.mxu1 %v7920_v21  ;;  %v7931_v21 = vld [vmem:[#allocation23_spill] sm:$0xff] }
 0x1f6   : > { %3647 = vmatpush1.bf16.xpose.msra.mxu0 %v7923_v25  ;;  %v7932_v25 = vld [vmem:[#allocation29_spill] sm:$0xff] }
 0x1f7   : > { %3649 = vmatprep.subr.bf16.mxu0 %v7924_v19  ;;  %v7933_v19 = vld [vmem:[#allocation213_spill] sm:$0xff] }
 0x1f8   : > { %4031 = vmatpush1.bf16.xpose.msra.mxu1 %v7925_v0  ;;  %v7934_v0 = vld [vmem:[#allocation208_spill] sm:$0xff] }
 0x1f9   : > { %4033 = vmatprep.subr.bf16.mxu1 %v7926_v54  ;;  %v7936_v54 = vld [vmem:[#allocation38_spill] sm:$0xff] }
 0x1fd   : > { %1198 = vmatmul.mubr.f32.vlgmr.msra.gmra.mrb[0].mxu0 %v7927_v52 }
 0x1fe   : > { %3651 = vmatpush1.bf16.xpose.msra.mxu0 %v7928_v4  ;;  %1205 = vmatprep.mubr.f32.mxu0 %v7929_v13  ;;  %v7935_v4 = vld [vmem:[#allocation33_spill] sm:$0xff] }
 0x1ff   : > { %3653 = vmatprep.subr.bf16.mxu0 %v7930_v34  ;;  %2544 = vmatmul.mubr.f32.vlgmr.msra.gmra.mrb[0].mxu1 %v7927_v52  ;;  %v7937_v34 = vld [vmem:[#allocation36_spill] sm:$0xff]  ;;  %v7938_v52 = vld [vmem:[#allocation41_spill] sm:$0xff] }
 0x200   : > { %4035 = vmatpush1.bf16.xpose.msra.mxu1 %v7931_v21  ;;  %2551 = vmatprep.mubr.f32.mxu1 %v7929_v13  ;;  %v7939_v21 = vld [vmem:[#allocation44_spill] sm:$0xff]  ;;  %v7940_v13 = vld [vmem:[#allocation51_spill] sm:$0xff] }
 0x201   : > { %4037 = vmatprep.subr.bf16.mxu1 %v7932_v25  ;;  %1208 = vmatmul.mubr.f32.gmra.mrb[2].mxu0 %v7933_v19  ;;  %v7941_v25 = vld [vmem:[#allocation47_spill] sm:$0xff] }
 0x202   : > { %1345 = vmatprep.mubr.f32.mxu0 %v7934_v0 }
 0x203   : > { %2554 = vmatmul.mubr.f32.gmra.mrb[2].mxu1 %v7933_v19  ;;  %v7944_v19 = vld [vmem:[#allocation63_spill] sm:$0xff] }
 0x204   : > { %2691 = vmatprep.mubr.f32.mxu1 %v7934_v0  ;;  %v7945_v0 = vld [vmem:[#allocation59_spill] sm:$0xff] }
 0x206   : > { %3655 = vmatpush1.bf16.xpose.msra.mxu0 %v7935_v4  ;;  %v7946_v4 = vld [vmem:[#allocation67_spill] sm:$0xff] }
 0x207   : > { %3657 = vmatprep.subr.bf16.mxu0 %v7936_v54  ;;  %v7947_v54 = vld [vmem:[#allocation68_spill] sm:$0xff] }
 0x208   : > { %4039 = vmatpush1.bf16.xpose.msra.mxu1 %v7937_v34  ;;  %v7948_v34 = vld [vmem:[#allocation75_spill] sm:$0xff] }
 0x209   : > { %4041 = vmatprep.subr.bf16.mxu1 %v7938_v52  ;;  %v7949_v52 = vld [vmem:[#allocation71_spill] sm:$0xff] }
 0x20e   : > { %3659 = vmatpush1.bf16.xpose.msra.mxu0 %v7939_v21  ;;  %v7950_v21 = vld [vmem:[#allocation79_spill] sm:$0xff] }
 0x20f   : > { %3661 = vmatprep.subr.bf16.mxu0 %v7940_v13  ;;  %v7951_v13 = vld [vmem:[#allocation80_spill] sm:$0xff] }
 0x210   : > { %4043 = vmatpush1.bf16.xpose.msra.mxu1 %v7941_v25  ;;  %v7952_v25 = vld [vmem:[#allocation87_spill] sm:$0xff] }
 0x211   : > { %4045 = vmatprep.subr.bf16.mxu1 %v7942_v14  ;;  %v7953_v14 = vld [vmem:[#allocation83_spill] sm:$0xff] }
 0x216   : > { %3663 = vmatpush1.bf16.xpose.msra.mxu0 %v7943_v27  ;;  %v7954_v27 = vld [vmem:[#allocation91_spill] sm:$0xff] }
 0x217   : > { %3665 = vmatprep.subr.bf16.mxu0 %v7944_v19  ;;  %v7955_v19 = vld [vmem:[#allocation92_spill] sm:$0xff] }
 0x218   : > { %4047 = vmatpush1.bf16.xpose.msra.mxu1 %v7945_v0  ;;  %v7956_v0 = vld [vmem:[#allocation99_spill] sm:$0xff] }
 0x219   : > { %4049 = vmatprep.subr.bf16.mxu1 %v7946_v4  ;;  %v7957_v4 = vld [vmem:[#allocation95_spill] sm:$0xff] }
 0x21e   : > { %3667 = vmatpush1.bf16.xpose.msra.mxu0 %v7947_v54  ;;  %v7958_v54 = vld [vmem:[#allocation103_spill] sm:$0xff] }
 0x21f   : > { %3669 = vmatprep.subr.bf16.mxu0 %v7948_v34  ;;  %v7959_v34 = vld [vmem:[#allocation104_spill] sm:$0xff] }
 0x220   : > { %4051 = vmatpush1.bf16.xpose.msra.mxu1 %v7949_v52  ;;  %v7960_v52 = vld [vmem:[#allocation111_spill] sm:$0xff] }
 0x221   : > { %4053 = vmatprep.subr.bf16.mxu1 %v7950_v21  ;;  %v7961_v21 = vld [vmem:[#allocation107_spill] sm:$0xff] }
 0x226   : > { %3671 = vmatpush1.bf16.xpose.msra.mxu0 %v7951_v13  ;;  %v7962_v13 = vld [vmem:[#allocation115_spill] sm:$0xff] }
 0x227   : > { %3673 = vmatprep.subr.bf16.mxu0 %v7952_v25  ;;  %v7963_v25 = vld [vmem:[#allocation116_spill] sm:$0xff] }
 0x228   : > { %4055 = vmatpush1.bf16.xpose.msra.mxu1 %v7953_v14  ;;  %v7964_v14 = vld [vmem:[#allocation123_spill] sm:$0xff] }
 0x229   : > { %4057 = vmatprep.subr.bf16.mxu1 %v7954_v27  ;;  %v7965_v27 = vld [vmem:[#allocation119_spill] sm:$0xff] }
 0x22e   : > { %3675 = vmatpush1.bf16.xpose.msra.mxu0 %v7955_v19  ;;  %v7966_v19 = vld [vmem:[#allocation127_spill] sm:$0xff] }
 0x22f   : > { %3677 = vmatprep.subr.bf16.mxu0 %v7956_v0  ;;  %v7967_v0 = vld [vmem:[#allocation128_spill] sm:$0xff] }
 0x230   : > { %4059 = vmatpush1.bf16.xpose.msra.mxu1 %v7957_v4  ;;  %v7968_v4 = vld [vmem:[#allocation135_spill] sm:$0xff] }
 0x231   : > { %4061 = vmatprep.subr.bf16.mxu1 %v7958_v54  ;;  %v7969_v54 = vld [vmem:[#allocation131_spill] sm:$0xff] }
 0x236   : > { %3679 = vmatpush1.bf16.xpose.msra.mxu0 %v7959_v34  ;;  %v7970_v34 = vld [vmem:[#allocation139_spill] sm:$0xff] }
 0x237   : > { %3681 = vmatprep.subr.bf16.mxu0 %v7960_v52  ;;  %v7971_v52 = vld [vmem:[#allocation140_spill] sm:$0xff] }
 0x238   : > { %4063 = vmatpush1.bf16.xpose.msra.mxu1 %v7961_v21  ;;  %v7972_v21 = vld [vmem:[#allocation147_spill] sm:$0xff] }
 0x239   : > { %4065 = vmatprep.subr.bf16.mxu1 %v7962_v13  ;;  %v7973_v13 = vld [vmem:[#allocation143_spill] sm:$0xff] }
 0x23e   : > { %3683 = vmatpush1.bf16.xpose.msra.mxu0 %v7963_v25  ;;  %v7974_v25 = vld [vmem:[#allocation151_spill] sm:$0xff] }
 0x23f   : > { %3685 = vmatprep.subr.bf16.mxu0 %v7964_v14  ;;  %v7975_v14 = vld [vmem:[#allocation152_spill] sm:$0xff] }
 0x240   : > { %4067 = vmatpush1.bf16.xpose.msra.mxu1 %v7965_v27  ;;  %v7976_v27 = vld [vmem:[#allocation159_spill] sm:$0xff] }
 0x241   : > { %4069 = vmatprep.subr.bf16.mxu1 %v7966_v19  ;;  %v7977_v19 = vld [vmem:[#allocation155_spill] sm:$0xff] }
 0x246   : > { %3687 = vmatpush1.bf16.xpose.msra.mxu0 %v7967_v0  ;;  %v7978_v0 = vld [vmem:[#allocation163_spill] sm:$0xff] }
 0x247   : > { %3689 = vmatprep.subr.bf16.mxu0 %v7968_v4  ;;  %v7979_v4 = vld [vmem:[#allocation164_spill] sm:$0xff] }
 0x248   : > { %4071 = vmatpush1.bf16.xpose.msra.mxu1 %v7969_v54  ;;  %v7980_v54 = vld [vmem:[#allocation171_spill] sm:$0xff] }
 0x249   : > { %4073 = vmatprep.subr.bf16.mxu1 %v7970_v34  ;;  %v7981_v34 = vld [vmem:[#allocation167_spill] sm:$0xff] }
 0x24e   : > { %3691 = vmatpush1.bf16.xpose.msra.mxu0 %v7971_v52  ;;  %v7982_v52 = vld [vmem:[#allocation175_spill] sm:$0xff] }
 0x24f   : > { %3693 = vmatprep.subr.bf16.mxu0 %v7972_v21  ;;  %v7983_v21 = vld [vmem:[#allocation176_spill] sm:$0xff] }
 0x250   : > { %4075 = vmatpush1.bf16.xpose.msra.mxu1 %v7973_v13  ;;  %v7984_v13 = vld [vmem:[#allocation183_spill] sm:$0xff] }
 0x251   : > { %4077 = vmatprep.subr.bf16.mxu1 %v7974_v25  ;;  %v7985_v25 = vld [vmem:[#allocation179_spill] sm:$0xff] }
 0x256   : > { %3695 = vmatpush1.bf16.xpose.msra.mxu0 %v7975_v14  ;;  %v7986_v14 = vld [vmem:[#allocation187_spill] sm:$0xff] }
 0x257   : > { %3697 = vmatprep.subr.bf16.mxu0 %v7976_v27  ;;  %v7987_v27 = vld [vmem:[#allocation188_spill] sm:$0xff] }
 0x258   : > { %4079 = vmatpush1.bf16.xpose.msra.mxu1 %v7977_v19  ;;  %v7988_v19 = vld [vmem:[#allocation195_spill] sm:$0xff] }
 0x259   : > { %4081 = vmatprep.subr.bf16.mxu1 %v7978_v0  ;;  %v7989_v0 = vld [vmem:[#allocation191_spill] sm:$0xff] }
 0x25e   : > { %3699 = vmatpush1.bf16.xpose.msra.mxu0 %v7979_v4  ;;  %v7990_v4 = vld [vmem:[#allocation200_spill] sm:$0xff] }
 0x25f   : > { %3701 = vmatprep.subr.bf16.mxu0 %v7980_v54  ;;  %v7991_v54 = vld [vmem:[#allocation15_spill] sm:$0xff] }
 0x260   : > { %4083 = vmatpush1.bf16.xpose.msra.mxu1 %v7981_v34  ;;  %v7992_v34 = vand.u32 4294901760, %v7991_v54  ;;  %v8005_v54 = vld [vmem:[#allocation26_spill] sm:$0xff] }
 0x261   : > { %4085 = vmatprep.subr.bf16.mxu1 %v7982_v52  ;;  %v7994_v52 = vand.u32 4294901760, %v7993_v30  ;;  %v8006_v17 = vand.u32 4294901760, %v8005_v54  ;;  %v8007_v30 = vld [vmem:[#allocation28_spill] sm:$0xff] }
 0x263   : > { %v3712_v20 = vpack.c.bf16 %v7994_v52, %v7992_v34  ;;  %v8008_v34 = vand.u32 4294901760, %v8007_v30  ;;  %v8024_v30 = vld [vmem:[#allocation39_spill] sm:$0xff] }
 0x265   : > { %v3716_v52 = vpack.c.bf16 %v8008_v34, %v8006_v17  ;;  %v8025_v34 = vand.u32 4294901760, %v8024_v30  ;;  %v8039_v30 = vld [vmem:[#allocation46_spill] sm:$0xff] }
 0x266   : > { %3703 = vmatpush1.bf16.xpose.msra.mxu0 %v7983_v21  ;;  %v7995_v21 = vld [vmem:[#allocation201_spill] sm:$0xff] }
 0x267   : > { %3705 = vmatprep.subr.bf16.mxu0 %v7984_v13  ;;  %v7996_v13 = vld [vmem:[#allocation17_spill] sm:$0xff] }
 0x268   : > { %4087 = vmatpush1.bf16.xpose.msra.mxu1 %v7985_v25  ;;  %v7997_v9 = vand.u32 4294901760, %v7996_v13  ;;  %v7998_v25 = vld [vmem:[#allocation19_spill] sm:$0xff]  ;;  %v8010_v13 = vld [vmem:[#allocation24_spill] sm:$0xff] }
 0x269   : > { %4089 = vmatprep.subr.bf16.mxu1 %v7986_v14  ;;  %v7999_v51 = vand.u32 4294901760, %v7998_v25  ;;  %v8011_v38 = vand.u32 4294901760, %v8010_v13  ;;  %v8012_v25 = vld [vmem:[#allocation25_spill] sm:$0xff] }
 0x26b   : > { %v4096_v14 = vpack.c.bf16 %v7999_v51, %v7997_v9  ;;  %v8013_v9 = vand.u32 4294901760, %v8012_v25  ;;  %v8014_v51 = vld [vmem:[#allocation30_spill] sm:$0xff] }
 0x26e   : > { %3707 = vmatpush1.bf16.xpose.msra.mxu0 %v7987_v27  ;;  %v8000_v27 = vld [vmem:[#allocation210_spill] sm:$0xff] }
 0x26f   : > { %3709 = vmatprep.subr.bf16.mxu0 %v7988_v19  ;;  %v8001_v19 = vld [vmem:[#allocation21_spill] sm:$0xff] }
 0x270   : > { %4091 = vmatpush1.bf16.xpose.msra.mxu1 %v7989_v0  ;;  %v8002_v0 = vand.u32 4294901760, %v8001_v19 }
 0x271   : > { %4093 = vmatprep.subr.bf16.mxu1 %v7990_v4  ;;  %v8004_v4 = vand.u32 4294901760, %v8003_v49  ;;  %v8018_v49 = vld [vmem:[#allocation214_spill] sm:$0xff] }
 0x273   : > { %v3714_v16 = vpack.c.bf16 %v8004_v4, %v8002_v0  ;;  %v8019_v4 = vld [vmem:[#allocation32_spill] sm:$0xff]  ;;  %v8021_v0 = vld [vmem:[#allocation34_spill] sm:$0xff] }
 0x274   : > { %v8020_v17 = vand.u32 4294901760, %v8019_v4  ;;  %v8022_v54 = vand.u32 4294901760, %v8021_v0  ;;  %v8037_v0 = vld [vmem:[#allocation45_spill] sm:$0xff] }
 0x276   : > { %3711 = vmatpush1.bf16.xpose.msra.mxu0 %v7995_v21  ;;  %v8009_v21 = vld [vmem:[#allocation211_spill] sm:$0xff] }
 0x277   : > { %3713 = vmatprep.subr.bf16.mxu0 %v3712_v20  ;;  %v4098_v20 = vpack.c.bf16 %v8013_v9, %v8011_v38  ;;  %v3718_v38 = vpack.c.bf16 %v8022_v54, %v8020_v17  ;;  %v8028_v9 = vld [vmem:[#allocation199_spill] sm:$0xff]  ;;  %v8038_v54 = vand.u32 4294901760, %v8037_v0 }
 0x278   : > { %4095 = vmatpush1.bf16.xpose.msra.mxu1 %v8000_v27  ;;  %v8016_v27 = vld [vmem:[#allocation31_spill] sm:$0xff] }
 0x279   : > { %4097 = vmatprep.subr.bf16.mxu1 %v4096_v14  ;;  %v8015_v14 = vand.u32 4294901760, %v8014_v51  ;;  %v8017_v19 = vand.u32 4294901760, %v8016_v27  ;;  %v8026_v27 = vld [vmem:[#allocation40_spill] sm:$0xff] }
 0x27a   : > { %v8027_v13 = vand.u32 4294901760, %v8026_v27  ;;  %v8041_v27 = vld [vmem:[#allocation50_spill] sm:$0xff] }
 0x27b   : > { %v4100_v60 = vpack.c.bf16 %v8017_v19, %v8015_v14  ;;  %v8033_v14 = vld [vmem:[#allocation42_spill] sm:$0xff] }
 0x27c   : > { %v3720_v25 = vpack.c.bf16 %v8027_v13, %v8025_v34  ;;  %v8034_v19 = vand.u32 4294901760, %v8033_v14  ;;  %v8042_v13 = vand.u32 4294901760, %v8041_v27  ;;  %v8057_v27 = vld [vmem:[#allocation62_spill] sm:$0xff] }
 0x27d   : > { %1349 = vmatmul.mubr.f32.vlgmr.msra.gmra.mrb[0].mxu0 %v8009_v21 }
 0x27e   : > { %3715 = vmatpush1.bf16.xpose.msra.mxu0 %v3714_v16  ;;  %1357 = vmatprep.mubr.f32.mxu0 %v8018_v49  ;;  %v8023_v16 = vld [vmem:[#allocation215_spill] sm:$0xff] }
 0x27f   : > { %3717 = vmatprep.subr.bf16.mxu0 %v3716_v52  ;;  %2695 = vmatmul.mubr.f32.vlgmr.msra.gmra.mrb[0].mxu1 %v8009_v21  ;;  %v8029_v21 = vld [vmem:[#allocation35_spill] sm:$0xff] }
 0x280   : > { %4099 = vmatpush1.bf16.xpose.msra.mxu1 %v4098_v20  ;;  %2703 = vmatprep.mubr.f32.mxu1 %v8018_v49  ;;  %v8030_v52 = vand.u32 4294901760, %v8029_v21  ;;  %v8031_v20 = vld [vmem:[#allocation37_spill] sm:$0xff]  ;;  %v8035_v49 = vld [vmem:[#allocation43_spill] sm:$0xff]  ;;  %v8043_v21 = vld [vmem:[#allocation52_spill] sm:$0xff] }
 0x281   : > { %4101 = vmatprep.subr.bf16.mxu1 %v4100_v60  ;;  %1361 = vmatmul.mubr.f32.gmra.mrb[2].mxu0 %v8023_v16  ;;  %v8032_v60 = vand.u32 4294901760, %v8031_v20  ;;  %v8036_v4 = vand.u32 4294901760, %v8035_v49 }
 0x282   : > { %1624 = vmatprep.mubr.f32.mxu0 %v8028_v9 }
 0x283   : > { %2707 = vmatmul.mubr.f32.gmra.mrb[2].mxu1 %v8023_v16  ;;  %v4102_v51 = vpack.c.bf16 %v8032_v60, %v8030_v52  ;;  %v4104_v17 = vpack.c.bf16 %v8036_v4, %v8034_v19  ;;  %v8040_v16 = vand.u32 4294901760, %v8039_v30  ;;  %v8044_v52 = vand.u32 4294901760, %v8043_v21  ;;  %v8045_v60 = vld [vmem:[#allocation48_spill] sm:$0xff]  ;;  %v8049_v19 = vld [vmem:[#allocation53_spill] sm:$0xff] }
 0x284   : > { %2970 = vmatprep.mubr.f32.mxu1 %v8028_v9  ;;  %v8047_v9 = vld [vmem:[#allocation49_spill] sm:$0xff]  ;;  %v8059_v21 = vld [vmem:[#allocation64_spill] sm:$0xff] }
 0x285   : > { %v3722_v34 = vpack.c.bf16 %v8040_v16, %v8038_v54  ;;  %v3724_v20 = vpack.c.bf16 %v8044_v52, %v8042_v13  ;;  %v8048_v14 = vand.u32 4294901760, %v8047_v9  ;;  %v8055_v54 = vld [vmem:[#allocation58_spill] sm:$0xff]  ;;  %v8058_v13 = vand.u32 4294901760, %v8057_v27 }
 0x286   : > { %3719 = vmatpush1.bf16.xpose.msra.mxu0 %v3718_v38  ;;  %v8046_v38 = vand.u32 4294901760, %v8045_v60  ;;  %v8056_v30 = vand.u32 4294901760, %v8055_v54  ;;  %v8060_v52 = vand.u32 4294901760, %v8059_v21  ;;  %v8061_v60 = vld [vmem:[#allocation60_spill] sm:$0xff]  ;;  %v8073_v27 = vld [vmem:[#allocation74_spill] sm:$0xff] }
 0x287   : > { %3721 = vmatprep.subr.bf16.mxu0 %v3720_v25  ;;  %v8050_v25 = vand.u32 4294901760, %v8049_v19  ;;  %v8075_v21 = vld [vmem:[#allocation76_spill] sm:$0xff] }
 0x288   : > { %4103 = vmatpush1.bf16.xpose.msra.mxu1 %v4102_v51  ;;  %v4106_v11 = vpack.c.bf16 %v8048_v14, %v8046_v38  ;;  %v8051_v51 = vld [vmem:[#allocation54_spill] sm:$0xff]  ;;  %v3728_v9 = vpack.c.bf16 %v8060_v52, %v8058_v13  ;;  %v8063_v38 = vld [vmem:[#allocation61_spill] sm:$0xff]  ;;  %v8074_v13 = vand.u32 4294901760, %v8073_v27  ;;  %v8076_v52 = vand.u32 4294901760, %v8075_v21  ;;  %v8091_v21 = vld [vmem:[#allocation88_spill] sm:$0xff] }
 0x289   : > { %4105 = vmatprep.subr.bf16.mxu1 %v4104_v17  ;;  %v8052_v49 = vand.u32 4294901760, %v8051_v51  ;;  %v8053_v17 = vld [vmem:[#allocation57_spill] sm:$0xff]  ;;  %v8064_v14 = vand.u32 4294901760, %v8063_v38  ;;  %v8089_v27 = vld [vmem:[#allocation86_spill] sm:$0xff] }
 0x28a   : > { %v8054_v0 = vand.u32 4294901760, %v8053_v17  ;;  %v8079_v38 = vld [vmem:[#allocation73_spill] sm:$0xff] }
 0x28b   : > { %v4108_v4 = vpack.c.bf16 %v8052_v49, %v8050_v25  ;;  %v8065_v25 = vld [vmem:[#allocation65_spill] sm:$0xff] }
 0x28c   : > { %v3726_v16 = vpack.c.bf16 %v8056_v30, %v8054_v0  ;;  %v8071_v0 = vld [vmem:[#allocation70_spill] sm:$0xff] }
 0x28d   : > { %v8072_v54 = vand.u32 4294901760, %v8071_v0 }
 0x28e   : > { %3723 = vmatpush1.bf16.xpose.msra.mxu0 %v3722_v34  ;;  %v8062_v34 = vand.u32 4294901760, %v8061_v60  ;;  %v3732_v60 = vpack.c.bf16 %v8076_v52, %v8074_v13  ;;  %v8090_v13 = vand.u32 4294901760, %v8089_v27  ;;  %v8092_v52 = vand.u32 4294901760, %v8091_v21  ;;  %v8105_v27 = vld [vmem:[#allocation98_spill] sm:$0xff]  ;;  %v8107_v21 = vld [vmem:[#allocation100_spill] sm:$0xff] }
 0x28f   : > { %3725 = vmatprep.subr.bf16.mxu0 %v3724_v20  ;;  %v8066_v20 = vand.u32 4294901760, %v8065_v25 }
 0x290   : > { %4107 = vmatpush1.bf16.xpose.msra.mxu1 %v4106_v11  ;;  %v4110_v19 = vpack.c.bf16 %v8064_v14, %v8062_v34  ;;  %v8067_v11 = vld [vmem:[#allocation66_spill] sm:$0xff]  ;;  %v8077_v34 = vld [vmem:[#allocation72_spill] sm:$0xff]  ;;  %v8080_v14 = vand.u32 4294901760, %v8079_v38  ;;  %v8095_v38 = vld [vmem:[#allocation85_spill] sm:$0xff] }
 0x291   : > { %4109 = vmatprep.subr.bf16.mxu1 %v4108_v4  ;;  %v8068_v51 = vand.u32 4294901760, %v8067_v11  ;;  %v8069_v4 = vld [vmem:[#allocation69_spill] sm:$0xff] }
 0x292   : > { %v8070_v17 = vand.u32 4294901760, %v8069_v4 }
 0x293   : > { %v4112_v49 = vpack.c.bf16 %v8068_v51, %v8066_v20  ;;  %v8081_v20 = vld [vmem:[#allocation77_spill] sm:$0xff] }
 0x294   : > { %v3730_v30 = vpack.c.bf16 %v8072_v54, %v8070_v17  ;;  %v8087_v17 = vld [vmem:[#allocation82_spill] sm:$0xff] }
 0x295   : > { %v8088_v0 = vand.u32 4294901760, %v8087_v17 }
 0x296   : > { %3727 = vmatpush1.bf16.xpose.msra.mxu0 %v3726_v16  ;;  %v8078_v16 = vand.u32 4294901760, %v8077_v34  ;;  %v3736_v34 = vpack.c.bf16 %v8092_v52, %v8090_v13  ;;  %v8106_v13 = vand.u32 4294901760, %v8105_v27  ;;  %v8108_v52 = vand.u32 4294901760, %v8107_v21 }
 0x297   : > { %3729 = vmatprep.subr.bf16.mxu0 %v3728_v9  ;;  %v8082_v9 = vand.u32 4294901760, %v8081_v20  ;;  %v8122_v27 = vand.u32 4294901760, %v7879_v33  ;;  %v8123_v21 = vand.u32 4294901760, %v7880_v12  ;;  %v8130_v12 = vand.u32 4294901760, %v7885_v10 }
 0x298   : > { %4111 = vmatpush1.bf16.xpose.msra.mxu1 %v4110_v19  ;;  %v4114_v25 = vpack.c.bf16 %v8080_v14, %v8078_v16  ;;  %v8083_v19 = vld [vmem:[#allocation78_spill] sm:$0xff]  ;;  %v8093_v16 = vld [vmem:[#allocation84_spill] sm:$0xff]  ;;  %v8096_v14 = vand.u32 4294901760, %v8095_v38 }
 0x299   : > { %4113 = vmatprep.subr.bf16.mxu1 %v4112_v49  ;;  %v8084_v11 = vand.u32 4294901760, %v8083_v19  ;;  %v8085_v49 = vld [vmem:[#allocation81_spill] sm:$0xff] }
 0x29a   : > { %v8086_v4 = vand.u32 4294901760, %v8085_v49 }
 0x29b   : > { %v4116_v51 = vpack.c.bf16 %v8084_v11, %v8082_v9  ;;  %v8097_v9 = vld [vmem:[#allocation89_spill] sm:$0xff] }
 0x29c   : > { %v3734_v54 = vpack.c.bf16 %v8088_v0, %v8086_v4  ;;  %v8103_v4 = vld [vmem:[#allocation94_spill] sm:$0xff] }
 0x29d   : > { %v8104_v17 = vand.u32 4294901760, %v8103_v4 }
 0x29e   : > { %3731 = vmatpush1.bf16.xpose.msra.mxu0 %v3730_v30  ;;  %v8094_v30 = vand.u32 4294901760, %v8093_v16  ;;  %v3740_v16 = vpack.c.bf16 %v8108_v52, %v8106_v13  ;;  %v8124_v52 = vand.u32 4294901760, %v7881_v58  ;;  %v8131_v58 = vand.u32 4294901760, %v7717_v55 }
 0x29f   : > { %3733 = vmatprep.subr.bf16.mxu0 %v3732_v60  ;;  %v8098_v60 = vand.u32 4294901760, %v8097_v9  ;;  %v8112_v9 = vld [vmem:[#allocation101_spill] sm:$0xff] }
 0x2a0   : > { %4115 = vmatpush1.bf16.xpose.msra.mxu1 %v4114_v25  ;;  %v4118_v20 = vpack.c.bf16 %v8096_v14, %v8094_v30  ;;  %v8099_v25 = vld [vmem:[#allocation90_spill] sm:$0xff]  ;;  %v8110_v30 = vld [vmem:[#allocation97_spill] sm:$0xff] }
 0x2a1   : > { %4117 = vmatprep.subr.bf16.mxu1 %v4116_v51  ;;  %v8100_v19 = vand.u32 4294901760, %v8099_v25  ;;  %v8101_v51 = vld [vmem:[#allocation93_spill] sm:$0xff]  ;;  %v8111_v38 = vand.u32 4294901760, %v8110_v30  ;;  %v8129_v30 = vand.u32 4294901760, %v7884_v24  ;;  %v8136_v24 = vand.u32 4294901760, %v7775_v45 }
 0x2a2   : > { %v8102_v49 = vand.u32 4294901760, %v8101_v51 }
 0x2a3   : > { %v4120_v11 = vpack.c.bf16 %v8100_v19, %v8098_v60  ;;  %v8116_v19 = vand.u32 4294901760, %v7874_v22  ;;  %v8125_v22 = vand.u32 4294901760, %v7882_v57  ;;  %v8133_v57 = vand.u32 4294901760, %v7771_v63  ;;  %v8143_v63 = vld [vmem:[#allocation141_spill] sm:$0xff] }
 0x2a4   : > { %v3738_v0 = vpack.c.bf16 %v8104_v17, %v8102_v49  ;;  %v8118_v49 = vand.u32 4294901760, %v7876_v8 }
 0x2a6   : > { %3735 = vmatpush1.bf16.xpose.msra.mxu0 %v3734_v54  ;;  %v8109_v54 = vand.u32 4294901760, %v7870_v40  ;;  %v8119_v40 = vld [vmem:[#allocation112_spill] sm:$0xff] }
 0x2a7   : > { %3737 = vmatprep.subr.bf16.mxu0 %v3736_v34  ;;  %v8113_v34 = vand.u32 4294901760, %v8112_v9  ;;  %v8120_v4 = vand.u32 4294901760, %v8119_v40 }
 0x2a8   : > { %4119 = vmatpush1.bf16.xpose.msra.mxu1 %v4118_v20  ;;  %v4122_v14 = vpack.c.bf16 %v8111_v38, %v8109_v54  ;;  %v8114_v20 = vld [vmem:[#allocation102_spill] sm:$0xff]  ;;  %v8127_v54 = vand.u32 4294901760, %v7715_v48  ;;  %v4130_v38 = vpack.c.bf16 %v8130_v12, %v8129_v30  ;;  %v8134_v48 = vand.u32 4294901760, %v7772_v37 }
 0x2a9   : > { %4121 = vmatprep.subr.bf16.mxu1 %v4120_v11  ;;  %v8115_v60 = vand.u32 4294901760, %v8114_v20  ;;  %v8117_v11 = vand.u32 4294901760, %v7875_v47  ;;  %v3744_v17 = vpack.c.bf16 %v8120_v4, %v8118_v49  ;;  %v8126_v47 = vand.u32 4294901760, %v7883_v32  ;;  %v8138_v20 = vld [vmem:[#allocation133_spill] sm:$0xff] }
 0x2aa   : > { %v8135_v32 = vand.u32 4294901760, %v7723_v5  ;;  %v8139_v55 = vand.u32 4294901760, %v8138_v20  ;;  %v8144_v37 = vand.u32 4294901760, %v8143_v63  ;;  %v8145_v5 = vld [vmem:[#allocation142_spill] sm:$0xff]  ;;  %v8147_v49 = vand.u32 4294901760, %v7783_v44 }
 0x2ab   : > { %v4124_v25 = vpack.c.bf16 %v8115_v60, %v8113_v34  ;;  %v3742_v51 = vpack.c.bf16 %v8117_v11, %v8116_v19  ;;  %v3746_v8 = vpack.c.bf16 %v8126_v47, %v8125_v22  ;;  %v8137_v34 = vand.u32 4294901760, %v7773_v7  ;;  %v8148_v7 = vld [vmem:[#allocation148_spill] sm:$0xff]  ;;  %v8190_v63 = vld [vmem:[#allocation194_spill] sm:$0xff] }
 0x2ac   : > { %v3752_v10 = vpack.c.bf16 %v8136_v24, %v8135_v32  ;;  %v8149_v40 = vand.u32 4294901760, %v8148_v7  ;;  %v8155_v44 = vand.u32 4294901760, %v7897_v41  ;;  %v8156_v22 = vand.u32 4294901760, %v7900_v23  ;;  %v8180_v32 = vld [vmem:[#allocation181_spill] sm:$0xff] }
 0x2ad   : > { %v4134_v60 = vpack.c.bf16 %v8139_v55, %v8137_v34  ;;  %v8158_v47 = vand.u32 4294901760, %v7903_v39  ;;  %v8163_v41 = vand.u32 4294901760, %v7796_v59  ;;  %v8164_v23 = vand.u32 4294901760, %v7801_v53  ;;  %v8170_v59 = vld [vmem:[#allocation177_spill] sm:$0xff]  ;;  %v8172_v53 = vld [vmem:[#allocation178_spill] sm:$0xff] }
 0x2ae   : > { %3739 = vmatpush1.bf16.xpose.msra.mxu0 %v3738_v0  ;;  %v8121_v0 = vand.u32 4294901760, %v7878_v6  ;;  %v8128_v6 = vand.u32 4294901760, %v7716_v18  ;;  %v3750_v18 = vpack.c.bf16 %v8134_v48, %v8133_v57  ;;  %v3756_v4 = vpack.c.bf16 %v8149_v40, %v8147_v49  ;;  %v8178_v48 = vld [vmem:[#allocation180_spill] sm:$0xff]  ;;  %v8184_v34 = vld [vmem:[#allocation186_spill] sm:$0xff]  ;;  %v8196_v40 = vld [vmem:[#allocation193_spill] sm:$0xff] }
 0x2af   : > { %3741 = vmatprep.subr.bf16.mxu0 %v3740_v16  ;;  %v4128_v16 = vpack.c.bf16 %v8124_v52, %v8123_v21  ;;  %v8154_v52 = vand.u32 4294901760, %v7898_v42  ;;  %v8162_v42 = vand.u32 4294901760, %v7795_v31  ;;  %v8165_v39 = vand.u32 4294901760, %v7802_v61  ;;  %v8194_v49 = vld [vmem:[#allocation192_spill] sm:$0xff] }
 0x2b0   : > { %4123 = vmatpush1.bf16.xpose.msra.mxu1 %v4122_v14  ;;  %v4126_v13 = vpack.c.bf16 %v8122_v27, %v8121_v0  ;;  %v3748_v33 = vpack.c.bf16 %v8128_v6, %v8127_v54  ;;  %v8132_v14 = vand.u32 4294901760, %v7718_v15  ;;  %v8140_v15 = vand.u32 4294901760, %v7776_v28 }
 0x2b1   : > { %4125 = vmatprep.subr.bf16.mxu1 %v4124_v25  ;;  %v8141_v25 = vld [vmem:[#allocation138_spill] sm:$0xff]  ;;  %v8151_v28 = vand.u32 4294901760, %v7782_v50  ;;  %v8152_v27 = vand.u32 4294901760, %v7895_v62  ;;  %v8159_v62 = vand.u32 4294901760, %v7902_v1  ;;  %v8161_v54 = vand.u32 4294901760, %v7794_v46 }
 0x2b2   : > { %v4132_v9 = vpack.c.bf16 %v8132_v14, %v8131_v58  ;;  %v8142_v19 = vand.u32 4294901760, %v8141_v25  ;;  %v3764_v1 = vpack.c.bf16 %v8165_v39, %v8164_v23  ;;  %v8168_v46 = vand.u32 4294901760, %v7803_v2  ;;  %v8174_v14 = vld [vmem:[#allocation182_spill] sm:$0xff]  ;;  %v8215_v23 = vld [vmem:[#allocation27_spill] sm:$0xff] }
 0x2b3   : > { %v8169_v12 = vand.u32 4294901760, %v7804_v56  ;;  %v8171_v31 = vand.u32 4294901760, %v8170_v59  ;;  %v8173_v58 = vand.u32 4294901760, %v8172_v53  ;;  %v8181_v2 = vand.u32 4294901760, %v8180_v32  ;;  %v8182_v56 = vld [vmem:[#allocation185_spill] sm:$0xff]  ;;  %v8188_v25 = vld [vmem:[#allocation190_spill] sm:$0xff] }
 0x2b4   : > { %v4136_v11 = vpack.c.bf16 %v8142_v19, %v8140_v15  ;;  %v8185_v20 = vand.u32 4294901760, %v8184_v34  ;;  %v8189_v19 = vand.u32 4294901760, %v8188_v25  ;;  %v8195_v7 = vand.u32 4294901760, %v8194_v49  ;;  %v8216_v39 = vld [vmem:[#allocation23_spill] sm:$0xff]  ;;  %v8224_v59 = vld [vmem:[#allocation44_spill] sm:$0xff] }
 0x2b5   : > { %v3766_v61 = vpack.c.bf16 %v8173_v58, %v8171_v31  ;;  %v8225_v31 = vld [vmem:[#allocation51_spill] sm:$0xff]  ;;  %v8236_v32 = vld [vmem:[#allocation80_spill] sm:$0xff] }
 0x2b6   : > { %3743 = vmatpush1.bf16.xpose.msra.mxu0 %v3742_v51  ;;  %v8146_v51 = vand.u32 4294901760, %v8145_v5  ;;  %v8192_v5 = vld [vmem:[#allocation196_spill] sm:$0xff]  ;;  %v8226_v53 = vld [vmem:[#allocation47_spill] sm:$0xff] }
 0x2b7   : > { %3745 = vmatprep.subr.bf16.mxu0 %v3744_v17  ;;  %v8150_v17 = vand.u32 4294901760, %v7781_v29  ;;  %v8157_v29 = vand.u32 4294901760, %v7792_v3  ;;  %v3762_v3 = vpack.c.bf16 %v8163_v41, %v8162_v42  ;;  %v8212_v42 = vld [vmem:[#allocation207_spill] sm:$0xff]  ;;  %v8213_v41 = vld [vmem:[#allocation20_spill] sm:$0xff] }
 0x2b8   : > { %4127 = vmatpush1.bf16.xpose.msra.mxu1 %v4126_v13  ;;  %v3754_v45 = vpack.c.bf16 %v8146_v51, %v8144_v37  ;;  %v8153_v13 = vand.u32 4294901760, %v7786_v26  ;;  %v8160_v26 = vand.u32 4294901760, %v7793_v43  ;;  %v8167_v43 = vand.u32 4294901760, %v7799_v35  ;;  %v8227_v58 = vld [vmem:[#allocation55_spill] sm:$0xff] }
 0x2b9   : > { %4129 = vmatprep.subr.bf16.mxu1 %v4128_v16  ;;  %v4138_v0 = vpack.c.bf16 %v8151_v28, %v8150_v17  ;;  %v3758_v16 = vpack.c.bf16 %v8155_v44, %v8154_v52  ;;  %v3760_v50 = vpack.c.bf16 %v8157_v29, %v8156_v22  ;;  %v8191_v37 = vand.u32 4294901760, %v8190_v63  ;;  %v8198_v28 = vld [vmem:[#allocation197_spill] sm:$0xff]  ;;  %v8202_v52 = vld [vmem:[#allocation202_spill] sm:$0xff]  ;;  %v8241_v34 = vld [vmem:[#allocation99_spill] sm:$0xff] }
 0x2ba   : > { %v4140_v21 = vpack.c.bf16 %v8153_v13, %v8152_v27  ;;  %v4144_v6 = vpack.c.bf16 %v8161_v54, %v8160_v26  ;;  %v8193_v51 = vand.u32 4294901760, %v8192_v5  ;;  %v8200_v27 = vld [vmem:[#allocation198_spill] sm:$0xff]  ;;  %v8203_v44 = vand.u32 4294901760, %v8202_v52  ;;  %v8246_v25 = vld [vmem:[#allocation107_spill] sm:$0xff]  ;;  %v8264_v52 = vld [vmem:[#allocation164_spill] sm:$0xff] }
 0x2bb   : > { %v8201_v13 = vand.u32 4294901760, %v8200_v27  ;;  %v8210_v54 = vld [vmem:[#allocation14_spill] sm:$0xff]  ;;  %v8249_v63 = vld [vmem:[#allocation123_spill] sm:$0xff] }
 0x2bc   : > { %v8251_v5 = vld [vmem:[#allocation127_spill] sm:$0xff] }
 0x2bd   : > { %v8254_v49 = vld [vmem:[#allocation131_spill] sm:$0xff] }
 0x2be   : > { %3747 = vmatpush1.bf16.xpose.msra.mxu0 %v3746_v8  ;;  %v4142_v8 = vpack.c.bf16 %v8159_v62, %v8158_v47  ;;  %v8208_v62 = vld [vmem:[#allocation205_spill] sm:$0xff]  ;;  %v8261_v27 = vld [vmem:[#allocation159_spill] sm:$0xff] }
 0x2bf   : > { %3749 = vmatprep.subr.bf16.mxu0 %v3748_v33  ;;  %v8166_v33 = vand.u32 4294901760, %v7798_v36  ;;  %v8176_v36 = vld [vmem:[#allocation184_spill] sm:$0xff] }
 0x2c0   : > { %4131 = vmatpush1.bf16.xpose.msra.mxu1 %v4130_v38  ;;  %v4148_v38 = vpack.c.bf16 %v8169_v12, %v8168_v46  ;;  %v8177_v57 = vand.u32 4294901760, %v8176_v36  ;;  %v8221_v46 = vld [vmem:[#allocation38_spill] sm:$0xff]  ;;  %v8222_v12 = vld [vmem:[#allocation36_spill] sm:$0xff]  ;;  %v8231_v36 = vld [vmem:[#allocation67_spill] sm:$0xff] }
 0x2c1   : > { %4133 = vmatprep.subr.bf16.mxu1 %v4132_v9  ;;  %v4146_v30 = vpack.c.bf16 %v8167_v43, %v8166_v33  ;;  %v8175_v9 = vand.u32 4294901760, %v8174_v14  ;;  %v8218_v33 = vld [vmem:[#allocation134_spill] sm:$0xff]  ;;  %v8219_v43 = vld [vmem:[#allocation199_spill] sm:$0xff] }
 0x2c2   : > { %v8229_v14 = vld [vmem:[#allocation63_spill] sm:$0xff] }
 0x2c3   : > { %v3768_v35 = vpack.c.bf16 %v8177_v57, %v8175_v9  ;;  %v8230_v9 = vld [vmem:[#allocation59_spill] sm:$0xff]  ;;  %v8232_v57 = vld [vmem:[#allocation68_spill] sm:$0xff] }
 0x2c6   : > { %3751 = vmatpush1.bf16.xpose.msra.mxu0 %v3750_v18  ;;  %v8179_v18 = vand.u32 4294901760, %v8178_v48  ;;  %v8234_v48 = vld [vmem:[#allocation71_spill] sm:$0xff] }
 0x2c7   : > { %3753 = vmatprep.subr.bf16.mxu0 %v3752_v10  ;;  %v8183_v10 = vand.u32 4294901760, %v8182_v56  ;;  %v8239_v56 = vld [vmem:[#allocation91_spill] sm:$0xff] }
 0x2c8   : > { %4135 = vmatpush1.bf16.xpose.msra.mxu1 %v4134_v60  ;;  %v4150_v24 = vpack.c.bf16 %v8181_v2, %v8179_v18  ;;  %v8186_v60 = vld [vmem:[#allocation189_spill] sm:$0xff]  ;;  %v8235_v18 = vld [vmem:[#allocation79_spill] sm:$0xff] }
 0x2c9   : > { %4137 = vmatprep.subr.bf16.mxu1 %v4136_v11  ;;  %v4152_v55 = vpack.c.bf16 %v8185_v20, %v8183_v10  ;;  %v8187_v15 = vand.u32 4294901760, %v8186_v60  ;;  %v8237_v2 = vld [vmem:[#allocation87_spill] sm:$0xff]  ;;  %v8240_v10 = vld [vmem:[#allocation92_spill] sm:$0xff] }
 0x2ca   : > { %v8242_v20 = vld [vmem:[#allocation95_spill] sm:$0xff]  ;;  %v8244_v60 = vld [vmem:[#allocation104_spill] sm:$0xff] }
 0x2cb   : > { %v3770_v11 = vpack.c.bf16 %v8189_v19, %v8187_v15  ;;  %v8245_v15 = vld [vmem:[#allocation111_spill] sm:$0xff] }
 0x2cc   : > { %v8247_v19 = vld [vmem:[#allocation115_spill] sm:$0xff] }
 0x2ce   : > { %3755 = vmatpush1.bf16.xpose.msra.mxu0 %v3754_v45  ;;  %v3772_v45 = vpack.c.bf16 %v8193_v51, %v8191_v37  ;;  %v8250_v37 = vld [vmem:[#allocation119_spill] sm:$0xff]  ;;  %v8252_v51 = vld [vmem:[#allocation128_spill] sm:$0xff] }
 0x2cf   : > { %3757 = vmatprep.subr.bf16.mxu0 %v3756_v4  ;;  %v8197_v4 = vand.u32 4294901760, %v8196_v40  ;;  %v8256_v40 = vld [vmem:[#allocation140_spill] sm:$0xff] }
 0x2d0   : > { %4139 = vmatpush1.bf16.xpose.msra.mxu1 %v4138_v0  ;;  %v8199_v0 = vand.u32 4294901760, %v8198_v28  ;;  %v8259_v28 = vld [vmem:[#allocation151_spill] sm:$0xff] }
 0x2d1   : > { %4141 = vmatprep.subr.bf16.mxu1 %v4140_v21  ;;  %v4154_v17 = vpack.c.bf16 %v8197_v4, %v8195_v7  ;;  %v8255_v7 = vld [vmem:[#allocation139_spill] sm:$0xff] }
 0x2d2   : > { %v4156_v21 = vpack.c.bf16 %v8201_v13, %v8199_v0  ;;  %v8257_v4 = vld [vmem:[#allocation147_spill] sm:$0xff]  ;;  %v8260_v0 = vld [vmem:[#allocation152_spill] sm:$0xff] }
 0x2d3   : > { %v8262_v13 = vld [vmem:[#allocation155_spill] sm:$0xff] }
 0x2d6   : > { %3759 = vmatpush1.bf16.xpose.msra.mxu0 %v3758_v16  ;;  %v8204_v16 = vld [vmem:[#allocation203_spill] sm:$0xff] }
 0x2d7   : > { %3761 = vmatprep.subr.bf16.mxu0 %v3760_v50  ;;  %v8205_v22 = vand.u32 4294901760, %v8204_v16  ;;  %v8206_v50 = vld [vmem:[#allocation204_spill] sm:$0xff]  ;;  %v8266_v16 = vld [vmem:[#allocation167_spill] sm:$0xff] }
 0x2d8   : > { %4143 = vmatpush1.bf16.xpose.msra.mxu1 %v4142_v8  ;;  %v8207_v47 = vand.u32 4294901760, %v8206_v50  ;;  %v8209_v8 = vand.u32 4294901760, %v8208_v62  ;;  %v8269_v50 = vld [vmem:[#allocation183_spill] sm:$0xff] }
 0x2d9   : > { %4145 = vmatprep.subr.bf16.mxu1 %v4144_v6  ;;  %v3774_v29 = vpack.c.bf16 %v8205_v22, %v8203_v44  ;;  %v8211_v6 = vld [vmem:[#allocation18_spill] sm:$0xff]  ;;  %v8265_v44 = vld [vmem:[#allocation171_spill] sm:$0xff] }
 0x2da   : > { %v4158_v26 = vpack.c.bf16 %v8209_v8, %v8207_v47  ;;  %v8267_v22 = vld [vmem:[#allocation175_spill] sm:$0xff]  ;;  %v8272_v8 = vld [vmem:[#allocation188_spill] sm:$0xff] }
 0x2db   : > { %v8270_v47 = vld [vmem:[#allocation179_spill] sm:$0xff] }
 0x2dc   : > { %v8271_v62 = vld [vmem:[#allocation187_spill] sm:$0xff] }
 0x2de   : > { %3763 = vmatpush1.bf16.xpose.msra.mxu0 %v3762_v3  ;;  %v8214_v3 = vld [vmem:[#allocation126_spill] sm:$0xff] }
 0x2df   : > { %3765 = vmatprep.subr.bf16.mxu0 %v3764_v1  ;;  %v8217_v1 = vld [vmem:[#allocation29_spill] sm:$0xff] }
 0x2e0   : > { %4147 = vmatpush1.bf16.xpose.msra.mxu1 %v4146_v30  ;;  %v8220_v30 = vld [vmem:[#allocation33_spill] sm:$0xff] }
 0x2e1   : > { %4149 = vmatprep.subr.bf16.mxu1 %v4148_v38  ;;  %v8223_v38 = vld [vmem:[#allocation41_spill] sm:$0xff] }
 0x2e6   : > { %3767 = vmatpush1.bf16.xpose.msra.mxu0 %v3766_v61  ;;  %v8228_v61 = vld [vmem:[#allocation56_spill] sm:$0xff] }
 0x2e7   : > { %3769 = vmatprep.subr.bf16.mxu0 %v3768_v35  ;;  %v8233_v35 = vld [vmem:[#allocation75_spill] sm:$0xff] }
 0x2e8   : > { %4151 = vmatpush1.bf16.xpose.msra.mxu1 %v4150_v24  ;;  %v8238_v24 = vld [vmem:[#allocation83_spill] sm:$0xff] }
 0x2e9   : > { %4153 = vmatprep.subr.bf16.mxu1 %v4152_v55  ;;  %v8243_v55 = vld [vmem:[#allocation103_spill] sm:$0xff] }
 0x2ee   : > { %3771 = vmatpush1.bf16.xpose.msra.mxu0 %v3770_v11  ;;  %v8248_v11 = vld [vmem:[#allocation116_spill] sm:$0xff] }
 0x2ef   : > { %3773 = vmatprep.subr.bf16.mxu0 %v3772_v45  ;;  %v8253_v45 = vld [vmem:[#allocation135_spill] sm:$0xff] }
 0x2f0   : > { %4155 = vmatpush1.bf16.xpose.msra.mxu1 %v4154_v17  ;;  %v8258_v17 = vld [vmem:[#allocation143_spill] sm:$0xff] }
 0x2f1   : > { %4157 = vmatprep.subr.bf16.mxu1 %v4156_v21  ;;  %v8263_v21 = vld [vmem:[#allocation163_spill] sm:$0xff] }
 0x2f6   : > { %3775 = vmatpush1.bf16.xpose.msra.mxu0 %v3774_v29  ;;  %v8268_v29 = vld [vmem:[#allocation176_spill] sm:$0xff] }
 0x2f7   : > { %3777 = vmatprep.subr.bf16.mxu0 %v8210_v54  ;;  %v8274_v54 = vld [vmem:[#allocation191_spill] sm:$0xff] }
 0x2f8   : > { %4159 = vmatpush1.bf16.xpose.msra.mxu1 %v4158_v26  ;;  %v8273_v26 = vld [vmem:[#allocation195_spill] sm:$0xff] }
 0x2f9   : > { %4161 = vmatprep.subr.bf16.mxu1 %v8211_v6  ;;  %v8275_v6 = vld [vmem:[#allocation200_spill] sm:$0xff] }
 0x2fd   : > { %1626 = vmatmul.mubr.f32.vlgmr.msra.gmra.mrb[0].mxu0 %v8212_v42 }
 0x2fe   : > { %3779 = vmatpush1.bf16.xpose.msra.mxu0 %v8213_v41  ;;  %1632 = vmatprep.mubr.f32.mxu0 %v8214_v3  ;;  %v8276_v41 = vld [vmem:[#allocation201_spill] sm:$0xff] }
 0x2ff   : > { %3781 = vmatprep.subr.bf16.mxu0 %v8215_v23  ;;  %2972 = vmatmul.mubr.f32.vlgmr.msra.gmra.mrb[0].mxu1 %v8212_v42  ;;  %v8277_v23 = vld [vmem:[#allocation210_spill] sm:$0xff] }
 0x300   : > { %4163 = vmatpush1.bf16.xpose.msra.mxu1 %v8216_v39  ;;  %2978 = vmatprep.mubr.f32.mxu1 %v8214_v3  ;;  %v3133_v39 = vlaneseq }
 0x301   : > { %4165 = vmatprep.subr.bf16.mxu1 %v8217_v1  ;;  %1634 = vmatmul.mubr.f32.gmra.mrb[2].mxu0 %v8218_v33 }
 0x302   : > { %1769 = vmatprep.mubr.f32.mxu0 %v8219_v43  ;;  %v3134_v1 = vshrl.u32 %v3133_v39, 7 }
 0x303   : > { %2980 = vmatmul.mubr.f32.gmra.mrb[2].mxu1 %v8218_v33 }
 0x304   : > { %3115 = vmatprep.mubr.f32.mxu1 %v8219_v43  ;;  %v3135_v43 = vsub.s32 0, %v3134_v1 }
 0x306   : > { %3783 = vmatpush1.bf16.xpose.msra.mxu0 %v8220_v30  ;;  %v3131_v30 = vld [vmem:[%s301_s29] sm:$0xf] }
 0x307   : > { %3785 = vmatprep.subr.bf16.mxu0 %v8221_v46  ;;  %v3139_v46 = vsub.s32 1, %v3134_v1 }
 0x308   : > { %4167 = vmatpush1.bf16.xpose.msra.mxu1 %v8222_v12  ;;  %v3143_v12 = vsub.s32 2, %v3134_v1 }
 0x309   : > { %4169 = vmatprep.subr.bf16.mxu1 %v8223_v38  ;;  %v3147_v38 = vsub.s32 3, %v3134_v1 }
 0x30e   : > { %3787 = vmatpush1.bf16.xpose.msra.mxu0 %v8224_v59 }
 0x30f   : > { %3789 = vmatprep.subr.bf16.mxu0 %v8225_v31  ;;  %v3144_v31 = vrot.slane %v3131_v30, %v3143_v12 }
 0x310   : > { %4171 = vmatpush1.bf16.xpose.msra.mxu1 %v8226_v53 }
 0x311   : > { %4173 = vmatprep.subr.bf16.mxu1 %v8227_v58  ;;  %v3148_v58 = vrot.slane %v3131_v30, %v3147_v38 }
 0x316   : > { %3791 = vmatpush1.bf16.xpose.msra.mxu0 %v8228_v61 }
 0x317   : > { %3793 = vmatprep.subr.bf16.mxu0 %v8229_v14 }
 0x318   : > { %4175 = vmatpush1.bf16.xpose.msra.mxu1 %v8230_v9 }
 0x319   : > { %4177 = vmatprep.subr.bf16.mxu1 %v8231_v36 }
 0x31e   : > { %3795 = vmatpush1.bf16.xpose.msra.mxu0 %v8232_v57 }
 0x31f   : > { %3797 = vmatprep.subr.bf16.mxu0 %v8233_v35 }
 0x320   : > { %4179 = vmatpush1.bf16.xpose.msra.mxu1 %v8234_v48 }
 0x321   : > { %4181 = vmatprep.subr.bf16.mxu1 %v8235_v18 }
 0x326   : > { %3799 = vmatpush1.bf16.xpose.msra.mxu0 %v8236_v32 }
 0x327   : > { %3801 = vmatprep.subr.bf16.mxu0 %v8237_v2 }
 0x328   : > { %4183 = vmatpush1.bf16.xpose.msra.mxu1 %v8238_v24 }
 0x329   : > { %4185 = vmatprep.subr.bf16.mxu1 %v8239_v56 }
 0x32e   : > { %3803 = vmatpush1.bf16.xpose.msra.mxu0 %v8240_v10 }
 0x32f   : > { %3805 = vmatprep.subr.bf16.mxu0 %v8241_v34  ;;  %v3178_v34 = vld [vmem:[%s6901_s1] sm:$0xff] (!%p3443_p11) }
 0x330   : > { %4187 = vmatpush1.bf16.xpose.msra.mxu1 %v8242_v20  ;;  %v4514_v20 = vmov (!%p3443_p11), 0  }
 0x331   : > { %4189 = vmatprep.subr.bf16.mxu1 %v8243_v55  ;;  %4344 = vset.pattern.permute.xlu0 (!%p3443_p11), %v4514_v20  ;;  %v3179_v55 = vld [vmem:[%s6901_s1 + $0x8] sm:$0xff] (!%p3443_p11) }
 0x332   : > { %3181 = vperm.xlu0 (!%p3443_p11), %4344, %v3178_v34  }
 0x336   : > { %3807 = vmatpush1.bf16.xpose.msra.mxu0 %v8244_v60  ;;  %3184 = vperm.xlu0 (!%p3443_p11), %4344, %v3179_v55   ;;  %v3168_v60 = vand.u32 (!%p3443_p11), 127, %v3133_v39 }
 0x337   : > { %3809 = vmatprep.subr.bf16.mxu0 %v8245_v15 }
 0x338   : > { %4191 = vmatpush1.bf16.xpose.msra.mxu1 %v8246_v25  ;;  %v3169_v15 = vadd.s32 (!%p3443_p11), 128, %v3168_v60  ;;  %v3170_v25 = vadd.s32 (!%p3443_p11), 256, %v3168_v60 }
 0x339   : > { %4193 = vmatprep.subr.bf16.mxu1 %v8247_v19  ;;  %v3173_v19 = vstv (!%p3443_p11), %s3444_s21 }
 0x33e   : > { %3811 = vmatpush1.bf16.xpose.msra.mxu0 %v8248_v11  ;;  %v3171_v11 = vadd.s32 (!%p3443_p11), 384, %v3168_v60 }
 0x33f   : > { %3813 = vmatprep.subr.bf16.mxu0 %v8249_v63  ;;  %v6727_v63 = vadd.s32 (!%p3443_p11), %v3173_v19, %v3168_v60 }
 0x340   : > { %4195 = vmatpush1.bf16.xpose.msra.mxu1 %v8250_v37  ;;  %v6729_v37 = vadd.s32 (!%p3443_p11), %v3173_v19, %v3169_v15 }
 0x341   : > { %4197 = vmatprep.subr.bf16.mxu1 %v8251_v5  ;;  %v6731_v5 = vadd.s32 (!%p3443_p11), %v3173_v19, %v3170_v25 }
 0x346   : > { %3815 = vmatpush1.bf16.xpose.msra.mxu0 %v8252_v51  ;;  %v6733_v51 = vadd.s32 (!%p3443_p11), %v3173_v19, %v3171_v11 }
 0x347   : > { %3817 = vmatprep.subr.bf16.mxu0 %v8253_v45 }
 0x348   : > { %4199 = vmatpush1.bf16.xpose.msra.mxu1 %v8254_v49 }
 0x349   : > { %4201 = vmatprep.subr.bf16.mxu1 %v8255_v7 }
 0x34e   : > { %3819 = vmatpush1.bf16.xpose.msra.mxu0 %v8256_v40 }
 0x34f   : > { %3821 = vmatprep.subr.bf16.mxu0 %v8257_v4 }
 0x350   : > { %4203 = vmatpush1.bf16.xpose.msra.mxu1 %v8258_v17 }
 0x351   : > { %4205 = vmatprep.subr.bf16.mxu1 %v8259_v28 }
 0x356   : > { %3823 = vmatpush1.bf16.xpose.msra.mxu0 %v8260_v0 }
 0x357   : > { %3825 = vmatprep.subr.bf16.mxu0 %v8261_v27 }
 0x358   : > { %4207 = vmatpush1.bf16.xpose.msra.mxu1 %v8262_v13 }
 0x359   : > { %4209 = vmatprep.subr.bf16.mxu1 %v8263_v21 }
 0x35e   : > { %3827 = vmatpush1.bf16.xpose.msra.mxu0 %v8264_v52 }
 0x35f   : > { %3829 = vmatprep.subr.bf16.mxu0 %v8265_v44 }
 0x360   : > { %4211 = vmatpush1.bf16.xpose.msra.mxu1 %v8266_v16 }
 0x361   : > { %4213 = vmatprep.subr.bf16.mxu1 %v8267_v22 }
 0x366   : > { %3831 = vmatpush1.bf16.xpose.msra.mxu0 %v8268_v29 }
 0x367   : > { %3833 = vmatprep.subr.bf16.mxu0 %v8269_v50 }
 0x368   : > { %4215 = vmatpush1.bf16.xpose.msra.mxu1 %v8270_v47 }
 0x369   : > { %4217 = vmatprep.subr.bf16.mxu1 %v8271_v62 }
 0x36e   : > { %3835 = vmatpush1.bf16.xpose.msra.mxu0 %v8272_v8 }
 0x36f   : > { %3837 = vmatprep.subr.bf16.mxu0 %v8273_v26 }
 0x370   : > { %4219 = vmatpush1.bf16.xpose.msra.mxu1 %v8274_v54 }
 0x371   : > { %4221 = vmatprep.subr.bf16.mxu1 %v8275_v6 }
 0x376   : > { %3839 = vmatpush1.bf16.xpose.msra.mxu0 %v8276_v41 }
 0x378   : > { %4223 = vmatpush1.bf16.xpose.msra.mxu1 %v8277_v23 }
 0x37d   : > { %1771 = vmatmul.mubr.f32.vlgmr.msra.gmra.mrb[0].mxu0 %v8212_v42 }
 0x37e   : > { %1777 = vmatprep.mubr.f32.mxu0 %v8214_v3 }
 0x37f   : > { %3117 = vmatmul.mubr.f32.vlgmr.msra.gmra.mrb[0].mxu1 %v8212_v42  ;;  %v3136_v42 = vrot.slane %v3131_v30, %v3135_v43 }
 0x380   : > { %3123 = vmatprep.mubr.f32.mxu1 %v8214_v3  ;;  %v3140_v3 = vrot.slane %v3131_v30, %v3139_v46 }
 0x381   : > { %1779 = vmatmul.mubr.f32.gmra.mrb[2].mxu0 %v8218_v33 }
 0x383   : > { %3125 = vmatmul.mubr.f32.gmra.mrb[2].mxu1 %v8218_v33 }
 0x3b1   : > { %v6735_v45 = vpop.permute.xlu0 (!%p3443_p11), %3181 }
 0x3b2   : > { %vm3186_vm0 = vcmp.eq.s32.totalorder (!%p3443_p11), %v6727_v63, %v6735_v45  ;;  %vm3187_vm1 = vcmp.eq.s32.totalorder (!%p3443_p11), %v6729_v37, %v6735_v45  ;;  %vm3188_vm2 = vcmp.eq.s32.totalorder (!%p3443_p11), %v6731_v5, %v6735_v45  ;;  %vm3189_vm3 = vcmp.eq.s32.totalorder (!%p3443_p11), %v6733_v51, %v6735_v45 }
 0x3b5   : > { %v6753_v4 = vpop.permute.xlu0 (!%p3443_p11), %3184 }
 0x3b6   : > { %vm3190_vm4 = vcmp.eq.s32.totalorder (!%p3443_p11), %v6727_v63, %v6753_v4  ;;  %vm3191_vm5 = vcmp.eq.s32.totalorder (!%p3443_p11), %v6729_v37, %v6753_v4  ;;  %vm3192_vm6 = vcmp.eq.s32.totalorder (!%p3443_p11), %v6731_v5, %v6753_v4  ;;  %vm3193_vm7 = vcmp.eq.s32.totalorder (!%p3443_p11), %v6733_v51, %v6753_v4 }
 0x450   : > { %v1772_v59 = vpop.f32.mrb[0].mxu0 }
 0x451   : > { %v6699_v53 = vmul.f32 %v3136_v42, %v1772_v59  ;;  %v1774_v33 = vpop.f32.mrb[1].mxu0 }
 0x452   : > { %v6701_v61 = vmul.f32 %v3140_v3, %v1774_v33  ;;  %v3118_v14 = vpop.f32.mrb[0].mxu1  ;;  %3166 = sbr.rel (%p3443_p11) target bundleno = 1302 (0x516), region = 48 }
 0x453   : > { %v6703_v9 = vmul.f32 %v3144_v31, %v3118_v14  ;;  %v3120_v36 = vpop.f32.mrb[1].mxu1  ;;  %v3194_v49 = vsel (!%p3443_p11), %vm3186_vm0, %v6699_v53, 0.0 }
 0x454   : > { %v1780_v57 = vpop.f32.mrb[2].mxu0  ;;  %v6705_v35 = vmul.f32 %v3148_v58, %v3120_v36  ;;  %v3195_v7 = vsel (!%p3443_p11), %vm3187_vm1, %v6701_v61, 0.0 }
 0x455   : > { %v6707_v48 = vmul.f32 %v3136_v42, %v1780_v57  ;;  %v1782_v18 = vpop.f32.mrb[3].mxu0  ;;  %v3202_v40 = vadd.f32 (!%p3443_p11), %v3195_v7, %v3194_v49  ;;  %v3196_v17 = vsel (!%p3443_p11), %vm3188_vm2, %v6703_v9, 0.0 }
 0x456   : > { %v6709_v32 = vmul.f32 %v3140_v3, %v1782_v18  ;;  %v3126_v2 = vpop.f32.mrb[2].mxu1  ;;  %v3197_v13 = vsel (!%p3443_p11), %vm3189_vm3, %v6705_v35, 0.0 }
 0x457   : > { %v6711_v24 = vmul.f32 %v3144_v31, %v3126_v2  ;;  %v3128_v56 = vpop.f32.mrb[3].mxu1  ;;  %v3203_v28 = vadd.f32 (!%p3443_p11), %v3202_v40, %v3196_v17  ;;  %v3198_v0 = vsel (!%p3443_p11), %vm3190_vm4, %v6707_v48, 0.0 }
 0x458   : > { %v6713_v10 = vmul.f32 %v3148_v58, %v3128_v56  ;;  %v3199_v27 = vsel (!%p3443_p11), %vm3191_vm5, %v6709_v32, 0.0 }
 0x459   : > { %v3204_v21 = vadd.f32 %v3203_v28, %v3197_v13  ;;  %v3207_v52 = vadd.f32 %v3199_v27, %v3198_v0  ;;  %v3200_v44 = vsel %vm3192_vm6, %v6711_v24, 0.0 }
 0x45a   : > { %v3201_v22 = vsel %vm3193_vm7, %v6713_v10, 0.0 }
 0x45b   : > { %3205 = vadd.xlane.f32.xlu1 %v3204_v21  ;;  %v3208_v16 = vadd.f32 %v3207_v52, %v3200_v44 }
 0x45d   : > { %v3209_v29 = vadd.f32 %v3208_v16, %v3201_v22 }
 0x45f   : > { %3210 = vadd.xlane.f32.xlu1 %v3209_v29 }
 0x4e8   : > { %v3206_v50 = vpop.xlane.xlu1 %3205 }
 0x4e9   : > { %v3212_v47 = vmul.f32 0.015625, %v3206_v50 }
 0x4eb   : > { %v3214_v62 = vmul.f32 %v3212_v47, %v3212_v47  ;;  %v3236_v59 = vmul.f32 0.9553365, %v3212_v47  ;;  %v3445_v14 = vadd.f32 -0.08865606, %v3212_v47  ;;  %vm3242_vm11 = vcmp.gt.f32.partialorder %v3212_v47, -0.9553365 }
 0x4ec   : > { %v3211_v8 = vpop.xlane.xlu1 %3210 }
 0x4ed   : > { %v3216_v26 = vsub.f32 1.0, %v3214_v62  ;;  %v3213_v54 = vmul.f32 0.015625, %v3211_v8 }
 0x4ef   : > { %v3218_v6 = vmax.f32 %v3216_v26, 0.0  ;;  %v3215_v41 = vmul.f32 %v3213_v54, %v3213_v54  ;;  %v3237_v34 = vmul.f32 0.9553365, %v3213_v54  ;;  %vm3243_vm13 = vcmp.gt.f32.partialorder %v3213_v54, -0.9553365 }
 0x4f0   : > { %v3446_v15 = vadd.f32 -0.08865606, %v3213_v54 }
 0x4f1   : > { %v3220_v23 = vmin.f32 %v3218_v6, 1.0  ;;  %v3217_v39 = vsub.f32 1.0, %v3215_v41 }
 0x4f3   : > { %4345 = vrsqrt.f32 %v3220_v23  ;;  %v3219_v1 = vmax.f32 %v3217_v39, 0.0  ;;  %vm3224_vm8 = vcmp.eq.f32.partialorder %v3220_v23, inf  ;;  %v3227_v12 = vand.u32 2147483648, %v3220_v23 }
 0x4f4   : > { %vm3226_vm9 = vcmp.eq.f32.partialorder %v3220_v23, 0.0 }
 0x4f5   : > { %v3221_v43 = vmin.f32 %v3219_v1, 1.0 }
 0x4f7   : > { %4347 = vrsqrt.f32 %v3221_v43  ;;  %vm3231_vm10 = vcmp.eq.f32.partialorder %v3221_v43, inf  ;;  %v3234_v36 = vand.u32 2147483648, %v3221_v43  ;;  %vm3233_vm12 = vcmp.eq.f32.partialorder %v3221_v43, 0.0 }
 0x4fd   : > { %v4346_v30 = vpop.eup %4345 }
 0x4fe   : > { %v3223_v46 = vmul.f32 %v4346_v30, %v3220_v23 }
 0x500   : > { %v3225_v42 = vsel %vm3224_vm8, %v3220_v23, %v3223_v46 }
 0x501   : > { %v3228_v38 = vsel %vm3226_vm9, %v3227_v12, %v3225_v42  ;;  %v4348_v3 = vpop.eup %4347 }
 0x502   : > { %v3238_v31 = vmul.f32 0.29552022, %v3228_v38  ;;  %v3230_v33 = vmul.f32 %v4348_v3, %v3221_v43 }
 0x504   : > { %v3240_v58 = vsub.f32 %v3236_v59, %v3238_v31  ;;  %v3232_v57 = vsel %vm3231_vm10, %v3221_v43, %v3230_v33 }
 0x505   : > { %v3235_v2 = vsel %vm3233_vm12, %v3234_v36, %v3232_v57 }
 0x506   : > { %v3246_v18 = vsel %vm3242_vm11, %v3240_v58, %v3445_v14  ;;  %v3239_v20 = vmul.f32 0.29552022, %v3235_v2 }
 0x507   : > { %v3248_v56 = vsub.f32 %v3246_v18, %v3212_v47 }
 0x508   : > { %v3241_v60 = vsub.f32 %v3237_v34, %v3239_v20 }
 0x509   : > { %v3250_v55 = vmul.f32 64.0, %v3248_v56 }
 0x50a   : > { %v3247_v0 = vsel %vm3243_vm13, %v3241_v60, %v3446_v15 }
 0x50b   : > { %v3252_v25 = vsel %vm3186_vm0, %v3250_v55, 0.0  ;;  %v3253_v19 = vsel %vm3187_vm1, %v3250_v55, 0.0  ;;  %v3254_v11 = vsel %vm3188_vm2, %v3250_v55, 0.0  ;;  %v3255_v49 = vsel %vm3189_vm3, %v3250_v55, 0.0 }
 0x50c   : > { %v3260_v7 = vadd.f32 %v3252_v25, %v6699_v53  ;;  %v3261_v40 = vadd.f32 %v3253_v19, %v6701_v61  ;;  %v3262_v17 = vadd.f32 %v3254_v11, %v6703_v9  ;;  %v3263_v28 = vadd.f32 %v3255_v49, %v6705_v35 }
 0x50d   : > { %v3249_v27 = vsub.f32 %v3247_v0, %v3213_v54 }
 0x50e   : > { %3268 = vst [vmem:[%s6717_s10] sm:$0xff] %v3260_v7  ;;  %3269 = vst [vmem:[%s6717_s10 + $0x8] sm:$0xff] %v3261_v40 }
 0x50f   : > { %3270 = vst [vmem:[%s6717_s10 + $0x10] sm:$0xff] %v3262_v17  ;;  %3271 = vst [vmem:[%s6717_s10 + $0x18] sm:$0xff] %v3263_v28  ;;  %v3251_v45 = vmul.f32 64.0, %v3249_v27 }
 0x511   : > { %v3256_v13 = vsel %vm3190_vm4, %v3251_v45, 0.0  ;;  %v3257_v21 = vsel %vm3191_vm5, %v3251_v45, 0.0  ;;  %v3258_v52 = vsel %vm3192_vm6, %v3251_v45, 0.0  ;;  %v3259_v44 = vsel %vm3193_vm7, %v3251_v45, 0.0 }
 0x512   : > { %v3264_v16 = vadd.f32 %v3256_v13, %v6707_v48  ;;  %v3265_v22 = vadd.f32 %v3257_v21, %v6709_v32  ;;  %v3266_v29 = vadd.f32 %v3258_v52, %v6711_v24  ;;  %v3267_v63 = vadd.f32 %v3259_v44, %v6713_v10 }
 0x514   : > { %3272 = vst [vmem:[%s6717_s10 + $0x20] sm:$0xff] %v3264_v16  ;;  %3273 = vst [vmem:[%s6717_s10 + $0x28] sm:$0xff] %v3265_v22 }
 0x515   : > { %3274 = vst [vmem:[%s6717_s10 + $0x30] sm:$0xff] %v3266_v29  ;;  %3275 = vst [vmem:[%s6717_s10 + $0x38] sm:$0xff] %v3267_v63 }
 0x516 PF: > { %s3276_s16 = sld [smem:[#allocation3 + %s4499_s25]] }
 0x51c   : > { %p3447_p13 = scmp.ne.s32.totalorder %s3276_s16, 0 }
 0x51d   : > { %3281 = vst [vmem:[%s6717_s10] sm:$0xff] (!%p3447_p13), %v6699_v53  ;;  %3282 = vst [vmem:[%s6717_s10 + $0x8] sm:$0xff] (!%p3447_p13), %v6701_v61 }
 0x51e   : > { %3280 = sbr.rel (%p3447_p13) target bundleno = 1317 (0x525), region = 52  ;;  %3283 = vst [vmem:[%s6717_s10 + $0x10] sm:$0xff] (!%p3447_p13), %v6703_v9  ;;  %3284 = vst [vmem:[%s6717_s10 + $0x18] sm:$0xff] (!%p3447_p13), %v6705_v35 }
 0x51f   : > { %3285 = vst [vmem:[%s6717_s10 + $0x20] sm:$0xff] (!%p3447_p13), %v6707_v48  ;;  %3286 = vst [vmem:[%s6717_s10 + $0x28] sm:$0xff] (!%p3447_p13), %v6709_v32 }
 0x520   : > { %3287 = vst [vmem:[%s6717_s10 + $0x30] sm:$0xff] (!%p3447_p13), %v6711_v24  ;;  %3288 = vst [vmem:[%s6717_s10 + $0x38] sm:$0xff] (!%p3447_p13), %v6713_v10 }
 0x525 PF: > { %s3455_s15 = sshll.u32 %s4499_s25, 9  ;;  %s3306_s7 = sshll.u32 %s6717_s10, 4  ;;  %s6851_s7 = int_to_ptr.vmem [resolvable:$true] %s3306_s7 }
 0x526   : > { %s6848_s9 = scalar_lea.hbm %s6905_s5, %s3455_s15  ;;  %s3290_s22 = scalar_lea.sflag [#allocation6], %s4714_s20 }
 0x527   : > { %s4419_s28 = scalar_lea.vmem %s6851_s7, 1024  ;;  %s4515_s29 = smov [#allocation9]  }
 0x528   : > { %p4420_p3 = scmp.ne.s32.totalorder %s6851_s7, %s4419_s28  ;;  %s4423_s14 = sshll.u32 %s4515_s29, 4  ;;  %s4424_s14 = int_to_ptr.vmem [resolvable:$false] %s4423_s14 }
 0x529   : > { %s4425_s25 = scalar_lea.vmem %s4424_s14, 2048  ;;  %p4426_p10 = scmp.lt.s32.totalorder %s6851_s7, %s4424_s14 }
 0x52a   : > { %p4421_p2 = pnand %p4420_p3, %p4651_p1  ;;  %p4427_p0 = scmp.lt.s32.totalorder %s4425_s25, %s4419_s28 }
 0x52c   : > { %p4422_p5 = pneg %p4421_p2  ;;  %p4428_p6 = por %p4427_p0, %p4426_p10 }
 0x52e   : > { %p4429_p7 = pnand %p4428_p6, %p4422_p5 }
 0x530   : > { %4432 = shalt.err (!%p4429_p7)
}
 0x531   : > { %s4433_s10 = scalar_lea.hbm %s6848_s9, 1024  ;;  %s4437_s19 = scalar_lea.hbm %s6905_s5, 2048 }
 0x532   : > { %p4434_p8 = scmp.ne.s32.totalorder %s6848_s9, %s4433_s10  ;;  %p4438_p9 = scmp.lt.u32.totalorder %s6848_s9, %s6905_s5 }
 0x533   : > { %p4439_p11 = scmp.lt.u32.totalorder %s4437_s19, %s4433_s10  ;;  %p4441_p3 = scmp.lt.u32.totalorder %s4433_s10, %s6848_s9 }
 0x534   : > { %p4435_p12 = pnand %p4434_p8, %p4651_p1 }
 0x535   : > { %p4440_p13 = por %p4439_p11, %p4438_p9 }
 0x536   : > { %p4436_p4 = pneg %p4435_p12 }
 0x537   : > { %p4442_p2 = por %p4441_p3, %p4440_p13 }
 0x539   : > { %p4443_p5 = pnand %p4442_p2, %p4436_p4 }
 0x53b   : > { %4446 = shalt.err (!%p4443_p5)
}
 0x53c   : > { %s4516_s15 = smov 512   ;;  %s4517_s6 = smov 1024  }
 0x53d   : > { %s4518_s30 = smov 32  }
 0x53e   : > { %4270 = dma.vmem_to_hbm [thread:$0]  (%p4651_p1), %s6851_s7, 1024, %s6848_s9, %s3290_s22, %s4516_s15, %s4517_s6, %s4518_s30  }
 0x53f PF: > { %s3321_s28 = sand.u32 1, %s4487_s23   ;;  %p8278_p10 = scmp.ne.s32.totalorder %s7446_s8, 0 }
 0x540   : > { %p8279_p0 = scmp.ge.s32.totalorder %s4507_s27, 2  ;;  %s3322_s29 = scalar_lea.sflag [#allocation6], %s3321_s28 }
 0x542   : > { %p4281_p6 = pnand %p8279_p0, %p8278_p10 }
 0x544   : > { %4482 = dma.done.wait (!%p4281_p6), %s3322_s29, 1024  }
 0x545   : > { %4484 = vsyncadd (!%p4281_p6), %s3322_s29, 4294966272  ;;  %s28_s27 = sadd.s32 1, %s4507_s27   ;;  %s8280_s23 = smov %s4491_s0 }
 0x546   : > { %p25_p7 = scmp.ge.s32.totalorder %s28_s27, 4   ;;  %s8281_s0 = smov %s4495_s24 }
 0x547   : > { %s8282_s24 = smov %s4660_s18  ;;  %s8283_s25 = smov %s4503_s26 }
 0x548   : > { %s8284_s26 = smov %s8286_s13  ;;  %27 = sbr.rel (!%p25_p7) target bundleno = 22 (0x16), region = 101 }
 0x54f   :  { %3327 = vsyncpa [#allocation5], 1 }
 0x550   :  { %3329 = vsyncpa [#allocation5 + $0x1], 1 }
 0x551   :  { %3330 = vsyncpa [#allocation8], 1 }
 0x552   :  { %3332 = vsyncpa [#allocation8 + $0x1], 1 }
 0x553   :  { %3333 = vsyncpa [#allocation6], 1 }
 0x554   :  { %3335 = vsyncpa [#allocation6 + $0x1], 1 }

</bundles_post_ra>
